<compile_context>
chip_gen: v5e
topology: v5e:2x2
jax: 0.10.0
libtpu: 0.0.40
codegen_flags: <defaults>
</compile_context>

<pallas_src>
import functools

import jax
import jax.numpy as jnp
from jax.experimental import pallas as pl
from jax.experimental.pallas import tpu as pltpu


# ----------------------------------------------------------------------------
# Fused kernel
# ----------------------------------------------------------------------------
def _layer_norm(x, gamma, beta, eps):
    mu = jnp.mean(x, axis=-1, keepdims=True)
    var = jnp.mean((x - mu) ** 2, axis=-1, keepdims=True)
    return (x - mu) * jax.lax.rsqrt(var + eps) * gamma + beta


def tencoder_fused_kernel(
        tin_ref,                                    # SMEM (B,) int32
        x_ref, s_ref, noise_ref,                    # (N,F) (N,S) (B,eta)
        w_in_f_ref, w_in_s_ref, b_in_ref,           # (F,H) (S,H) (1,H)
        wqkv_ref, bqkv_ref,                         # (L,H,3H) (L,1,3H)
        wo_ref, bo_ref, g1_ref, be1_ref,
        w1_ref, b1_ref, w2_ref, b2_ref, g2_ref, be2_ref,
        wl1h_ref, wl1e_ref, bl1_ref, wl2_ref, bl2_ref,
        o_ref,
        *, B, T, nhead, pad_val, eps, layers):
    N = B * T
    H = wo_ref.shape[-1]
    dh = H // nhead
    FF = b1_ref.shape[-1]
    f32 = jnp.float32
    bf16 = jnp.bfloat16

    tins = [tin_ref[b] for b in range(B)]           # scalar SMEM reads (once)

    # ---- hoisted masks / selectors (built once, reused by every layer) ------
    # (N,1) pad-valid mask: row n = b*T + t valid iff t < T_in[b]
    ridx = jax.lax.broadcasted_iota(jnp.int32, (N, 1), 0)
    valid = (ridx >= 0) & (ridx < tins[0])
    for b in range(1, B):
        valid = valid | ((ridx >= b * T) & (ridx < b * T + tins[b]))

    # (N,N) additive attention bias: allow (row, col) iff same batch block and
    # key position is valid; everything else gets -1e30.
    rows = jax.lax.broadcasted_iota(jnp.int32, (N, N), 0)
    cols = jax.lax.broadcasted_iota(jnp.int32, (N, N), 1)
    allowed = (rows < T) & (cols < tins[0])
    for b in range(1, B):
        in_rows = (rows >= b * T) & (rows < (b + 1) * T)
        in_cols = (cols >= b * T) & (cols < b * T + tins[b])
        allowed = allowed | (in_rows & in_cols)
    attn_bias = jnp.where(allowed, jnp.float32(0.0), jnp.float32(-1e30))

    # per-head lane masks (f32, scale folded into the q-side mask)
    scale = f32(1.0 / float(dh) ** 0.5)
    lane = jax.lax.broadcasted_iota(jnp.int32, (1, H), 1)
    hm = [((lane >= hh * dh) & (lane < (hh + 1) * dh)).astype(f32)
          for hh in range(nhead)]
    hm_scaled = [m * scale for m in hm]

    # one-hot selector for enc[:, -1, :] (rows T-1, 2T-1, ...), bf16
    brow = jax.lax.broadcasted_iota(jnp.int32, (B, N), 0)
    ncol = jax.lax.broadcasted_iota(jnp.int32, (B, N), 1)
    sel16 = (ncol == brow * T + (T - 1)).astype(f32).astype(bf16)

    # ---- input linear (batch*time folded into matmul rows) + pad fill -------
    y = (jnp.dot(x_ref[...].astype(bf16), w_in_f_ref[...],
                 preferred_element_type=f32)
         + jnp.dot(s_ref[...].astype(bf16), w_in_s_ref[...],
                   preferred_element_type=f32)
         + b_in_ref[...])                                            # (N, H)
    h = jnp.where(valid, y, f32(pad_val))                            # (N, H)

    CH = 512 if FF % 512 == 0 else FF                                # FFN chunk

    # ---- encoder layers (static unrolled loop, stacked weights) -------------
    for l in range(layers):
        h16 = h.astype(bf16)

        # fused QKV projection: one (N,H)@(H,3H) matmul, static split
        qkv = (jnp.dot(h16, wqkv_ref[l], preferred_element_type=f32)
               + bqkv_ref[l])                                        # (N, 3H)
        q = qkv[:, :H]
        k = qkv[:, H:2 * H]
        v = qkv[:, 2 * H:]

        kT16 = jnp.transpose(k).astype(bf16)                         # (H, N) once/layer
        v16 = v.astype(bf16)                                         # (N, H) once/layer

        attn = jnp.zeros((N, H), f32)
        for hh in range(nhead):
            # head-masked full-width q (scale folded into the mask)
            qm16 = (q * hm_scaled[hh]).astype(bf16)                  # (N, H)
            sc = jnp.dot(qm16, kT16, preferred_element_type=f32) + attn_bias
            m = jnp.max(sc, axis=-1, keepdims=True)
            p = jnp.exp(sc - m)
            p = p * pl.reciprocal(jnp.sum(p, axis=-1, keepdims=True),
                                  approx=True)
            # (p_h @ (v*mask_h)) == (p_h @ v) * mask_h  -> mask the f32 result
            attn = attn + (jnp.dot(p.astype(bf16), v16,
                                   preferred_element_type=f32) * hm[hh])

        attn = jnp.dot(attn.astype(bf16), wo_ref[l],
                       preferred_element_type=f32) + bo_ref[l]

        # residual + LayerNorm1
        y1 = _layer_norm(h + attn, g1_ref[l], be1_ref[l], eps)
        y1_16 = y1.astype(bf16)

        # feed-forward (Linear -> ReLU -> Linear), chunked over FF
        ff = jnp.zeros((N, H), f32)
        for c0 in range(0, FF, CH):
            t = (jnp.dot(y1_16, w1_ref[l, :, c0:c0 + CH],
                         preferred_element_type=f32)
                 + b1_ref[l, :, c0:c0 + CH])
            t = jnp.maximum(t, 0.0)
            ff = ff + jnp.dot(t.astype(bf16), w2_ref[l, c0:c0 + CH, :],
                              preferred_element_type=f32)

        # residual + LayerNorm2
        h = _layer_norm(y1 + ff + b2_ref[l], g2_ref[l], be2_ref[l], eps)

    # ---- enc[:, -1, :] via one-hot selector matmul (bf16, exact for 0/1) ----
    h16 = h.astype(bf16)
    last = jnp.dot(sel16, h16, preferred_element_type=f32)           # (B, H)

    # ---- head: out_linear(cat(last, noise)) as split matmuls ---------------
    z = (jnp.dot(last.astype(bf16), wl1h_ref[...], preferred_element_type=f32)
         + jnp.dot(noise_ref[...].astype(bf16), wl1e_ref[...],
                   preferred_element_type=f32)
         + bl1_ref[...])
    z = jnp.maximum(z, 0.0)
    o_ref[...] = (jnp.dot(z.astype(bf16), wl2_ref[...],
                          preferred_element_type=f32) + bl2_ref[...])


# ----------------------------------------------------------------------------
# Parameter init (deterministic, PyTorch-Linear-style uniform bounds)
# ----------------------------------------------------------------------------
def _linear_init(key, fan_in, fan_out):
    kw, kb = jax.random.split(key)
    bound = 1.0 / (fan_in ** 0.5)
    w = jax.random.uniform(kw, (fan_in, fan_out), jnp.float32, -bound, bound)
    b = jax.random.uniform(kb, (fan_out,), jnp.float32, -bound, bound)
    return w, b


def _init_layer(key, H, FF):
    ks = jax.random.split(key, 6)
    wq, bq = _linear_init(ks[0], H, H)
    wk, bk = _linear_init(ks[1], H, H)
    wv, bv = _linear_init(ks[2], H, H)
    wo, bo = _linear_init(ks[3], H, H)
    w1, b1 = _linear_init(ks[4], H, FF)
    w2, b2 = _linear_init(ks[5], FF, H)
    bf = jnp.bfloat16
    wqkv = jnp.concatenate([wq, wk, wv], axis=-1)          # (H, 3H)
    bqkv = jnp.concatenate([bq, bk, bv], axis=-1)          # (3H,)
    return dict(
        wqkv=wqkv.astype(bf), bqkv=bqkv.reshape(1, 3 * H),
        wo=wo.astype(bf), bo=bo.reshape(1, H),
        g1=jnp.ones((1, H), jnp.float32), be1=jnp.zeros((1, H), jnp.float32),
        w1=w1.astype(bf), b1=b1.reshape(1, FF),
        w2=w2.astype(bf), b2=b2.reshape(1, H),
        g2=jnp.ones((1, H), jnp.float32), be2=jnp.zeros((1, H), jnp.float32),
    )


def init_params(key, F_dim, S_dim, nhidden, eta_dim, Z_dim, layers, dim_ff):
    keys = jax.random.split(key, layers + 3)
    H = nhidden
    bf = jnp.bfloat16
    w_in, b_in = _linear_init(keys[0], F_dim + S_dim, H)
    w_l1, b_l1 = _linear_init(keys[1], H + eta_dim, H)
    w_l2, b_l2 = _linear_init(keys[2], H, Z_dim)
    layer_dicts = [_init_layer(keys[3 + l], H, dim_ff) for l in range(layers)]
    stacked = jax.tree_util.tree_map(lambda *a: jnp.stack(a), *layer_dicts)
    params = dict(
        w_in_f=w_in[:F_dim].astype(bf),     # cat([x,s]) @ W == x@W[:F] + s@W[F:]
        w_in_s=w_in[F_dim:].astype(bf),
        b_in=b_in.reshape(1, H),
        wl1h=w_l1[:H].astype(bf),           # cat([enc,noise]) @ W split likewise
        wl1e=w_l1[H:].astype(bf),
        bl1=b_l1.reshape(1, H),
        wl2=w_l2.astype(bf),
        bl2=b_l2.reshape(1, Z_dim),
    )
    params.update(stacked)
    return params


# ----------------------------------------------------------------------------
# Full forward (single pallas_call)
# ----------------------------------------------------------------------------
def tencoder_forward(params, x, T_in, s, noise, *, pad_val, nhead, layers):
    B, T, F = x.shape
    S = s.shape[-1]
    N = B * T
    H = params["b_in"].shape[-1]
    Z = params["bl2"].shape[-1]
    FF = params["b1"].shape[-1]
    eta = noise.shape[-1]

    kern = functools.partial(tencoder_fused_kernel, B=B, T=T, nhead=nhead,
                             pad_val=float(pad_val), eps=1e-5, layers=layers)

    args = (T_in.astype(jnp.int32),
            x.reshape(N, F), s.reshape(N, S), noise,
            params["w_in_f"], params["w_in_s"], params["b_in"],
            params["wqkv"], params["bqkv"],
            params["wo"], params["bo"], params["g1"], params["be1"],
            params["w1"], params["b1"], params["w2"], params["b2"],
            params["g2"], params["be2"],
            params["wl1h"], params["wl1e"], params["bl1"],
            params["wl2"], params["bl2"])

    in_specs = ([pl.BlockSpec(memory_space=pltpu.MemorySpace.SMEM)]
                + [pl.BlockSpec(memory_space=pltpu.MemorySpace.VMEM)]
                * (len(args) - 1))

    # advisory cost estimate for XLA scheduling of the (single) custom call
    flops = 2 * N * (F + S) * H
    flops += layers * (2 * N * H * 3 * H          # fused QKV
                       + nhead * 4 * N * N * H    # scores + attn
                       + 2 * N * H * H            # out proj
                       + 2 * N * H * FF * 2)      # FFN
    flops += 2 * B * N * H + 2 * B * ((H + eta) * H + H * Z)
    transcendentals = layers * nhead * N * N + 64
    bytes_accessed = int(sum(int(a.size) * a.dtype.itemsize for a in args)
                         + B * Z * 4)

    return pl.pallas_call(
        kern,
        out_shape=jax.ShapeDtypeStruct((B, Z), jnp.float32),
        in_specs=in_specs,
        out_specs=pl.BlockSpec(memory_space=pltpu.MemorySpace.VMEM),
        cost_estimate=pl.CostEstimate(flops=int(flops),
                                      transcendentals=int(transcendentals),
                                      bytes_accessed=bytes_accessed),
    )(*args)


# ----------------------------------------------------------------------------
if __name__ == "__main__":
    # Small deterministic config
    B, T = 2, 8
    Z_dim, S_dim, F_dim, eta_dim = 5, 2, 6, 4
    nhidden, layers, nhead = 32, 2, 2
    dim_ff = 2048            # PyTorch TransformerEncoderLayer default
    pad_val = -1.0

    root = jax.random.PRNGKey(0)
    k_x, k_s, k_n, k_p = jax.random.split(root, 4)

    x = jax.random.normal(k_x, (B, T, F_dim), jnp.float32)
    s = jax.random.normal(k_s, (B, T, S_dim), jnp.float32)
    T_in = jnp.array([T, 5], dtype=jnp.int32)                # 2nd seq is padded
    noise = jax.random.normal(k_n, (B, eta_dim), jnp.float32)  # rsample([B,eta])

    params = init_params(k_p, F_dim, S_dim, nhidden, eta_dim, Z_dim,
                         layers, dim_ff)

    out = tencoder_forward(params, x, T_in, s, noise,
                           pad_val=pad_val, nhead=nhead, layers=layers)
    out = jax.block_until_ready(out)
    assert out.shape == (B, Z_dim), out.shape
    assert bool(jnp.all(jnp.isfinite(out)))
    print("KERNEL_OK")
</pallas_src>

<mosaic_0001>
module attributes {stable_mosaic.version = 11 : i64} {
  func.func @tencoder_fused_kernel(%arg0: memref<2xi32, #tpu.memory_space<smem>>, %arg1: memref<16x6xf32, #tpu.memory_space<vmem>>, %arg2: memref<16x2xf32, #tpu.memory_space<vmem>>, %arg3: memref<2x4xf32, #tpu.memory_space<vmem>>, %arg4: memref<6x32xbf16, #tpu.memory_space<vmem>>, %arg5: memref<2x32xbf16, #tpu.memory_space<vmem>>, %arg6: memref<1x32xf32, #tpu.memory_space<vmem>>, %arg7: memref<2x32x96xbf16, #tpu.memory_space<vmem>>, %arg8: memref<2x1x96xf32, #tpu.memory_space<vmem>>, %arg9: memref<2x32x32xbf16, #tpu.memory_space<vmem>>, %arg10: memref<2x1x32xf32, #tpu.memory_space<vmem>>, %arg11: memref<2x1x32xf32, #tpu.memory_space<vmem>>, %arg12: memref<2x1x32xf32, #tpu.memory_space<vmem>>, %arg13: memref<2x32x2048xbf16, #tpu.memory_space<vmem>>, %arg14: memref<2x1x2048xf32, #tpu.memory_space<vmem>>, %arg15: memref<2x2048x32xbf16, #tpu.memory_space<vmem>>, %arg16: memref<2x1x32xf32, #tpu.memory_space<vmem>>, %arg17: memref<2x1x32xf32, #tpu.memory_space<vmem>>, %arg18: memref<2x1x32xf32, #tpu.memory_space<vmem>>, %arg19: memref<32x32xbf16, #tpu.memory_space<vmem>>, %arg20: memref<4x32xbf16, #tpu.memory_space<vmem>>, %arg21: memref<1x32xf32, #tpu.memory_space<vmem>>, %arg22: memref<32x5xbf16, #tpu.memory_space<vmem>>, %arg23: memref<1x5xf32, #tpu.memory_space<vmem>>, %arg24: memref<2x5xf32, #tpu.memory_space<vmem>>) attributes {dimension_semantics = [], scalar_prefetch = 0 : i64, scratch_operands = 0 : i64, tpu.core_type = #tpu.core_type<tc>} {
    %c0 = arith.constant 0 : index
    %0 = memref.load %arg0[%c0] : memref<2xi32, #tpu.memory_space<smem>>
    %c1 = arith.constant 1 : index
    %1 = memref.load %arg0[%c1] : memref<2xi32, #tpu.memory_space<smem>>
    %2 = tpu.iota {dimensions = array<i32: 0>} : vector<16x1xi32>
    %c0_i32 = arith.constant 0 : i32
    %3 = vector.broadcast %c0_i32 : i32 to vector<16x1xi32>
    %4 = arith.cmpi sge, %2, %3 : vector<16x1xi32>
    %5 = vector.broadcast %0 : i32 to vector<16x1xi32>
    %6 = arith.cmpi slt, %2, %5 : vector<16x1xi32>
    %7 = arith.andi %4, %6 : vector<16x1xi1>
    %c8_i32 = arith.constant 8 : i32
    %8 = vector.broadcast %c8_i32 : i32 to vector<16x1xi32>
    %9 = arith.cmpi sge, %2, %8 : vector<16x1xi32>
    %c8_i32_0 = arith.constant 8 : i32
    %10 = arith.addi %c8_i32_0, %1 : i32
    %11 = vector.broadcast %10 : i32 to vector<16x1xi32>
    %12 = arith.cmpi slt, %2, %11 : vector<16x1xi32>
    %13 = arith.andi %9, %12 : vector<16x1xi1>
    %14 = arith.ori %7, %13 : vector<16x1xi1>
    %15 = tpu.iota {dimensions = array<i32: 0>} : vector<16x16xi32>
    %16 = tpu.iota {dimensions = array<i32: 1>} : vector<16x16xi32>
    %c8_i32_1 = arith.constant 8 : i32
    %17 = vector.broadcast %c8_i32_1 : i32 to vector<16x16xi32>
    %18 = arith.cmpi slt, %15, %17 : vector<16x16xi32>
    %19 = vector.broadcast %0 : i32 to vector<16x16xi32>
    %20 = arith.cmpi slt, %16, %19 : vector<16x16xi32>
    %21 = arith.andi %18, %20 : vector<16x16xi1>
    %c8_i32_2 = arith.constant 8 : i32
    %22 = vector.broadcast %c8_i32_2 : i32 to vector<16x16xi32>
    %23 = arith.cmpi sge, %15, %22 : vector<16x16xi32>
    %c16_i32 = arith.constant 16 : i32
    %24 = vector.broadcast %c16_i32 : i32 to vector<16x16xi32>
    %25 = arith.cmpi slt, %15, %24 : vector<16x16xi32>
    %26 = arith.andi %23, %25 : vector<16x16xi1>
    %c8_i32_3 = arith.constant 8 : i32
    %27 = vector.broadcast %c8_i32_3 : i32 to vector<16x16xi32>
    %28 = arith.cmpi sge, %16, %27 : vector<16x16xi32>
    %c8_i32_4 = arith.constant 8 : i32
    %29 = arith.addi %c8_i32_4, %1 : i32
    %30 = vector.broadcast %29 : i32 to vector<16x16xi32>
    %31 = arith.cmpi slt, %16, %30 : vector<16x16xi32>
    %32 = arith.andi %28, %31 : vector<16x16xi1>
    %33 = arith.andi %26, %32 : vector<16x16xi1>
    %34 = arith.ori %21, %33 : vector<16x16xi1>
    %cst = arith.constant 0.000000e+00 : f32
    %cst_5 = arith.constant -1.000000e+30 : f32
    %35 = vector.broadcast %cst : f32 to vector<16x16xf32>
    %36 = vector.broadcast %cst_5 : f32 to vector<16x16xf32>
    %37 = arith.select %34, %35, %36 : vector<16x16xi1>, vector<16x16xf32>
    %38 = tpu.iota {dimensions = array<i32: 1>} : vector<1x32xi32>
    %c0_i32_6 = arith.constant 0 : i32
    %39 = vector.broadcast %c0_i32_6 : i32 to vector<1x32xi32>
    %40 = arith.cmpi sge, %38, %39 : vector<1x32xi32>
    %c16_i32_7 = arith.constant 16 : i32
    %41 = vector.broadcast %c16_i32_7 : i32 to vector<1x32xi32>
    %42 = arith.cmpi slt, %38, %41 : vector<1x32xi32>
    %43 = arith.andi %40, %42 : vector<1x32xi1>
    %44 = arith.extui %43 : vector<1x32xi1> to vector<1x32xi32>
    %45 = arith.sitofp %44 : vector<1x32xi32> to vector<1x32xf32>
    %c16_i32_8 = arith.constant 16 : i32
    %46 = vector.broadcast %c16_i32_8 : i32 to vector<1x32xi32>
    %47 = arith.cmpi sge, %38, %46 : vector<1x32xi32>
    %c32_i32 = arith.constant 32 : i32
    %48 = vector.broadcast %c32_i32 : i32 to vector<1x32xi32>
    %49 = arith.cmpi slt, %38, %48 : vector<1x32xi32>
    %50 = arith.andi %47, %49 : vector<1x32xi1>
    %51 = arith.extui %50 : vector<1x32xi1> to vector<1x32xi32>
    %52 = arith.sitofp %51 : vector<1x32xi32> to vector<1x32xf32>
    %cst_9 = arith.constant 2.500000e-01 : f32
    %53 = vector.broadcast %cst_9 : f32 to vector<1x32xf32>
    %54 = arith.mulf %45, %53 : vector<1x32xf32>
    %cst_10 = arith.constant 2.500000e-01 : f32
    %55 = vector.broadcast %cst_10 : f32 to vector<1x32xf32>
    %56 = arith.mulf %52, %55 : vector<1x32xf32>
    %57 = tpu.iota {dimensions = array<i32: 0>} : vector<2x16xi32>
    %58 = tpu.iota {dimensions = array<i32: 1>} : vector<2x16xi32>
    %c8_i32_11 = arith.constant 8 : i32
    %59 = vector.broadcast %c8_i32_11 : i32 to vector<2x16xi32>
    %60 = arith.muli %57, %59 : vector<2x16xi32>
    %c7_i32 = arith.constant 7 : i32
    %61 = vector.broadcast %c7_i32 : i32 to vector<2x16xi32>
    %62 = arith.addi %60, %61 : vector<2x16xi32>
    %63 = arith.cmpi eq, %58, %62 : vector<2x16xi32>
    %64 = arith.extui %63 : vector<2x16xi1> to vector<2x16xi32>
    %65 = arith.sitofp %64 : vector<2x16xi32> to vector<2x16xf32>
    %66 = arith.truncf %65 : vector<2x16xf32> to vector<2x16xbf16>
    %c0_12 = arith.constant 0 : index
    %c0_13 = arith.constant 0 : index
    %67 = vector.load %arg1[%c0_12, %c0_13] : memref<16x6xf32, #tpu.memory_space<vmem>>, vector<16x6xf32>
    %68 = arith.truncf %67 : vector<16x6xf32> to vector<16x6xbf16>
    %c0_14 = arith.constant 0 : index
    %c0_15 = arith.constant 0 : index
    %69 = vector.load %arg4[%c0_14, %c0_15] : memref<6x32xbf16, #tpu.memory_space<vmem>>, vector<6x32xbf16>
    %cst_16 = arith.constant dense<0.000000e+00> : vector<16x32xf32>
    %70 = tpu.matmul %68, %69, %cst_16 {dimension_numbers = #tpu.dot_dimension_numbers<[1], [0], [0], [1], [0, 0, 1, 1], [], []>} : vector<16x6xbf16>, vector<6x32xbf16>, vector<16x32xf32> -> vector<16x32xf32>
    %c0_17 = arith.constant 0 : index
    %c0_18 = arith.constant 0 : index
    %71 = vector.load %arg2[%c0_17, %c0_18] : memref<16x2xf32, #tpu.memory_space<vmem>>, vector<16x2xf32>
    %72 = arith.truncf %71 : vector<16x2xf32> to vector<16x2xbf16>
    %c0_19 = arith.constant 0 : index
    %c0_20 = arith.constant 0 : index
    %73 = vector.load %arg5[%c0_19, %c0_20] : memref<2x32xbf16, #tpu.memory_space<vmem>>, vector<2x32xbf16>
    %cst_21 = arith.constant dense<0.000000e+00> : vector<16x32xf32>
    %74 = tpu.matmul %72, %73, %cst_21 {dimension_numbers = #tpu.dot_dimension_numbers<[1], [0], [0], [1], [0, 0, 1, 1], [], []>} : vector<16x2xbf16>, vector<2x32xbf16>, vector<16x32xf32> -> vector<16x32xf32>
    %75 = arith.addf %70, %74 : vector<16x32xf32>
    %c0_22 = arith.constant 0 : index
    %c0_23 = arith.constant 0 : index
    %76 = vector.load %arg6[%c0_22, %c0_23] : memref<1x32xf32, #tpu.memory_space<vmem>>, vector<1x32xf32>
    %77 = vector.broadcast %76 : vector<1x32xf32> to vector<16x32xf32>
    %78 = arith.addf %75, %77 : vector<16x32xf32>
    %cst_24 = arith.constant -1.000000e+00 : f32
    %79 = vector.shape_cast %14 : vector<16x1xi1> to vector<16x1xi1>
    %80 = vector.broadcast %79 : vector<16x1xi1> to vector<16x32xi1>
    %81 = vector.broadcast %cst_24 : f32 to vector<16x32xf32>
    %82 = arith.select %80, %78, %81 : vector<16x32xi1>, vector<16x32xf32>
    %83 = arith.truncf %82 : vector<16x32xf32> to vector<16x32xbf16>
    %c0_25 = arith.constant 0 : index
    %c0_26 = arith.constant 0 : index
    %c0_27 = arith.constant 0 : index
    %84 = vector.load %arg7[%c0_25, %c0_26, %c0_27] : memref<2x32x96xbf16, #tpu.memory_space<vmem>>, vector<1x32x96xbf16>
    %85 = vector.shape_cast %84 : vector<1x32x96xbf16> to vector<32x96xbf16>
    %cst_28 = arith.constant dense<0.000000e+00> : vector<16x96xf32>
    %86 = tpu.matmul %83, %85, %cst_28 {dimension_numbers = #tpu.dot_dimension_numbers<[1], [0], [0], [1], [0, 0, 1, 1], [], []>} : vector<16x32xbf16>, vector<32x96xbf16>, vector<16x96xf32> -> vector<16x96xf32>
    %c0_29 = arith.constant 0 : index
    %c0_30 = arith.constant 0 : index
    %c0_31 = arith.constant 0 : index
    %87 = vector.load %arg8[%c0_29, %c0_30, %c0_31] : memref<2x1x96xf32, #tpu.memory_space<vmem>>, vector<1x1x96xf32>
    %88 = vector.shape_cast %87 : vector<1x1x96xf32> to vector<1x96xf32>
    %89 = vector.broadcast %88 : vector<1x96xf32> to vector<16x96xf32>
    %90 = arith.addf %86, %89 : vector<16x96xf32>
    %91 = vector.extract_strided_slice %90 {offsets = [0, 0], sizes = [16, 32], strides = [1, 1]} : vector<16x96xf32> to vector<16x32xf32>
    %92 = vector.extract_strided_slice %90 {offsets = [0, 32], sizes = [16, 32], strides = [1, 1]} : vector<16x96xf32> to vector<16x32xf32>
    %93 = vector.extract_strided_slice %90 {offsets = [0, 64], sizes = [16, 32], strides = [1, 1]} : vector<16x96xf32> to vector<16x32xf32>
    %94 = tpu.transpose %92, [1, 0] : vector<16x32xf32> -> vector<32x16xf32>
    %95 = arith.truncf %94 : vector<32x16xf32> to vector<32x16xbf16>
    %96 = arith.truncf %93 : vector<16x32xf32> to vector<16x32xbf16>
    %cst_32 = arith.constant 0.000000e+00 : f32
    %97 = vector.broadcast %cst_32 : f32 to vector<16x32xf32>
    %98 = vector.broadcast %54 : vector<1x32xf32> to vector<16x32xf32>
    %99 = arith.mulf %91, %98 : vector<16x32xf32>
    %100 = arith.truncf %99 : vector<16x32xf32> to vector<16x32xbf16>
    %cst_33 = arith.constant dense<0.000000e+00> : vector<16x16xf32>
    %101 = tpu.matmul %100, %95, %cst_33 {dimension_numbers = #tpu.dot_dimension_numbers<[1], [0], [0], [1], [0, 0, 1, 1], [], []>} : vector<16x32xbf16>, vector<32x16xbf16>, vector<16x16xf32> -> vector<16x16xf32>
    %102 = arith.addf %101, %37 : vector<16x16xf32>
    %cst_34 = arith.constant dense<0xFF800000> : vector<16xf32>
    %103 = vector.multi_reduction <maximumf>, %102, %cst_34 [1] : vector<16x16xf32> to vector<16xf32>
    %104 = vector.shape_cast %103 : vector<16xf32> to vector<16x1xf32>
    %105 = vector.broadcast %104 : vector<16x1xf32> to vector<16x16xf32>
    %106 = arith.subf %102, %105 : vector<16x16xf32>
    %107 = math.exp %106 : vector<16x16xf32>
    %cst_35 = arith.constant dense<0.000000e+00> : vector<16xf32>
    %108 = vector.multi_reduction <add>, %107, %cst_35 [1] : vector<16x16xf32> to vector<16xf32>
    %109 = vector.shape_cast %108 : vector<16xf32> to vector<16x1xf32>
    %110 = tpu.reciprocal %109 {approx = true} : vector<16x1xf32> -> vector<16x1xf32>
    %111 = vector.broadcast %110 : vector<16x1xf32> to vector<16x16xf32>
    %112 = arith.mulf %107, %111 : vector<16x16xf32>
    %113 = arith.truncf %112 : vector<16x16xf32> to vector<16x16xbf16>
    %cst_36 = arith.constant dense<0.000000e+00> : vector<16x32xf32>
    %114 = tpu.matmul %113, %96, %cst_36 {dimension_numbers = #tpu.dot_dimension_numbers<[1], [0], [0], [1], [0, 0, 1, 1], [], []>} : vector<16x16xbf16>, vector<16x32xbf16>, vector<16x32xf32> -> vector<16x32xf32>
    %115 = vector.broadcast %45 : vector<1x32xf32> to vector<16x32xf32>
    %116 = arith.mulf %114, %115 : vector<16x32xf32>
    %117 = arith.addf %97, %116 : vector<16x32xf32>
    %118 = vector.broadcast %56 : vector<1x32xf32> to vector<16x32xf32>
    %119 = arith.mulf %91, %118 : vector<16x32xf32>
    %120 = arith.truncf %119 : vector<16x32xf32> to vector<16x32xbf16>
    %cst_37 = arith.constant dense<0.000000e+00> : vector<16x16xf32>
    %121 = tpu.matmul %120, %95, %cst_37 {dimension_numbers = #tpu.dot_dimension_numbers<[1], [0], [0], [1], [0, 0, 1, 1], [], []>} : vector<16x32xbf16>, vector<32x16xbf16>, vector<16x16xf32> -> vector<16x16xf32>
    %122 = arith.addf %121, %37 : vector<16x16xf32>
    %cst_38 = arith.constant dense<0xFF800000> : vector<16xf32>
    %123 = vector.multi_reduction <maximumf>, %122, %cst_38 [1] : vector<16x16xf32> to vector<16xf32>
    %124 = vector.shape_cast %123 : vector<16xf32> to vector<16x1xf32>
    %125 = vector.broadcast %124 : vector<16x1xf32> to vector<16x16xf32>
    %126 = arith.subf %122, %125 : vector<16x16xf32>
    %127 = math.exp %126 : vector<16x16xf32>
    %cst_39 = arith.constant dense<0.000000e+00> : vector<16xf32>
    %128 = vector.multi_reduction <add>, %127, %cst_39 [1] : vector<16x16xf32> to vector<16xf32>
    %129 = vector.shape_cast %128 : vector<16xf32> to vector<16x1xf32>
    %130 = tpu.reciprocal %129 {approx = true} : vector<16x1xf32> -> vector<16x1xf32>
    %131 = vector.broadcast %130 : vector<16x1xf32> to vector<16x16xf32>
    %132 = arith.mulf %127, %131 : vector<16x16xf32>
    %133 = arith.truncf %132 : vector<16x16xf32> to vector<16x16xbf16>
    %cst_40 = arith.constant dense<0.000000e+00> : vector<16x32xf32>
    %134 = tpu.matmul %133, %96, %cst_40 {dimension_numbers = #tpu.dot_dimension_numbers<[1], [0], [0], [1], [0, 0, 1, 1], [], []>} : vector<16x16xbf16>, vector<16x32xbf16>, vector<16x32xf32> -> vector<16x32xf32>
    %135 = vector.broadcast %52 : vector<1x32xf32> to vector<16x32xf32>
    %136 = arith.mulf %134, %135 : vector<16x32xf32>
    %137 = arith.addf %117, %136 : vector<16x32xf32>
    %138 = arith.truncf %137 : vector<16x32xf32> to vector<16x32xbf16>
    %c0_41 = arith.constant 0 : index
    %c0_42 = arith.constant 0 : index
    %c0_43 = arith.constant 0 : index
    %139 = vector.load %arg9[%c0_41, %c0_42, %c0_43] : memref<2x32x32xbf16, #tpu.memory_space<vmem>>, vector<1x32x32xbf16>
    %140 = vector.shape_cast %139 : vector<1x32x32xbf16> to vector<32x32xbf16>
    %cst_44 = arith.constant dense<0.000000e+00> : vector<16x32xf32>
    %141 = tpu.matmul %138, %140, %cst_44 {dimension_numbers = #tpu.dot_dimension_numbers<[1], [0], [0], [1], [0, 0, 1, 1], [], []>} : vector<16x32xbf16>, vector<32x32xbf16>, vector<16x32xf32> -> vector<16x32xf32>
    %c0_45 = arith.constant 0 : index
    %c0_46 = arith.constant 0 : index
    %c0_47 = arith.constant 0 : index
    %142 = vector.load %arg10[%c0_45, %c0_46, %c0_47] : memref<2x1x32xf32, #tpu.memory_space<vmem>>, vector<1x1x32xf32>
    %143 = vector.shape_cast %142 : vector<1x1x32xf32> to vector<1x32xf32>
    %144 = vector.broadcast %143 : vector<1x32xf32> to vector<16x32xf32>
    %145 = arith.addf %141, %144 : vector<16x32xf32>
    %146 = arith.addf %82, %145 : vector<16x32xf32>
    %c0_48 = arith.constant 0 : index
    %c0_49 = arith.constant 0 : index
    %c0_50 = arith.constant 0 : index
    %147 = vector.load %arg11[%c0_48, %c0_49, %c0_50] : memref<2x1x32xf32, #tpu.memory_space<vmem>>, vector<1x1x32xf32>
    %148 = vector.shape_cast %147 : vector<1x1x32xf32> to vector<1x32xf32>
    %c0_51 = arith.constant 0 : index
    %c0_52 = arith.constant 0 : index
    %c0_53 = arith.constant 0 : index
    %149 = vector.load %arg12[%c0_51, %c0_52, %c0_53] : memref<2x1x32xf32, #tpu.memory_space<vmem>>, vector<1x1x32xf32>
    %150 = vector.shape_cast %149 : vector<1x1x32xf32> to vector<1x32xf32>
    %cst_54 = arith.constant dense<0.000000e+00> : vector<16xf32>
    %151 = vector.multi_reduction <add>, %146, %cst_54 [1] : vector<16x32xf32> to vector<16xf32>
    %152 = vector.shape_cast %151 : vector<16xf32> to vector<16x1xf32>
    %cst_55 = arith.constant 3.200000e+01 : f32
    %153 = vector.broadcast %cst_55 : f32 to vector<16x1xf32>
    %154 = arith.divf %152, %153 : vector<16x1xf32>
    %155 = vector.broadcast %154 : vector<16x1xf32> to vector<16x32xf32>
    %156 = arith.subf %146, %155 : vector<16x32xf32>
    %157 = arith.mulf %156, %156 : vector<16x32xf32>
    %cst_56 = arith.constant dense<0.000000e+00> : vector<16xf32>
    %158 = vector.multi_reduction <add>, %157, %cst_56 [1] : vector<16x32xf32> to vector<16xf32>
    %159 = vector.shape_cast %158 : vector<16xf32> to vector<16x1xf32>
    %cst_57 = arith.constant 3.200000e+01 : f32
    %160 = vector.broadcast %cst_57 : f32 to vector<16x1xf32>
    %161 = arith.divf %159, %160 : vector<16x1xf32>
    %162 = vector.broadcast %154 : vector<16x1xf32> to vector<16x32xf32>
    %163 = arith.subf %146, %162 : vector<16x32xf32>
    %cst_58 = arith.constant 9.99999974E-6 : f32
    %164 = vector.broadcast %cst_58 : f32 to vector<16x1xf32>
    %165 = arith.addf %161, %164 : vector<16x1xf32>
    %166 = math.rsqrt %165 : vector<16x1xf32>
    %167 = vector.broadcast %166 : vector<16x1xf32> to vector<16x32xf32>
    %168 = arith.mulf %163, %167 : vector<16x32xf32>
    %169 = vector.broadcast %148 : vector<1x32xf32> to vector<16x32xf32>
    %170 = arith.mulf %168, %169 : vector<16x32xf32>
    %171 = vector.broadcast %150 : vector<1x32xf32> to vector<16x32xf32>
    %172 = arith.addf %170, %171 : vector<16x32xf32>
    %173 = arith.truncf %172 : vector<16x32xf32> to vector<16x32xbf16>
    %cst_59 = arith.constant 0.000000e+00 : f32
    %174 = vector.broadcast %cst_59 : f32 to vector<16x32xf32>
    %c0_60 = arith.constant 0 : index
    %c0_61 = arith.constant 0 : index
    %c0_62 = arith.constant 0 : index
    %175 = vector.load %arg13[%c0_60, %c0_61, %c0_62] : memref<2x32x2048xbf16, #tpu.memory_space<vmem>>, vector<1x32x512xbf16>
    %176 = vector.shape_cast %175 : vector<1x32x512xbf16> to vector<32x512xbf16>
    %cst_63 = arith.constant dense<0.000000e+00> : vector<16x512xf32>
    %177 = tpu.matmul %173, %176, %cst_63 {dimension_numbers = #tpu.dot_dimension_numbers<[1], [0], [0], [1], [0, 0, 1, 1], [], []>} : vector<16x32xbf16>, vector<32x512xbf16>, vector<16x512xf32> -> vector<16x512xf32>
    %c0_64 = arith.constant 0 : index
    %c0_65 = arith.constant 0 : index
    %c0_66 = arith.constant 0 : index
    %178 = vector.load %arg14[%c0_64, %c0_65, %c0_66] : memref<2x1x2048xf32, #tpu.memory_space<vmem>>, vector<1x1x512xf32>
    %179 = vector.shape_cast %178 : vector<1x1x512xf32> to vector<1x512xf32>
    %180 = vector.broadcast %179 : vector<1x512xf32> to vector<16x512xf32>
    %181 = arith.addf %177, %180 : vector<16x512xf32>
    %cst_67 = arith.constant 0.000000e+00 : f32
    %182 = vector.broadcast %cst_67 : f32 to vector<16x512xf32>
    %183 = arith.maximumf %181, %182 : vector<16x512xf32>
    %184 = arith.truncf %183 : vector<16x512xf32> to vector<16x512xbf16>
    %c0_68 = arith.constant 0 : index
    %c0_69 = arith.constant 0 : index
    %c0_70 = arith.constant 0 : index
    %185 = vector.load %arg15[%c0_68, %c0_69, %c0_70] : memref<2x2048x32xbf16, #tpu.memory_space<vmem>>, vector<1x512x32xbf16>
    %186 = vector.shape_cast %185 : vector<1x512x32xbf16> to vector<512x32xbf16>
    %cst_71 = arith.constant dense<0.000000e+00> : vector<16x32xf32>
    %187 = tpu.matmul %184, %186, %cst_71 {dimension_numbers = #tpu.dot_dimension_numbers<[1], [0], [0], [1], [0, 0, 1, 1], [], []>} : vector<16x512xbf16>, vector<512x32xbf16>, vector<16x32xf32> -> vector<16x32xf32>
    %188 = arith.addf %174, %187 : vector<16x32xf32>
    %c0_72 = arith.constant 0 : index
    %c0_73 = arith.constant 0 : index
    %c512 = arith.constant 512 : index
    %189 = vector.load %arg13[%c0_72, %c0_73, %c512] : memref<2x32x2048xbf16, #tpu.memory_space<vmem>>, vector<1x32x512xbf16>
    %190 = vector.shape_cast %189 : vector<1x32x512xbf16> to vector<32x512xbf16>
    %cst_74 = arith.constant dense<0.000000e+00> : vector<16x512xf32>
    %191 = tpu.matmul %173, %190, %cst_74 {dimension_numbers = #tpu.dot_dimension_numbers<[1], [0], [0], [1], [0, 0, 1, 1], [], []>} : vector<16x32xbf16>, vector<32x512xbf16>, vector<16x512xf32> -> vector<16x512xf32>
    %c0_75 = arith.constant 0 : index
    %c0_76 = arith.constant 0 : index
    %c512_77 = arith.constant 512 : index
    %192 = vector.load %arg14[%c0_75, %c0_76, %c512_77] : memref<2x1x2048xf32, #tpu.memory_space<vmem>>, vector<1x1x512xf32>
    %193 = vector.shape_cast %192 : vector<1x1x512xf32> to vector<1x512xf32>
    %194 = vector.broadcast %193 : vector<1x512xf32> to vector<16x512xf32>
    %195 = arith.addf %191, %194 : vector<16x512xf32>
    %cst_78 = arith.constant 0.000000e+00 : f32
    %196 = vector.broadcast %cst_78 : f32 to vector<16x512xf32>
    %197 = arith.maximumf %195, %196 : vector<16x512xf32>
    %198 = arith.truncf %197 : vector<16x512xf32> to vector<16x512xbf16>
    %c0_79 = arith.constant 0 : index
    %c512_80 = arith.constant 512 : index
    %c0_81 = arith.constant 0 : index
    %199 = vector.load %arg15[%c0_79, %c512_80, %c0_81] : memref<2x2048x32xbf16, #tpu.memory_space<vmem>>, vector<1x512x32xbf16>
    %200 = vector.shape_cast %199 : vector<1x512x32xbf16> to vector<512x32xbf16>
    %cst_82 = arith.constant dense<0.000000e+00> : vector<16x32xf32>
    %201 = tpu.matmul %198, %200, %cst_82 {dimension_numbers = #tpu.dot_dimension_numbers<[1], [0], [0], [1], [0, 0, 1, 1], [], []>} : vector<16x512xbf16>, vector<512x32xbf16>, vector<16x32xf32> -> vector<16x32xf32>
    %202 = arith.addf %188, %201 : vector<16x32xf32>
    %c0_83 = arith.constant 0 : index
    %c0_84 = arith.constant 0 : index
    %c1024 = arith.constant 1024 : index
    %203 = vector.load %arg13[%c0_83, %c0_84, %c1024] : memref<2x32x2048xbf16, #tpu.memory_space<vmem>>, vector<1x32x512xbf16>
    %204 = vector.shape_cast %203 : vector<1x32x512xbf16> to vector<32x512xbf16>
    %cst_85 = arith.constant dense<0.000000e+00> : vector<16x512xf32>
    %205 = tpu.matmul %173, %204, %cst_85 {dimension_numbers = #tpu.dot_dimension_numbers<[1], [0], [0], [1], [0, 0, 1, 1], [], []>} : vector<16x32xbf16>, vector<32x512xbf16>, vector<16x512xf32> -> vector<16x512xf32>
    %c0_86 = arith.constant 0 : index
    %c0_87 = arith.constant 0 : index
    %c1024_88 = arith.constant 1024 : index
    %206 = vector.load %arg14[%c0_86, %c0_87, %c1024_88] : memref<2x1x2048xf32, #tpu.memory_space<vmem>>, vector<1x1x512xf32>
    %207 = vector.shape_cast %206 : vector<1x1x512xf32> to vector<1x512xf32>
    %208 = vector.broadcast %207 : vector<1x512xf32> to vector<16x512xf32>
    %209 = arith.addf %205, %208 : vector<16x512xf32>
    %cst_89 = arith.constant 0.000000e+00 : f32
    %210 = vector.broadcast %cst_89 : f32 to vector<16x512xf32>
    %211 = arith.maximumf %209, %210 : vector<16x512xf32>
    %212 = arith.truncf %211 : vector<16x512xf32> to vector<16x512xbf16>
    %c0_90 = arith.constant 0 : index
    %c1024_91 = arith.constant 1024 : index
    %c0_92 = arith.constant 0 : index
    %213 = vector.load %arg15[%c0_90, %c1024_91, %c0_92] : memref<2x2048x32xbf16, #tpu.memory_space<vmem>>, vector<1x512x32xbf16>
    %214 = vector.shape_cast %213 : vector<1x512x32xbf16> to vector<512x32xbf16>
    %cst_93 = arith.constant dense<0.000000e+00> : vector<16x32xf32>
    %215 = tpu.matmul %212, %214, %cst_93 {dimension_numbers = #tpu.dot_dimension_numbers<[1], [0], [0], [1], [0, 0, 1, 1], [], []>} : vector<16x512xbf16>, vector<512x32xbf16>, vector<16x32xf32> -> vector<16x32xf32>
    %216 = arith.addf %202, %215 : vector<16x32xf32>
    %c0_94 = arith.constant 0 : index
    %c0_95 = arith.constant 0 : index
    %c1536 = arith.constant 1536 : index
    %217 = vector.load %arg13[%c0_94, %c0_95, %c1536] : memref<2x32x2048xbf16, #tpu.memory_space<vmem>>, vector<1x32x512xbf16>
    %218 = vector.shape_cast %217 : vector<1x32x512xbf16> to vector<32x512xbf16>
    %cst_96 = arith.constant dense<0.000000e+00> : vector<16x512xf32>
    %219 = tpu.matmul %173, %218, %cst_96 {dimension_numbers = #tpu.dot_dimension_numbers<[1], [0], [0], [1], [0, 0, 1, 1], [], []>} : vector<16x32xbf16>, vector<32x512xbf16>, vector<16x512xf32> -> vector<16x512xf32>
    %c0_97 = arith.constant 0 : index
    %c0_98 = arith.constant 0 : index
    %c1536_99 = arith.constant 1536 : index
    %220 = vector.load %arg14[%c0_97, %c0_98, %c1536_99] : memref<2x1x2048xf32, #tpu.memory_space<vmem>>, vector<1x1x512xf32>
    %221 = vector.shape_cast %220 : vector<1x1x512xf32> to vector<1x512xf32>
    %222 = vector.broadcast %221 : vector<1x512xf32> to vector<16x512xf32>
    %223 = arith.addf %219, %222 : vector<16x512xf32>
    %cst_100 = arith.constant 0.000000e+00 : f32
    %224 = vector.broadcast %cst_100 : f32 to vector<16x512xf32>
    %225 = arith.maximumf %223, %224 : vector<16x512xf32>
    %226 = arith.truncf %225 : vector<16x512xf32> to vector<16x512xbf16>
    %c0_101 = arith.constant 0 : index
    %c1536_102 = arith.constant 1536 : index
    %c0_103 = arith.constant 0 : index
    %227 = vector.load %arg15[%c0_101, %c1536_102, %c0_103] : memref<2x2048x32xbf16, #tpu.memory_space<vmem>>, vector<1x512x32xbf16>
    %228 = vector.shape_cast %227 : vector<1x512x32xbf16> to vector<512x32xbf16>
    %cst_104 = arith.constant dense<0.000000e+00> : vector<16x32xf32>
    %229 = tpu.matmul %226, %228, %cst_104 {dimension_numbers = #tpu.dot_dimension_numbers<[1], [0], [0], [1], [0, 0, 1, 1], [], []>} : vector<16x512xbf16>, vector<512x32xbf16>, vector<16x32xf32> -> vector<16x32xf32>
    %230 = arith.addf %216, %229 : vector<16x32xf32>
    %231 = arith.addf %172, %230 : vector<16x32xf32>
    %c0_105 = arith.constant 0 : index
    %c0_106 = arith.constant 0 : index
    %c0_107 = arith.constant 0 : index
    %232 = vector.load %arg16[%c0_105, %c0_106, %c0_107] : memref<2x1x32xf32, #tpu.memory_space<vmem>>, vector<1x1x32xf32>
    %233 = vector.shape_cast %232 : vector<1x1x32xf32> to vector<1x32xf32>
    %234 = vector.broadcast %233 : vector<1x32xf32> to vector<16x32xf32>
    %235 = arith.addf %231, %234 : vector<16x32xf32>
    %c0_108 = arith.constant 0 : index
    %c0_109 = arith.constant 0 : index
    %c0_110 = arith.constant 0 : index
    %236 = vector.load %arg17[%c0_108, %c0_109, %c0_110] : memref<2x1x32xf32, #tpu.memory_space<vmem>>, vector<1x1x32xf32>
    %237 = vector.shape_cast %236 : vector<1x1x32xf32> to vector<1x32xf32>
    %c0_111 = arith.constant 0 : index
    %c0_112 = arith.constant 0 : index
    %c0_113 = arith.constant 0 : index
    %238 = vector.load %arg18[%c0_111, %c0_112, %c0_113] : memref<2x1x32xf32, #tpu.memory_space<vmem>>, vector<1x1x32xf32>
    %239 = vector.shape_cast %238 : vector<1x1x32xf32> to vector<1x32xf32>
    %cst_114 = arith.constant dense<0.000000e+00> : vector<16xf32>
    %240 = vector.multi_reduction <add>, %235, %cst_114 [1] : vector<16x32xf32> to vector<16xf32>
    %241 = vector.shape_cast %240 : vector<16xf32> to vector<16x1xf32>
    %cst_115 = arith.constant 3.200000e+01 : f32
    %242 = vector.broadcast %cst_115 : f32 to vector<16x1xf32>
    %243 = arith.divf %241, %242 : vector<16x1xf32>
    %244 = vector.broadcast %243 : vector<16x1xf32> to vector<16x32xf32>
    %245 = arith.subf %235, %244 : vector<16x32xf32>
    %246 = arith.mulf %245, %245 : vector<16x32xf32>
    %cst_116 = arith.constant dense<0.000000e+00> : vector<16xf32>
    %247 = vector.multi_reduction <add>, %246, %cst_116 [1] : vector<16x32xf32> to vector<16xf32>
    %248 = vector.shape_cast %247 : vector<16xf32> to vector<16x1xf32>
    %cst_117 = arith.constant 3.200000e+01 : f32
    %249 = vector.broadcast %cst_117 : f32 to vector<16x1xf32>
    %250 = arith.divf %248, %249 : vector<16x1xf32>
    %251 = vector.broadcast %243 : vector<16x1xf32> to vector<16x32xf32>
    %252 = arith.subf %235, %251 : vector<16x32xf32>
    %cst_118 = arith.constant 9.99999974E-6 : f32
    %253 = vector.broadcast %cst_118 : f32 to vector<16x1xf32>
    %254 = arith.addf %250, %253 : vector<16x1xf32>
    %255 = math.rsqrt %254 : vector<16x1xf32>
    %256 = vector.broadcast %255 : vector<16x1xf32> to vector<16x32xf32>
    %257 = arith.mulf %252, %256 : vector<16x32xf32>
    %258 = vector.broadcast %237 : vector<1x32xf32> to vector<16x32xf32>
    %259 = arith.mulf %257, %258 : vector<16x32xf32>
    %260 = vector.broadcast %239 : vector<1x32xf32> to vector<16x32xf32>
    %261 = arith.addf %259, %260 : vector<16x32xf32>
    %262 = arith.truncf %261 : vector<16x32xf32> to vector<16x32xbf16>
    %c1_119 = arith.constant 1 : index
    %c0_120 = arith.constant 0 : index
    %c0_121 = arith.constant 0 : index
    %263 = vector.load %arg7[%c1_119, %c0_120, %c0_121] : memref<2x32x96xbf16, #tpu.memory_space<vmem>>, vector<1x32x96xbf16>
    %264 = vector.shape_cast %263 : vector<1x32x96xbf16> to vector<32x96xbf16>
    %cst_122 = arith.constant dense<0.000000e+00> : vector<16x96xf32>
    %265 = tpu.matmul %262, %264, %cst_122 {dimension_numbers = #tpu.dot_dimension_numbers<[1], [0], [0], [1], [0, 0, 1, 1], [], []>} : vector<16x32xbf16>, vector<32x96xbf16>, vector<16x96xf32> -> vector<16x96xf32>
    %c1_123 = arith.constant 1 : index
    %c0_124 = arith.constant 0 : index
    %c0_125 = arith.constant 0 : index
    %266 = vector.load %arg8[%c1_123, %c0_124, %c0_125] : memref<2x1x96xf32, #tpu.memory_space<vmem>>, vector<1x1x96xf32>
    %267 = vector.shape_cast %266 : vector<1x1x96xf32> to vector<1x96xf32>
    %268 = vector.broadcast %267 : vector<1x96xf32> to vector<16x96xf32>
    %269 = arith.addf %265, %268 : vector<16x96xf32>
    %270 = vector.extract_strided_slice %269 {offsets = [0, 0], sizes = [16, 32], strides = [1, 1]} : vector<16x96xf32> to vector<16x32xf32>
    %271 = vector.extract_strided_slice %269 {offsets = [0, 32], sizes = [16, 32], strides = [1, 1]} : vector<16x96xf32> to vector<16x32xf32>
    %272 = vector.extract_strided_slice %269 {offsets = [0, 64], sizes = [16, 32], strides = [1, 1]} : vector<16x96xf32> to vector<16x32xf32>
    %273 = tpu.transpose %271, [1, 0] : vector<16x32xf32> -> vector<32x16xf32>
    %274 = arith.truncf %273 : vector<32x16xf32> to vector<32x16xbf16>
    %275 = arith.truncf %272 : vector<16x32xf32> to vector<16x32xbf16>
    %cst_126 = arith.constant 0.000000e+00 : f32
    %276 = vector.broadcast %cst_126 : f32 to vector<16x32xf32>
    %277 = vector.broadcast %54 : vector<1x32xf32> to vector<16x32xf32>
    %278 = arith.mulf %270, %277 : vector<16x32xf32>
    %279 = arith.truncf %278 : vector<16x32xf32> to vector<16x32xbf16>
    %cst_127 = arith.constant dense<0.000000e+00> : vector<16x16xf32>
    %280 = tpu.matmul %279, %274, %cst_127 {dimension_numbers = #tpu.dot_dimension_numbers<[1], [0], [0], [1], [0, 0, 1, 1], [], []>} : vector<16x32xbf16>, vector<32x16xbf16>, vector<16x16xf32> -> vector<16x16xf32>
    %281 = arith.addf %280, %37 : vector<16x16xf32>
    %cst_128 = arith.constant dense<0xFF800000> : vector<16xf32>
    %282 = vector.multi_reduction <maximumf>, %281, %cst_128 [1] : vector<16x16xf32> to vector<16xf32>
    %283 = vector.shape_cast %282 : vector<16xf32> to vector<16x1xf32>
    %284 = vector.broadcast %283 : vector<16x1xf32> to vector<16x16xf32>
    %285 = arith.subf %281, %284 : vector<16x16xf32>
    %286 = math.exp %285 : vector<16x16xf32>
    %cst_129 = arith.constant dense<0.000000e+00> : vector<16xf32>
    %287 = vector.multi_reduction <add>, %286, %cst_129 [1] : vector<16x16xf32> to vector<16xf32>
    %288 = vector.shape_cast %287 : vector<16xf32> to vector<16x1xf32>
    %289 = tpu.reciprocal %288 {approx = true} : vector<16x1xf32> -> vector<16x1xf32>
    %290 = vector.broadcast %289 : vector<16x1xf32> to vector<16x16xf32>
    %291 = arith.mulf %286, %290 : vector<16x16xf32>
    %292 = arith.truncf %291 : vector<16x16xf32> to vector<16x16xbf16>
    %cst_130 = arith.constant dense<0.000000e+00> : vector<16x32xf32>
    %293 = tpu.matmul %292, %275, %cst_130 {dimension_numbers = #tpu.dot_dimension_numbers<[1], [0], [0], [1], [0, 0, 1, 1], [], []>} : vector<16x16xbf16>, vector<16x32xbf16>, vector<16x32xf32> -> vector<16x32xf32>
    %294 = vector.broadcast %45 : vector<1x32xf32> to vector<16x32xf32>
    %295 = arith.mulf %293, %294 : vector<16x32xf32>
    %296 = arith.addf %276, %295 : vector<16x32xf32>
    %297 = vector.broadcast %56 : vector<1x32xf32> to vector<16x32xf32>
    %298 = arith.mulf %270, %297 : vector<16x32xf32>
    %299 = arith.truncf %298 : vector<16x32xf32> to vector<16x32xbf16>
    %cst_131 = arith.constant dense<0.000000e+00> : vector<16x16xf32>
    %300 = tpu.matmul %299, %274, %cst_131 {dimension_numbers = #tpu.dot_dimension_numbers<[1], [0], [0], [1], [0, 0, 1, 1], [], []>} : vector<16x32xbf16>, vector<32x16xbf16>, vector<16x16xf32> -> vector<16x16xf32>
    %301 = arith.addf %300, %37 : vector<16x16xf32>
    %cst_132 = arith.constant dense<0xFF800000> : vector<16xf32>
    %302 = vector.multi_reduction <maximumf>, %301, %cst_132 [1] : vector<16x16xf32> to vector<16xf32>
    %303 = vector.shape_cast %302 : vector<16xf32> to vector<16x1xf32>
    %304 = vector.broadcast %303 : vector<16x1xf32> to vector<16x16xf32>
    %305 = arith.subf %301, %304 : vector<16x16xf32>
    %306 = math.exp %305 : vector<16x16xf32>
    %cst_133 = arith.constant dense<0.000000e+00> : vector<16xf32>
    %307 = vector.multi_reduction <add>, %306, %cst_133 [1] : vector<16x16xf32> to vector<16xf32>
    %308 = vector.shape_cast %307 : vector<16xf32> to vector<16x1xf32>
    %309 = tpu.reciprocal %308 {approx = true} : vector<16x1xf32> -> vector<16x1xf32>
    %310 = vector.broadcast %309 : vector<16x1xf32> to vector<16x16xf32>
    %311 = arith.mulf %306, %310 : vector<16x16xf32>
    %312 = arith.truncf %311 : vector<16x16xf32> to vector<16x16xbf16>
    %cst_134 = arith.constant dense<0.000000e+00> : vector<16x32xf32>
    %313 = tpu.matmul %312, %275, %cst_134 {dimension_numbers = #tpu.dot_dimension_numbers<[1], [0], [0], [1], [0, 0, 1, 1], [], []>} : vector<16x16xbf16>, vector<16x32xbf16>, vector<16x32xf32> -> vector<16x32xf32>
    %314 = vector.broadcast %52 : vector<1x32xf32> to vector<16x32xf32>
    %315 = arith.mulf %313, %314 : vector<16x32xf32>
    %316 = arith.addf %296, %315 : vector<16x32xf32>
    %317 = arith.truncf %316 : vector<16x32xf32> to vector<16x32xbf16>
    %c1_135 = arith.constant 1 : index
    %c0_136 = arith.constant 0 : index
    %c0_137 = arith.constant 0 : index
    %318 = vector.load %arg9[%c1_135, %c0_136, %c0_137] : memref<2x32x32xbf16, #tpu.memory_space<vmem>>, vector<1x32x32xbf16>
    %319 = vector.shape_cast %318 : vector<1x32x32xbf16> to vector<32x32xbf16>
    %cst_138 = arith.constant dense<0.000000e+00> : vector<16x32xf32>
    %320 = tpu.matmul %317, %319, %cst_138 {dimension_numbers = #tpu.dot_dimension_numbers<[1], [0], [0], [1], [0, 0, 1, 1], [], []>} : vector<16x32xbf16>, vector<32x32xbf16>, vector<16x32xf32> -> vector<16x32xf32>
    %c1_139 = arith.constant 1 : index
    %c0_140 = arith.constant 0 : index
    %c0_141 = arith.constant 0 : index
    %321 = vector.load %arg10[%c1_139, %c0_140, %c0_141] : memref<2x1x32xf32, #tpu.memory_space<vmem>>, vector<1x1x32xf32>
    %322 = vector.shape_cast %321 : vector<1x1x32xf32> to vector<1x32xf32>
    %323 = vector.broadcast %322 : vector<1x32xf32> to vector<16x32xf32>
    %324 = arith.addf %320, %323 : vector<16x32xf32>
    %325 = arith.addf %261, %324 : vector<16x32xf32>
    %c1_142 = arith.constant 1 : index
    %c0_143 = arith.constant 0 : index
    %c0_144 = arith.constant 0 : index
    %326 = vector.load %arg11[%c1_142, %c0_143, %c0_144] : memref<2x1x32xf32, #tpu.memory_space<vmem>>, vector<1x1x32xf32>
    %327 = vector.shape_cast %326 : vector<1x1x32xf32> to vector<1x32xf32>
    %c1_145 = arith.constant 1 : index
    %c0_146 = arith.constant 0 : index
    %c0_147 = arith.constant 0 : index
    %328 = vector.load %arg12[%c1_145, %c0_146, %c0_147] : memref<2x1x32xf32, #tpu.memory_space<vmem>>, vector<1x1x32xf32>
    %329 = vector.shape_cast %328 : vector<1x1x32xf32> to vector<1x32xf32>
    %cst_148 = arith.constant dense<0.000000e+00> : vector<16xf32>
    %330 = vector.multi_reduction <add>, %325, %cst_148 [1] : vector<16x32xf32> to vector<16xf32>
    %331 = vector.shape_cast %330 : vector<16xf32> to vector<16x1xf32>
    %cst_149 = arith.constant 3.200000e+01 : f32
    %332 = vector.broadcast %cst_149 : f32 to vector<16x1xf32>
    %333 = arith.divf %331, %332 : vector<16x1xf32>
    %334 = vector.broadcast %333 : vector<16x1xf32> to vector<16x32xf32>
    %335 = arith.subf %325, %334 : vector<16x32xf32>
    %336 = arith.mulf %335, %335 : vector<16x32xf32>
    %cst_150 = arith.constant dense<0.000000e+00> : vector<16xf32>
    %337 = vector.multi_reduction <add>, %336, %cst_150 [1] : vector<16x32xf32> to vector<16xf32>
    %338 = vector.shape_cast %337 : vector<16xf32> to vector<16x1xf32>
    %cst_151 = arith.constant 3.200000e+01 : f32
    %339 = vector.broadcast %cst_151 : f32 to vector<16x1xf32>
    %340 = arith.divf %338, %339 : vector<16x1xf32>
    %341 = vector.broadcast %333 : vector<16x1xf32> to vector<16x32xf32>
    %342 = arith.subf %325, %341 : vector<16x32xf32>
    %cst_152 = arith.constant 9.99999974E-6 : f32
    %343 = vector.broadcast %cst_152 : f32 to vector<16x1xf32>
    %344 = arith.addf %340, %343 : vector<16x1xf32>
    %345 = math.rsqrt %344 : vector<16x1xf32>
    %346 = vector.broadcast %345 : vector<16x1xf32> to vector<16x32xf32>
    %347 = arith.mulf %342, %346 : vector<16x32xf32>
    %348 = vector.broadcast %327 : vector<1x32xf32> to vector<16x32xf32>
    %349 = arith.mulf %347, %348 : vector<16x32xf32>
    %350 = vector.broadcast %329 : vector<1x32xf32> to vector<16x32xf32>
    %351 = arith.addf %349, %350 : vector<16x32xf32>
    %352 = arith.truncf %351 : vector<16x32xf32> to vector<16x32xbf16>
    %cst_153 = arith.constant 0.000000e+00 : f32
    %353 = vector.broadcast %cst_153 : f32 to vector<16x32xf32>
    %c1_154 = arith.constant 1 : index
    %c0_155 = arith.constant 0 : index
    %c0_156 = arith.constant 0 : index
    %354 = vector.load %arg13[%c1_154, %c0_155, %c0_156] : memref<2x32x2048xbf16, #tpu.memory_space<vmem>>, vector<1x32x512xbf16>
    %355 = vector.shape_cast %354 : vector<1x32x512xbf16> to vector<32x512xbf16>
    %cst_157 = arith.constant dense<0.000000e+00> : vector<16x512xf32>
    %356 = tpu.matmul %352, %355, %cst_157 {dimension_numbers = #tpu.dot_dimension_numbers<[1], [0], [0], [1], [0, 0, 1, 1], [], []>} : vector<16x32xbf16>, vector<32x512xbf16>, vector<16x512xf32> -> vector<16x512xf32>
    %c1_158 = arith.constant 1 : index
    %c0_159 = arith.constant 0 : index
    %c0_160 = arith.constant 0 : index
    %357 = vector.load %arg14[%c1_158, %c0_159, %c0_160] : memref<2x1x2048xf32, #tpu.memory_space<vmem>>, vector<1x1x512xf32>
    %358 = vector.shape_cast %357 : vector<1x1x512xf32> to vector<1x512xf32>
    %359 = vector.broadcast %358 : vector<1x512xf32> to vector<16x512xf32>
    %360 = arith.addf %356, %359 : vector<16x512xf32>
    %cst_161 = arith.constant 0.000000e+00 : f32
    %361 = vector.broadcast %cst_161 : f32 to vector<16x512xf32>
    %362 = arith.maximumf %360, %361 : vector<16x512xf32>
    %363 = arith.truncf %362 : vector<16x512xf32> to vector<16x512xbf16>
    %c1_162 = arith.constant 1 : index
    %c0_163 = arith.constant 0 : index
    %c0_164 = arith.constant 0 : index
    %364 = vector.load %arg15[%c1_162, %c0_163, %c0_164] : memref<2x2048x32xbf16, #tpu.memory_space<vmem>>, vector<1x512x32xbf16>
    %365 = vector.shape_cast %364 : vector<1x512x32xbf16> to vector<512x32xbf16>
    %cst_165 = arith.constant dense<0.000000e+00> : vector<16x32xf32>
    %366 = tpu.matmul %363, %365, %cst_165 {dimension_numbers = #tpu.dot_dimension_numbers<[1], [0], [0], [1], [0, 0, 1, 1], [], []>} : vector<16x512xbf16>, vector<512x32xbf16>, vector<16x32xf32> -> vector<16x32xf32>
    %367 = arith.addf %353, %366 : vector<16x32xf32>
    %c1_166 = arith.constant 1 : index
    %c0_167 = arith.constant 0 : index
    %c512_168 = arith.constant 512 : index
    %368 = vector.load %arg13[%c1_166, %c0_167, %c512_168] : memref<2x32x2048xbf16, #tpu.memory_space<vmem>>, vector<1x32x512xbf16>
    %369 = vector.shape_cast %368 : vector<1x32x512xbf16> to vector<32x512xbf16>
    %cst_169 = arith.constant dense<0.000000e+00> : vector<16x512xf32>
    %370 = tpu.matmul %352, %369, %cst_169 {dimension_numbers = #tpu.dot_dimension_numbers<[1], [0], [0], [1], [0, 0, 1, 1], [], []>} : vector<16x32xbf16>, vector<32x512xbf16>, vector<16x512xf32> -> vector<16x512xf32>
    %c1_170 = arith.constant 1 : index
    %c0_171 = arith.constant 0 : index
    %c512_172 = arith.constant 512 : index
    %371 = vector.load %arg14[%c1_170, %c0_171, %c512_172] : memref<2x1x2048xf32, #tpu.memory_space<vmem>>, vector<1x1x512xf32>
    %372 = vector.shape_cast %371 : vector<1x1x512xf32> to vector<1x512xf32>
    %373 = vector.broadcast %372 : vector<1x512xf32> to vector<16x512xf32>
    %374 = arith.addf %370, %373 : vector<16x512xf32>
    %cst_173 = arith.constant 0.000000e+00 : f32
    %375 = vector.broadcast %cst_173 : f32 to vector<16x512xf32>
    %376 = arith.maximumf %374, %375 : vector<16x512xf32>
    %377 = arith.truncf %376 : vector<16x512xf32> to vector<16x512xbf16>
    %c1_174 = arith.constant 1 : index
    %c512_175 = arith.constant 512 : index
    %c0_176 = arith.constant 0 : index
    %378 = vector.load %arg15[%c1_174, %c512_175, %c0_176] : memref<2x2048x32xbf16, #tpu.memory_space<vmem>>, vector<1x512x32xbf16>
    %379 = vector.shape_cast %378 : vector<1x512x32xbf16> to vector<512x32xbf16>
    %cst_177 = arith.constant dense<0.000000e+00> : vector<16x32xf32>
    %380 = tpu.matmul %377, %379, %cst_177 {dimension_numbers = #tpu.dot_dimension_numbers<[1], [0], [0], [1], [0, 0, 1, 1], [], []>} : vector<16x512xbf16>, vector<512x32xbf16>, vector<16x32xf32> -> vector<16x32xf32>
    %381 = arith.addf %367, %380 : vector<16x32xf32>
    %c1_178 = arith.constant 1 : index
    %c0_179 = arith.constant 0 : index
    %c1024_180 = arith.constant 1024 : index
    %382 = vector.load %arg13[%c1_178, %c0_179, %c1024_180] : memref<2x32x2048xbf16, #tpu.memory_space<vmem>>, vector<1x32x512xbf16>
    %383 = vector.shape_cast %382 : vector<1x32x512xbf16> to vector<32x512xbf16>
    %cst_181 = arith.constant dense<0.000000e+00> : vector<16x512xf32>
    %384 = tpu.matmul %352, %383, %cst_181 {dimension_numbers = #tpu.dot_dimension_numbers<[1], [0], [0], [1], [0, 0, 1, 1], [], []>} : vector<16x32xbf16>, vector<32x512xbf16>, vector<16x512xf32> -> vector<16x512xf32>
    %c1_182 = arith.constant 1 : index
    %c0_183 = arith.constant 0 : index
    %c1024_184 = arith.constant 1024 : index
    %385 = vector.load %arg14[%c1_182, %c0_183, %c1024_184] : memref<2x1x2048xf32, #tpu.memory_space<vmem>>, vector<1x1x512xf32>
    %386 = vector.shape_cast %385 : vector<1x1x512xf32> to vector<1x512xf32>
    %387 = vector.broadcast %386 : vector<1x512xf32> to vector<16x512xf32>
    %388 = arith.addf %384, %387 : vector<16x512xf32>
    %cst_185 = arith.constant 0.000000e+00 : f32
    %389 = vector.broadcast %cst_185 : f32 to vector<16x512xf32>
    %390 = arith.maximumf %388, %389 : vector<16x512xf32>
    %391 = arith.truncf %390 : vector<16x512xf32> to vector<16x512xbf16>
    %c1_186 = arith.constant 1 : index
    %c1024_187 = arith.constant 1024 : index
    %c0_188 = arith.constant 0 : index
    %392 = vector.load %arg15[%c1_186, %c1024_187, %c0_188] : memref<2x2048x32xbf16, #tpu.memory_space<vmem>>, vector<1x512x32xbf16>
    %393 = vector.shape_cast %392 : vector<1x512x32xbf16> to vector<512x32xbf16>
    %cst_189 = arith.constant dense<0.000000e+00> : vector<16x32xf32>
    %394 = tpu.matmul %391, %393, %cst_189 {dimension_numbers = #tpu.dot_dimension_numbers<[1], [0], [0], [1], [0, 0, 1, 1], [], []>} : vector<16x512xbf16>, vector<512x32xbf16>, vector<16x32xf32> -> vector<16x32xf32>
    %395 = arith.addf %381, %394 : vector<16x32xf32>
    %c1_190 = arith.constant 1 : index
    %c0_191 = arith.constant 0 : index
    %c1536_192 = arith.constant 1536 : index
    %396 = vector.load %arg13[%c1_190, %c0_191, %c1536_192] : memref<2x32x2048xbf16, #tpu.memory_space<vmem>>, vector<1x32x512xbf16>
    %397 = vector.shape_cast %396 : vector<1x32x512xbf16> to vector<32x512xbf16>
    %cst_193 = arith.constant dense<0.000000e+00> : vector<16x512xf32>
    %398 = tpu.matmul %352, %397, %cst_193 {dimension_numbers = #tpu.dot_dimension_numbers<[1], [0], [0], [1], [0, 0, 1, 1], [], []>} : vector<16x32xbf16>, vector<32x512xbf16>, vector<16x512xf32> -> vector<16x512xf32>
    %c1_194 = arith.constant 1 : index
    %c0_195 = arith.constant 0 : index
    %c1536_196 = arith.constant 1536 : index
    %399 = vector.load %arg14[%c1_194, %c0_195, %c1536_196] : memref<2x1x2048xf32, #tpu.memory_space<vmem>>, vector<1x1x512xf32>
    %400 = vector.shape_cast %399 : vector<1x1x512xf32> to vector<1x512xf32>
    %401 = vector.broadcast %400 : vector<1x512xf32> to vector<16x512xf32>
    %402 = arith.addf %398, %401 : vector<16x512xf32>
    %cst_197 = arith.constant 0.000000e+00 : f32
    %403 = vector.broadcast %cst_197 : f32 to vector<16x512xf32>
    %404 = arith.maximumf %402, %403 : vector<16x512xf32>
    %405 = arith.truncf %404 : vector<16x512xf32> to vector<16x512xbf16>
    %c1_198 = arith.constant 1 : index
    %c1536_199 = arith.constant 1536 : index
    %c0_200 = arith.constant 0 : index
    %406 = vector.load %arg15[%c1_198, %c1536_199, %c0_200] : memref<2x2048x32xbf16, #tpu.memory_space<vmem>>, vector<1x512x32xbf16>
    %407 = vector.shape_cast %406 : vector<1x512x32xbf16> to vector<512x32xbf16>
    %cst_201 = arith.constant dense<0.000000e+00> : vector<16x32xf32>
    %408 = tpu.matmul %405, %407, %cst_201 {dimension_numbers = #tpu.dot_dimension_numbers<[1], [0], [0], [1], [0, 0, 1, 1], [], []>} : vector<16x512xbf16>, vector<512x32xbf16>, vector<16x32xf32> -> vector<16x32xf32>
    %409 = arith.addf %395, %408 : vector<16x32xf32>
    %410 = arith.addf %351, %409 : vector<16x32xf32>
    %c1_202 = arith.constant 1 : index
    %c0_203 = arith.constant 0 : index
    %c0_204 = arith.constant 0 : index
    %411 = vector.load %arg16[%c1_202, %c0_203, %c0_204] : memref<2x1x32xf32, #tpu.memory_space<vmem>>, vector<1x1x32xf32>
    %412 = vector.shape_cast %411 : vector<1x1x32xf32> to vector<1x32xf32>
    %413 = vector.broadcast %412 : vector<1x32xf32> to vector<16x32xf32>
    %414 = arith.addf %410, %413 : vector<16x32xf32>
    %c1_205 = arith.constant 1 : index
    %c0_206 = arith.constant 0 : index
    %c0_207 = arith.constant 0 : index
    %415 = vector.load %arg17[%c1_205, %c0_206, %c0_207] : memref<2x1x32xf32, #tpu.memory_space<vmem>>, vector<1x1x32xf32>
    %416 = vector.shape_cast %415 : vector<1x1x32xf32> to vector<1x32xf32>
    %c1_208 = arith.constant 1 : index
    %c0_209 = arith.constant 0 : index
    %c0_210 = arith.constant 0 : index
    %417 = vector.load %arg18[%c1_208, %c0_209, %c0_210] : memref<2x1x32xf32, #tpu.memory_space<vmem>>, vector<1x1x32xf32>
    %418 = vector.shape_cast %417 : vector<1x1x32xf32> to vector<1x32xf32>
    %cst_211 = arith.constant dense<0.000000e+00> : vector<16xf32>
    %419 = vector.multi_reduction <add>, %414, %cst_211 [1] : vector<16x32xf32> to vector<16xf32>
    %420 = vector.shape_cast %419 : vector<16xf32> to vector<16x1xf32>
    %cst_212 = arith.constant 3.200000e+01 : f32
    %421 = vector.broadcast %cst_212 : f32 to vector<16x1xf32>
    %422 = arith.divf %420, %421 : vector<16x1xf32>
    %423 = vector.broadcast %422 : vector<16x1xf32> to vector<16x32xf32>
    %424 = arith.subf %414, %423 : vector<16x32xf32>
    %425 = arith.mulf %424, %424 : vector<16x32xf32>
    %cst_213 = arith.constant dense<0.000000e+00> : vector<16xf32>
    %426 = vector.multi_reduction <add>, %425, %cst_213 [1] : vector<16x32xf32> to vector<16xf32>
    %427 = vector.shape_cast %426 : vector<16xf32> to vector<16x1xf32>
    %cst_214 = arith.constant 3.200000e+01 : f32
    %428 = vector.broadcast %cst_214 : f32 to vector<16x1xf32>
    %429 = arith.divf %427, %428 : vector<16x1xf32>
    %430 = vector.broadcast %422 : vector<16x1xf32> to vector<16x32xf32>
    %431 = arith.subf %414, %430 : vector<16x32xf32>
    %cst_215 = arith.constant 9.99999974E-6 : f32
    %432 = vector.broadcast %cst_215 : f32 to vector<16x1xf32>
    %433 = arith.addf %429, %432 : vector<16x1xf32>
    %434 = math.rsqrt %433 : vector<16x1xf32>
    %435 = vector.broadcast %434 : vector<16x1xf32> to vector<16x32xf32>
    %436 = arith.mulf %431, %435 : vector<16x32xf32>
    %437 = vector.broadcast %416 : vector<1x32xf32> to vector<16x32xf32>
    %438 = arith.mulf %436, %437 : vector<16x32xf32>
    %439 = vector.broadcast %418 : vector<1x32xf32> to vector<16x32xf32>
    %440 = arith.addf %438, %439 : vector<16x32xf32>
    %441 = arith.truncf %440 : vector<16x32xf32> to vector<16x32xbf16>
    %cst_216 = arith.constant dense<0.000000e+00> : vector<2x32xf32>
    %442 = tpu.matmul %66, %441, %cst_216 {dimension_numbers = #tpu.dot_dimension_numbers<[1], [0], [0], [1], [0, 0, 1, 1], [], []>} : vector<2x16xbf16>, vector<16x32xbf16>, vector<2x32xf32> -> vector<2x32xf32>
    %443 = arith.truncf %442 : vector<2x32xf32> to vector<2x32xbf16>
    %c0_217 = arith.constant 0 : index
    %c0_218 = arith.constant 0 : index
    %444 = vector.load %arg19[%c0_217, %c0_218] : memref<32x32xbf16, #tpu.memory_space<vmem>>, vector<32x32xbf16>
    %cst_219 = arith.constant dense<0.000000e+00> : vector<2x32xf32>
    %445 = tpu.matmul %443, %444, %cst_219 {dimension_numbers = #tpu.dot_dimension_numbers<[1], [0], [0], [1], [0, 0, 1, 1], [], []>} : vector<2x32xbf16>, vector<32x32xbf16>, vector<2x32xf32> -> vector<2x32xf32>
    %c0_220 = arith.constant 0 : index
    %c0_221 = arith.constant 0 : index
    %446 = vector.load %arg3[%c0_220, %c0_221] : memref<2x4xf32, #tpu.memory_space<vmem>>, vector<2x4xf32>
    %447 = arith.truncf %446 : vector<2x4xf32> to vector<2x4xbf16>
    %c0_222 = arith.constant 0 : index
    %c0_223 = arith.constant 0 : index
    %448 = vector.load %arg20[%c0_222, %c0_223] : memref<4x32xbf16, #tpu.memory_space<vmem>>, vector<4x32xbf16>
    %cst_224 = arith.constant dense<0.000000e+00> : vector<2x32xf32>
    %449 = tpu.matmul %447, %448, %cst_224 {dimension_numbers = #tpu.dot_dimension_numbers<[1], [0], [0], [1], [0, 0, 1, 1], [], []>} : vector<2x4xbf16>, vector<4x32xbf16>, vector<2x32xf32> -> vector<2x32xf32>
    %450 = arith.addf %445, %449 : vector<2x32xf32>
    %c0_225 = arith.constant 0 : index
    %c0_226 = arith.constant 0 : index
    %451 = vector.load %arg21[%c0_225, %c0_226] : memref<1x32xf32, #tpu.memory_space<vmem>>, vector<1x32xf32>
    %452 = vector.broadcast %451 : vector<1x32xf32> to vector<2x32xf32>
    %453 = arith.addf %450, %452 : vector<2x32xf32>
    %cst_227 = arith.constant 0.000000e+00 : f32
    %454 = vector.broadcast %cst_227 : f32 to vector<2x32xf32>
    %455 = arith.maximumf %453, %454 : vector<2x32xf32>
    %456 = arith.truncf %455 : vector<2x32xf32> to vector<2x32xbf16>
    %c0_228 = arith.constant 0 : index
    %c0_229 = arith.constant 0 : index
    %457 = vector.load %arg22[%c0_228, %c0_229] : memref<32x5xbf16, #tpu.memory_space<vmem>>, vector<32x5xbf16>
    %cst_230 = arith.constant dense<0.000000e+00> : vector<2x5xf32>
    %458 = tpu.matmul %456, %457, %cst_230 {dimension_numbers = #tpu.dot_dimension_numbers<[1], [0], [0], [1], [0, 0, 1, 1], [], []>} : vector<2x32xbf16>, vector<32x5xbf16>, vector<2x5xf32> -> vector<2x5xf32>
    %c0_231 = arith.constant 0 : index
    %c0_232 = arith.constant 0 : index
    %459 = vector.load %arg23[%c0_231, %c0_232] : memref<1x5xf32, #tpu.memory_space<vmem>>, vector<1x5xf32>
    %460 = vector.broadcast %459 : vector<1x5xf32> to vector<2x5xf32>
    %461 = arith.addf %458, %460 : vector<2x5xf32>
    %c0_233 = arith.constant 0 : index
    %c0_234 = arith.constant 0 : index
    %462 = vector.load %arg24[%c0_233, %c0_234] : memref<2x5xf32, #tpu.memory_space<vmem>>, vector<2x5xf32>
    tpu.vector_store %arg24[%c0_233, %c0_234], %461 {strides = array<i32>} : memref<2x5xf32, #tpu.memory_space<vmem>>, vector<2x5xf32>,
    return
  }
}

</mosaic_0001>

<bundles_post_ra>
// kernel: tpu_custom_call.1
= control target key start
LH: loop header
LB: loop body
LE: loop exit
PB: predicated region body
PF: predicated region fallthrough
CT: control target
= control target key end

     0   :  { %s8565_s0 = inlined_call_operand.vmem [shape: s32[2], index: 0, kind: input, shape index: {}]   ;;  %s8566_s1 = inlined_call_operand.vmem [shape: f32[16,6], index: 1, kind: input, shape index: {}]   ;;  %s8567_s2 = inlined_call_operand.vmem [shape: f32[16,2], index: 2, kind: input, shape index: {}]   ;;  %s8568_s3 = inlined_call_operand.vmem [shape: f32[2,4], index: 3, kind: input, shape index: {}]   ;;  %s8569_s4 = inlined_call_operand.vmem [shape: bf16[6,32], index: 4, kind: input, shape index: {}]   ;;  %s8570_s5 = inlined_call_operand.vmem [shape: bf16[2,32], index: 5, kind: input, shape index: {}]   ;;  %s8571_s6 = inlined_call_operand.vmem [shape: f32[1,32], index: 6, kind: input, shape index: {}]   ;;  %s8572_s7 = inlined_call_operand.vmem [shape: bf16[2,32,96], index: 7, kind: input, shape index: {}]   ;;  %s8573_s8 = inlined_call_operand.vmem [shape: f32[2,1,96], index: 8, kind: input, shape index: {}]   ;;  %s8574_s9 = inlined_call_operand.vmem [shape: bf16[2,32,32], index: 9, kind: input, shape index: {}]   ;;  %s8575_s10 = inlined_call_operand.vmem [shape: f32[2,1,32], index: 10, kind: input, shape index: {}]   ;;  %s8576_s11 = inlined_call_operand.vmem [shape: f32[2,1,32], index: 11, kind: input, shape index: {}]   ;;  %s8577_s12 = inlined_call_operand.vmem [shape: f32[2,1,32], index: 12, kind: input, shape index: {}]   ;;  %s8578_s13 = inlined_call_operand.vmem [shape: bf16[2,32,2048], index: 13, kind: input, shape index: {}]   ;;  %s8579_s14 = inlined_call_operand.vmem [shape: f32[2,1,2048], index: 14, kind: input, shape index: {}]   ;;  %s8580_s15 = inlined_call_operand.vmem [shape: bf16[2,2048,32], index: 15, kind: input, shape index: {}]   ;;  %s8581_s16 = inlined_call_operand.vmem [shape: f32[2,1,32], index: 16, kind: input, shape index: {}]   ;;  %s8582_s17 = inlined_call_operand.vmem [shape: f32[2,1,32], index: 17, kind: input, shape index: {}]   ;;  %s8583_s18 = inlined_call_operand.vmem [shape: f32[2,1,32], index: 18, kind: input, shape index: {}]   ;;  %s8584_s19 = inlined_call_operand.vmem [shape: bf16[32,32], index: 19, kind: input, shape index: {}]   ;;  %s8585_s20 = inlined_call_operand.vmem [shape: bf16[4,32], index: 20, kind: input, shape index: {}]   ;;  %s8586_s21 = inlined_call_operand.vmem [shape: f32[1,32], index: 21, kind: input, shape index: {}]   ;;  %s8587_s22 = inlined_call_operand.vmem [shape: bf16[32,5], index: 22, kind: input, shape index: {}]   ;;  %s8588_s23 = inlined_call_operand.vmem [shape: f32[1,5], index: 23, kind: input, shape index: {}]   ;;  %s8589_s24 = inlined_call_operand.hbm [shape: f32[2,5], index: 24, kind: output, shape index: {}]  }
   0x1   :  { %8594 = sst [smem:[#allocation8_spill]] %s8565_s0 }
   0x2   :  { %8595 = sst [smem:[#allocation9_spill]] %s8566_s1 }
   0x3   :  { %8596 = sst [smem:[#allocation10_spill]] %s8567_s2 }
   0x4   :  { %8597 = sst [smem:[#allocation11_spill]] %s8568_s3 }
   0x5   :  { %8598 = sst [smem:[#allocation12_spill]] %s8569_s4 }
   0x6   :  { %8599 = sst [smem:[#allocation13_spill]] %s8570_s5 }
   0x7   :  { %8600 = sst [smem:[#allocation14_spill]] %s8571_s6 }
   0x8   :  { %8601 = sst [smem:[#allocation15_spill]] %s8572_s7 }
   0x9   :  { %8602 = sst [smem:[#allocation16_spill]] %s8573_s8 }
   0xa   :  { %29 = vsyncpa [#allocation4], 0 }
   0xb   :  { %30 = vsyncpa [#allocation3], 0  ;;  %s8603_s27 = sld [smem:[#allocation8_spill]]  ;;  %s6774_s6 = smov [#allocation2]  }
  0x11   :  { %s36_s28 = sshll.u32 %s8603_s27, 4  ;;  %s37_s28 = int_to_ptr.vmem [resolvable:$true] %s36_s28 }
  0x12   :  { %39 = dma.vmem_to_smem %s37_s28, 16, %s6774_s6, [#allocation4]  }
  0x13   :  { %6770 = dma.done.wait [#allocation4], 16  }
  0x14   :  { %6771 = vsyncadd [#allocation4], 4294967280 }
  0x15   :  { %90 = sfence }
  0x16   :  { %s8604_s0 = sld [smem:[#allocation13_spill]]  ;;  %vm164_vm0 = vcmask 1040384   ;;  %vm186_vm1 = vcmask 1042432   ;;  %vm160_vm2 = vcmask 15360   ;;  %vm182_vm3 = vcmask 48128   ;;  %s6776_s2 = smov 96  }
  0x17   :  { %s8605_s3 = sld [smem:[#allocation12_spill]]  ;;  %v94_v12 = vlaneseq  ;;  %vm237_vm8 = vcmask 261120   ;;  %v6775_v33 = vmov 0.0   ;;  %v6777_v55 = vmov -1e+30   ;;  %s6778_s29 = smov 64  }
  0x18   :  { %s8606_s4 = sld [smem:[#allocation10_spill]]  ;;  %vm318_vm14 = vcmask 130048   ;;  %s6780_s1 = smov [#allocation5]  }
  0x19   :  { %s8607_s28 = sld [smem:[#allocation9_spill]]  ;;  %v6933_v15 = vshrl.u32 %v94_v12, 7  ;;  %v6950_v29 = vand.u32 127, %v94_v12  ;;  %s4627_s5 = sshll.u32 %s6780_s1, 4  ;;  %s4628_s5 = int_to_ptr.vmem [resolvable:$true] %s4627_s5 }
  0x1a   :  { %s8608_s7 = sld [smem:[#allocation15_spill]] }
  0x1b   :  { %s4639_s25 = sld [smem:[#allocation2 + $0x1]]  ;;  %v96_v16 = vadd.s32 8, %v6933_v15  ;;  %vm139_vm9 = vcmp.ge.s32.totalorder %v6950_v29, 16  ;;  %vm140_vm10 = vcmp.lt.s32.totalorder %v6950_v29, 32  ;;  %vm135_vm12 = vcmp.lt.s32.totalorder %v6950_v29, 16 }
  0x1c   :  { %v159_v0 = vld [vmem:[%s8604_s0] sm:$0x1]  ;;  %s92_s8 = sld [smem:[#allocation2]]  ;;  %vm141_vm11 = vmand %vm139_vm9, %vm140_vm10  ;;  %v6966_v35 = vsel %vm135_vm12, 1.0, %v6775_v33  ;;  %vm125_vm15 = vcmp.ge.s32.totalorder %v6950_v29, 8 }
  0x1d   :  { %v155_v1 = vld [vmem:[%s8605_s3] sm:$0x7]  ;;  %v166_v2 = vsel %vm164_vm0, %v159_v0, 0  ;;  %s8609_s26 = sld [smem:[#allocation14_spill]]  ;;  %v6961_v34 = vsel %vm141_vm11, 1.0, %v6775_v33  ;;  %v6972_v37 = vmul.f32 0.25, %v6966_v35 }
  0x1e   :  { %v188_v3 = vsel %vm186_vm1, %v155_v1, 0  ;;  %v156_v4 = vld [vmem:[%s8606_s4] sm:$0xff]  ;;  %v157_v5 = vld [vmem:[%s8606_s4 + $0x8] sm:$0xff]  ;;  %175 = vmatpush.bf16.msra.mxu0 %v166_v2  ;;  %s8610_s6 = sld [smem:[#allocation16_spill]]  ;;  %v6969_v36 = vmul.f32 0.25, %v6961_v34 }
  0x1f   :  { %v152_v6 = vld [vmem:[%s8607_s28] sm:$0xff]  ;;  %197 = vmatpush.bf16.msra.mxu1 %v188_v3  ;;  %v158_v7 = vpack.c.bf16 %v157_v5, %v156_v4  ;;  %v153_v8 = vld [vmem:[%s8607_s28 + $0x8] sm:$0xff]  ;;  %s8611_s0 = sld [smem:[#allocation11_spill]] }
  0x20   :  { %v154_v9 = vpack.c.bf16 %v153_v8, %v152_v6  ;;  %v6329_v10 = vld [vmem:[%s8608_s7 + $0x8] sm:$0xff]  ;;  %v6328_v11 = vld [vmem:[%s8608_s7] sm:$0xff] }
  0x21   :  { %4643 = vmatmul.msk.bf16.vlgmr.msra.gmra.mxu0 %vm160_vm2, %v158_v7  ;;  %247 = vmatpush.bf16.msra.mxu2 %v6329_v10  ;;  %s106_s4 = sadd.s32 8, %s4639_s25 }
  0x22   :  { %4644 = vmatmul.msk.bf16.vlgmr.msra.gmra.mxu1 %vm182_vm3, %v154_v9  ;;  %v6936_v17 = vstv %s106_s4  ;;  %v99_v20 = vstv %s92_s8 }
  0x23   :  { %v6667_v19 = vld [vmem:[%s8609_s26] ss:$0 sm:$0xff]  ;;  %vm101_vm4 = vcmp.lt.s32.totalorder %v96_v16, %v99_v20  ;;  %vm109_vm5 = vcmp.lt.s32.totalorder %v96_v16, %v6936_v17  ;;  %vm100_vm6 = vcmp.lt.s32.totalorder %v6933_v15, %v99_v20  ;;  %vm118_vm13 = vcmp.lt.s32.totalorder %v6950_v29, %v99_v20 }
  0x24   :  { %vm113_vm7 = vmor %vm101_vm4, %vm109_vm5  ;;  %v6668_v30 = vld [vmem:[%s8610_s6] ss:$0 sm:$0xff]  ;;  %v6991_v56 = vsel %vm118_vm13, 0.0, %v6777_v55  ;;  %vm126_vm0 = vcmp.lt.s32.totalorder %v6950_v29, %v6936_v17 }
  0x25   :  { %248 = vmatpush.bf16.msra.mxu2 %v6328_v11  ;;  %vm127_vm1 = vmand %vm125_vm15, %vm126_vm0 }
  0x26   :  { %v6998_v61 = vsel %vm127_vm1, 0.0, %v6777_v55 }
  0x9e   :  { %v177_v13 = vpop.f32.mrf.mxu0 }
  0x9f   :  { %v199_v14 = vpop.f32.mrf.mxu1 }
  0xa0   :  { %v200_v18 = vadd.f32 %v199_v14, %v177_v13 }
  0xa2   :  { %v208_v23 = vadd.f32 %v6667_v19, %v200_v18 }
  0xa4   :  { %v6943_v26 = vsel %vm100_vm6, %v208_v23, -1.0 }
  0xa6   :  { %v179_v21 = vpop.f32.mrf.mxu0 }
  0xa7   :  { %v201_v22 = vpop.f32.mrf.mxu1 }
  0xa8   :  { %v202_v24 = vadd.f32 %v201_v22, %v179_v21 }
  0xaa   :  { %v209_v25 = vadd.f32 %v6667_v19, %v202_v24 }
  0xac   :  { %v6945_v27 = vsel %vm113_vm7, %v209_v25, -1.0 }
  0xad   :  { %v216_v28 = vpack.c.bf16 %v6945_v27, %v6943_v26 }
  0xaf   :  { %4653 = vmatmul.msk.bf16.vlgmr.msra.gmra.mxu2 %vm237_vm8, %v216_v28 }
 0x132   :  { %v250_v31 = vpop.f32.mrf.mxu2 }
 0x133   :  { %v6957_v32 = vadd.f32 %v6668_v30, %v250_v31 }
 0x135   :  { %257 = vrot.lane.b32.xlu0 %v6957_v32, %s6776_s2  ;;  %v367_v40 = vmul.f32 %v6957_v32, %v6969_v36  ;;  %v298_v41 = vmul.f32 %v6957_v32, %v6972_v37 }
 0x13a   :  { %v252_v38 = vpop.f32.mrf.mxu2 }
 0x13b   :  { %v6974_v39 = vadd.f32 %v6668_v30, %v252_v38 }
 0x13d   :  { %259 = vrot.lane.b32.xlu0 %v6974_v39, %s6776_s2  ;;  %v299_v42 = vmul.f32 %v6974_v39, %v6972_v37  ;;  %v368_v43 = vmul.f32 %v6974_v39, %v6969_v36  ;;  %v297_v44 = vpack.c.bf16 %v6974_v39, %v6957_v32 }
 0x13f   :  { %v300_v45 = vpack.c.bf16 %v299_v42, %v298_v41  ;;  %v369_v46 = vpack.c.bf16 %v368_v43, %v367_v40 }
 0x1a7   :  { %v258_v47 = vpop.permute.xlu0 %257 }
 0x1a8   :  { %263 = vxpose.xlu1.b32.start [1/2] (short) (narrow) %v258_v47, 32 }
 0x1af   :  { %v260_v48 = vpop.permute.xlu0 %259 }
 0x1b0   :  { %264 = vxpose.xlu1.b32.end [2/2] (short) (narrow) %v260_v48, 32 }
 0x24c   :  { %v279_v49 = vpop.trf.xlu1 }
 0x254   :  { %v280_v50 = vpop.trf.xlu1 }
 0x255   :  { %v295_v54 = vpack.c.bf16 %v280_v50, %v279_v49 }
 0x25c   :  { %v281_v51 = vpop.trf.xlu1 }
 0x264   :  { %v282_v52 = vpop.trf.xlu1 }
 0x265   :  { %v296_v53 = vpack.c.bf16 %v282_v52, %v281_v51  ;;  %v6330_v51 = vld [vmem:[%s8574_s9] sm:$0xff] }
 0x267   :  { %310 = vmatpush.bf16.msra.mxu3 %v296_v53  ;;  %379 = vmatpush.bf16.msrb.mxu1 %v296_v53 }
 0x26b   :  { %311 = vmatpush.bf16.msra.mxu3 %v295_v54  ;;  %380 = vmatpush.bf16.msrb.mxu1 %v295_v54 }
 0x26e   :  { %4654 = vmatmul.msk.bf16.vlgmr.msra.gmra.mxu3 %vm237_vm8, %v300_v45  ;;  %4656 = vmatmul.msk.bf16.vlgmr.msrb.gmra.mxu1 %vm237_vm8, %v369_v46 }
 0x2eb   :  { %v382_v57 = vpop.f32.mrf.mxu1 }
 0x2ec   :  { %v383_v58 = vadd.f32 %v382_v57, %v6991_v56 }
 0x2ee   :  { %v387_v59 = vsel %vm318_vm14, %v383_v58, -inf }
 0x2ef   :  { %388 = vmax.xlane.f32.xlu2 %v387_v59 }
 0x2f1   :  { %v313_v60 = vpop.f32.mrf.mxu3 }
 0x2f2   :  { %v314_v62 = vadd.f32 %v313_v60, %v6991_v56 }
 0x2f3   :  { %v384_v63 = vpop.f32.mrf.mxu1 }
 0x2f4   :  { %v385_v0 = vadd.f32 %v384_v63, %v6998_v61  ;;  %v319_v1 = vsel %vm318_vm14, %v314_v62, -inf }
 0x2f5   :  { %320 = vmax.xlane.f32.xlu0 %v319_v1  ;;  %v6669_v1 = vld [vmem:[%s8575_s10] ss:$0 sm:$0xff] }
 0x2f6   :  { %v390_v2 = vsel %vm318_vm14, %v385_v0, -inf }
 0x2f7   :  { %391 = vmax.xlane.f32.xlu2 %v390_v2 }
 0x2f9   :  { %v315_v3 = vpop.f32.mrf.mxu3 }
 0x2fa   :  { %v316_v4 = vadd.f32 %v315_v3, %v6998_v61 }
 0x2fc   :  { %v322_v5 = vsel %vm318_vm14, %v316_v4, -inf }
 0x2fd   :  { %323 = vmax.xlane.f32.xlu1 %v322_v5 }
 0x362   :  { %v389_v6 = vpop.xlane.xlu2 %388 }
 0x363   :  { %v393_v7 = vsub.f32 %v383_v58, %v389_v6 }
 0x365   :  { %v395_v8 = vmul.f32 1.442695, %v393_v7 }
 0x367   :  { %6684 = vpow2.f32 %v395_v8 }
 0x368   :  { %v321_v9 = vpop.xlane.xlu0 %320 }
 0x369   :  { %v325_v10 = vsub.f32 %v314_v62, %v321_v9 }
 0x36a   :  { %v392_v11 = vpop.xlane.xlu2 %391 }
 0x36b   :  { %v327_v12 = vmul.f32 1.442695, %v325_v10  ;;  %v394_v14 = vsub.f32 %v385_v0, %v392_v11  ;;  %v6779_v10 = vmov 32.0  }
 0x36d   :  { %v6685_v13 = vpop.eup %6684  ;;  %6686 = vpow2.f32 %v327_v12  ;;  %v397_v17 = vmul.f32 1.442695, %v394_v14 }
 0x36e   :  { %v399_v16 = vsel %vm318_vm14, %v6685_v13, 0.0 }
 0x36f   :  { %400 = vadd.xlane.f32.xlu2 %v399_v16  ;;  %6688 = vpow2.f32 %v397_v17 }
 0x370   :  { %v324_v18 = vpop.xlane.xlu1 %323 }
 0x371   :  { %v326_v20 = vsub.f32 %v316_v4, %v324_v18 }
 0x373   :  { %v6687_v19 = vpop.eup %6686  ;;  %v329_v22 = vmul.f32 1.442695, %v326_v20 }
 0x374   :  { %v331_v21 = vsel %vm318_vm14, %v6687_v19, 0.0 }
 0x375   :  { %v6689_v23 = vpop.eup %6688  ;;  %6690 = vpow2.f32 %v329_v22 }
 0x376   :  { %v402_v24 = vsel %vm318_vm14, %v6689_v23, 0.0 }
 0x377   :  { %332 = vadd.xlane.f32.xlu2 %v331_v21 }
 0x37b   :  { %v6691_v25 = vpop.eup %6690 }
 0x37c   :  { %v334_v28 = vsel %vm318_vm14, %v6691_v25, 0.0 }
 0x37f   :  { %403 = vadd.xlane.f32.xlu2 %v402_v24 }
 0x387   :  { %335 = vadd.xlane.f32.xlu2 %v334_v28  ;;  %v4685_v28 = vld [vmem:[%s8578_s13 + $0x80] sm:$0xf] }
 0x39f   :  { %343 = vrot.lane.b32.xlu2 %v297_v44, %s6778_s29  ;;  %v6331_v44 = vld [vmem:[%s8574_s9 + $0x8] sm:$0xff] }
 0x3a0   :  { %461 = vmatpush.bf16.msrb.mxu3 %v6331_v44  ;;  %v6332_v44 = vld [vmem:[%s8578_s13 + $0x4] sm:$0xf] }
 0x3a4   :  { %462 = vmatpush.bf16.msrb.mxu3 %v6330_v51 }
 0x3e2   :  { %v401_v30 = vpop.xlane.xlu2 %400 }
 0x3ea   :  { %v333_v31 = vpop.xlane.xlu2 %332 }
 0x3f2   :  { %v404_v38 = vpop.xlane.xlu2 %403 }
 0x3f3   :  { %6692 = vrcp.f32 %v404_v38 }
 0x3f4   :  { %6694 = vrcp.f32 %v401_v30  ;;  %v6338_v30 = vld [vmem:[%s8578_s13 + $0xbc] sm:$0xf0] }
 0x3f5   :  { %6696 = vrcp.f32 %v333_v31  ;;  %v6336_v31 = vld [vmem:[%s8578_s13 + $0x84] sm:$0xf]  ;;  %v4686_v38 = vor.u32 %v6338_v30, %v4685_v28  ;;  %v6373_v30 = vld [vmem:[%s8578_s13 + $0x1c] sm:$0xf] }
 0x3f9   :  { %v6693_v41 = vpop.eup %6692 }
 0x3fa   :  { %v336_v40 = vpop.xlane.xlu2 %335  ;;  %v6695_v42 = vpop.eup %6694  ;;  %v408_v45 = vmul.f32 %v6693_v41, %v6689_v23  ;;  %v4693_v41 = vld [vmem:[%s8578_s13 + $0x88] sm:$0xf] }
 0x3fb   :  { %6698 = vrcp.f32 %v336_v40  ;;  %v6697_v43 = vpop.eup %6696  ;;  %v407_v47 = vmul.f32 %v6695_v42, %v6685_v13  ;;  %v4687_v40 = vld [vmem:[%s8578_s13 + $0xc0] sm:$0xf0]  ;;  %v6339_v42 = vld [vmem:[%s8578_s13 + $0xc4] sm:$0xf0] }
 0x3fc   :  { %v339_v48 = vmul.f32 %v6697_v43, %v6687_v19  ;;  %6700 = vrcp.f32 %v6779_v10  ;;  %v4690_v43 = vor.u32 %v6336_v31, %v4687_v40  ;;  %v6377_v10 = vld [vmem:[%s8578_s13 + $0x9c] sm:$0xf] }
 0x3fd   :  { %v409_v39 = vpack.c.bf16 %v408_v45, %v407_v47  ;;  %v4694_v45 = vor.u32 %v6339_v42, %v4693_v41  ;;  %v4695_v47 = vld [vmem:[%s8578_s13 + $0xc8] sm:$0xf0]  ;;  %v4715_v31 = vld [vmem:[%s8578_s13 + $0x58] sm:$0xf0] }
 0x3fe   :  { %616 = vmatpush.bf16.msra.mxu1 %v4690_v43  ;;  %v4718_v40 = vor.u32 %v6373_v30, %v4715_v31  ;;  %v6397_v30 = vld [vmem:[%s8580_s15 + $0x188] sm:$0xff] }
 0x3ff   :  { %v6405_v31 = vld [vmem:[%s8580_s15 + $0x1c8] sm:$0xff] }
 0x401   :  { %v6699_v46 = vpop.eup %6698 }
 0x402   :  { %v340_v49 = vmul.f32 %v6699_v46, %v6691_v25  ;;  %v344_v50 = vpop.permute.xlu2 %343  ;;  %v6701_v11 = vpop.eup %6700  ;;  %v6337_v46 = vld [vmem:[%s8578_s13 + $0x8c] sm:$0xf] }
 0x403   :  { %356 = vmatpush.bf16.msrb.mxu0 %v344_v50  ;;  %420 = vmatpush.bf16.msrb.mxu2 %v344_v50  ;;  %v480_v12 = vmul.f32 32.0, %v6701_v11  ;;  %vm484_vm2 = vweird.f32 %v6701_v11 }
 0x404   :  { %v341_v32 = vpack.c.bf16 %v340_v49, %v339_v48  ;;  %v4698_v49 = vor.u32 %v6337_v46, %v4695_v47 }
 0x405   :  { %v481_v13 = vsub.f32 1.0, %v480_v12  ;;  %v4705_v12 = vld [vmem:[%s8578_s13 + $0x10] sm:$0xf] }
 0x406   :  { %4655 = vmatmul.msk.bf16.vlgmr.msrb.gmra.mxu0 %vm318_vm14, %v341_v32  ;;  %4657 = vmatmul.msk.bf16.vlgmr.msrb.gmra.mxu2 %vm318_vm14, %v409_v39  ;;  %v4669_v32 = vld [vmem:[%s8578_s13] sm:$0xf] }
 0x407   :  { %v482_v14 = vmul.f32 %v6701_v11, %v481_v13  ;;  %602 = vmatpush.bf16.msra.mxu0 %v4686_v38  ;;  %630 = vmatpush.bf16.msra.mxu2 %v4694_v45  ;;  %v6334_v39 = vld [vmem:[%s8578_s13 + $0x3c] sm:$0xf0] }
 0x408   :  { %644 = vmatpush.bf16.msra.mxu3 %v4698_v49  ;;  %v4670_v51 = vor.u32 %v6334_v39, %v4669_v32  ;;  %v6670_v32 = vld [vmem:[%s8576_s11] ss:$0 sm:$0xff] }
 0x409   :  { %v483_v16 = vadd.f32 %v6701_v11, %v482_v14 }
 0x40b   :  { %v7034_v17 = vsel %vm484_vm2, %v6701_v11, %v483_v16  ;;  %603 = vmatpush.bf16.msra.mxu0 %v4670_v51  ;;  %v4731_v11 = vld [vmem:[%s8578_s13 + $0xd8] sm:$0xf0] }
 0x40c   :  { %v4734_v16 = vor.u32 %v6377_v10, %v4731_v11  ;;  %v6391_v10 = vld [vmem:[%s8580_s15 + $0x158] sm:$0xff]  ;;  %v6400_v11 = vld [vmem:[%s8580_s15 + $0x1a0] sm:$0xff] }
 0x483   :  { %v358_v52 = vpop.f32.mrf.mxu0 }
 0x484   :  { %v363_v58 = vmul.f32 %v6966_v35, %v358_v52  ;;  %v4671_v52 = vld [vmem:[%s8578_s13 + $0x40] sm:$0xf0] }
 0x489   :  { %v422_v53 = vpop.f32.mrf.mxu2 }
 0x48a   :  { %v427_v55 = vmul.f32 %v6961_v34, %v422_v53  ;;  %v4677_v53 = vld [vmem:[%s8578_s13 + $0x8] sm:$0xf] }
 0x48b   :  { %v360_v54 = vpop.f32.mrf.mxu0 }
 0x48c   :  { %v364_v59 = vmul.f32 %v6966_v35, %v360_v54  ;;  %v429_v62 = vadd.f32 %v427_v55, %v363_v58  ;;  %v6335_v54 = vld [vmem:[%s8578_s13 + $0x44] sm:$0xf0] }
 0x48d   :  { %v4678_v58 = vor.u32 %v6335_v54, %v4677_v53 }
 0x48f   :  { %631 = vmatpush.bf16.msra.mxu2 %v4678_v58 }
 0x491   :  { %v424_v57 = vpop.f32.mrf.mxu2 }
 0x492   :  { %v428_v60 = vmul.f32 %v6961_v34, %v424_v57  ;;  %v4674_v57 = vor.u32 %v6332_v44, %v4671_v52  ;;  %v6671_v52 = vld [vmem:[%s8577_s12] ss:$0 sm:$0xff] }
 0x494   :  { %v430_v63 = vadd.f32 %v428_v60, %v364_v59  ;;  %v6333_v59 = vld [vmem:[%s8578_s13 + $0xc] sm:$0xf]  ;;  %617 = vmatpush.bf16.msra.mxu1 %v4674_v57 }
 0x495   :  { %v4679_v60 = vld [vmem:[%s8578_s13 + $0x48] sm:$0xf0] }
 0x496   :  { %v431_v0 = vpack.c.bf16 %v430_v63, %v429_v62  ;;  %v4682_v62 = vor.u32 %v6333_v59, %v4679_v60  ;;  %v6395_v60 = vld [vmem:[%s8580_s15 + $0x178] sm:$0xff] }
 0x498   :  { %4666 = vmatmul.msk.bf16.vlgmr.msrb.gmra.mxu3 %vm237_vm8, %v431_v0  ;;  %v4721_v0 = vld [vmem:[%s8578_s13 + $0x90] sm:$0xf] }
 0x499   :  { %645 = vmatpush.bf16.msra.mxu3 %v4682_v62  ;;  %v6411_v62 = vld [vmem:[%s8580_s15 + $0x1f8] sm:$0xff] }
 0x49d   :  { %834 = vmatpush.bf16.msrb.mxu3 %v4734_v16  ;;  %v6399_v16 = vld [vmem:[%s8580_s15 + $0x198] sm:$0xff] }
 0x4a1   :  { %835 = vmatpush.bf16.msrb.mxu3 %v4718_v40  ;;  %v6354_v40 = vld [vmem:[%s8580_s15 + $0x70] sm:$0xff] }
 0x51b   :  { %v464_v2 = vpop.f32.mrf.mxu3 }
 0x51c   :  { %v465_v3 = vadd.f32 %v6669_v1, %v464_v2  ;;  %v6376_v2 = vld [vmem:[%s8578_s13 + $0x94] sm:$0xf] }
 0x51e   :  { %v469_v4 = vadd.f32 %v465_v3, %v6943_v26 }
 0x520   :  { %v473_v5 = vsel %vm237_vm8, %v469_v4, 0.0 }
 0x521   :  { %474 = vadd.xlane.f32.xlu0 %v473_v5  ;;  %v4723_v5 = vld [vmem:[%s8578_s13 + $0xd0] sm:$0xf0] }
 0x523   :  { %v466_v6 = vpop.f32.mrf.mxu3 }
 0x524   :  { %v467_v7 = vadd.f32 %v6669_v1, %v466_v6  ;;  %v6378_v1 = vld [vmem:[%s8578_s13 + $0xcc] sm:$0xf0]  ;;  %v4729_v6 = vld [vmem:[%s8578_s13 + $0x98] sm:$0xf] }
 0x526   :  { %v470_v8 = vadd.f32 %v467_v7, %v6945_v27  ;;  %v6379_v7 = vld [vmem:[%s8578_s13 + $0xd4] sm:$0xf0] }
 0x528   :  { %v476_v9 = vsel %vm237_vm8, %v470_v8, 0.0 }
 0x529   :  { %477 = vadd.xlane.f32.xlu0 %v476_v9  ;;  %v4730_v9 = vor.u32 %v6379_v7, %v4729_v6  ;;  %v6392_v6 = vld [vmem:[%s8580_s15 + $0x160] sm:$0xff]  ;;  %v6401_v7 = vld [vmem:[%s8580_s15 + $0x1a8] sm:$0xff] }
 0x52b   :  { %820 = vmatpush.bf16.msrb.mxu2 %v4730_v9  ;;  %v6383_v9 = vld [vmem:[%s8580_s15 + $0x118] sm:$0xff] }
 0x594   :  { %v475_v26 = vpop.xlane.xlu0 %474 }
 0x595   :  { %v486_v18 = vmul.f32 %v7034_v17, %v475_v26  ;;  %v6374_v26 = vld [vmem:[%s8578_s13 + $0x4c] sm:$0xf0] }
 0x597   :  { %v7037_v19 = vsub.f32 %v469_v4, %v486_v18  ;;  %v4722_v4 = vor.u32 %v6378_v1, %v4721_v0  ;;  %v6372_v18 = vld [vmem:[%s8578_s13 + $0x14] sm:$0xf] }
 0x598   :  { %v6394_v0 = vld [vmem:[%s8580_s15 + $0x170] sm:$0xff] }
 0x599   :  { %v490_v27 = vmul.f32 %v7037_v19, %v7037_v19  ;;  %792 = vmatpush.bf16.msrb.mxu0 %v4722_v4  ;;  %v6402_v1 = vld [vmem:[%s8580_s15 + $0x1b0] sm:$0xff]  ;;  %v6393_v4 = vld [vmem:[%s8580_s15 + $0x168] sm:$0xff] }
 0x59b   :  { %v492_v20 = vsel %vm237_vm8, %v490_v27, 0.0 }
 0x59c   :  { %493 = vadd.xlane.f32.xlu2 %v492_v20  ;;  %v478_v21 = vpop.xlane.xlu0 %477  ;;  %v4706_v20 = vor.u32 %v6374_v26, %v4705_v12  ;;  %v6408_v12 = vld [vmem:[%s8580_s15 + $0x1e0] sm:$0xff]  ;;  %v6407_v26 = vld [vmem:[%s8580_s15 + $0x1d8] sm:$0xff] }
 0x59d   :  { %v487_v22 = vmul.f32 %v7034_v17, %v478_v21  ;;  %v4707_v21 = vld [vmem:[%s8578_s13 + $0x50] sm:$0xf0] }
 0x59e   :  { %793 = vmatpush.bf16.msrb.mxu0 %v4706_v20  ;;  %v6398_v20 = vld [vmem:[%s8580_s15 + $0x190] sm:$0xff] }
 0x59f   :  { %v7043_v23 = vsub.f32 %v470_v8, %v487_v22  ;;  %v4726_v8 = vor.u32 %v6376_v2, %v4723_v5  ;;  %v4713_v22 = vld [vmem:[%s8578_s13 + $0x18] sm:$0xf]  ;;  %v6410_v2 = vld [vmem:[%s8580_s15 + $0x1f0] sm:$0xff]  ;;  %v6384_v5 = vld [vmem:[%s8580_s15 + $0x120] sm:$0xff] }
 0x5a1   :  { %v491_v24 = vmul.f32 %v7043_v23, %v7043_v23  ;;  %806 = vmatpush.bf16.msrb.mxu1 %v4726_v8  ;;  %v6409_v8 = vld [vmem:[%s8580_s15 + $0x1e8] sm:$0xff] }
 0x5a3   :  { %v495_v25 = vsel %vm237_vm8, %v491_v24, 0.0  ;;  %v6375_v24 = vld [vmem:[%s8578_s13 + $0x54] sm:$0xf0] }
 0x5a4   :  { %496 = vadd.xlane.f32.xlu0 %v495_v25  ;;  %v4710_v25 = vor.u32 %v6372_v18, %v4707_v21  ;;  %v4714_v28 = vor.u32 %v6375_v24, %v4713_v22  ;;  %v6381_v18 = vld [vmem:[%s8580_s15 + $0x108] sm:$0xff]  ;;  %v6406_v21 = vld [vmem:[%s8580_s15 + $0x1d0] sm:$0xff]  ;;  %v6380_v22 = vld [vmem:[%s8580_s15 + $0x100] sm:$0xff] }
 0x5a5   :  { %v6388_v24 = vld [vmem:[%s8580_s15 + $0x140] sm:$0xff] }
 0x5a6   :  { %807 = vmatpush.bf16.msrb.mxu1 %v4710_v25  ;;  %821 = vmatpush.bf16.msrb.mxu2 %v4714_v28  ;;  %v6347_v25 = vld [vmem:[%s8580_s15 + $0x38] sm:$0xff] }
 0x5a7   :  { %v6355_v28 = vld [vmem:[%s8580_s15 + $0x78] sm:$0xff] }
 0x60f   :  { %v494_v48 = vpop.xlane.xlu2 %493 }
 0x610   :  { %v498_v50 = vmul.f32 %v494_v48, %v7034_v17 }
 0x612   :  { %v500_v55 = vadd.f32 1e-05, %v498_v50 }
 0x614   :  { %6702 = vrsqrt.f32 %v500_v55  ;;  %vm508_vm4 = vweird.f32 %v500_v55 }
 0x617   :  { %v497_v63 = vpop.xlane.xlu0 %496 }
 0x618   :  { %v499_v3 = vmul.f32 %v497_v63, %v7034_v17  ;;  %v6386_v63 = vld [vmem:[%s8580_s15 + $0x130] sm:$0xff] }
 0x61a   :  { %v6703_v13 = vpop.eup %6702  ;;  %v501_v14 = vadd.f32 1e-05, %v499_v3  ;;  %v6385_v3 = vld [vmem:[%s8580_s15 + $0x128] sm:$0xff] }
 0x61b   :  { %v503_v27 = vmul.f32 %v6703_v13, %v500_v55  ;;  %vm509_vm3 = vweird.f32 %v6703_v13 }
 0x61c   :  { %6704 = vrsqrt.f32 %v501_v14  ;;  %vm510_vm5 = vmor %vm508_vm4, %vm509_vm3  ;;  %vm518_vm7 = vweird.f32 %v501_v14 }
 0x61d   :  { %v504_v38 = vmul.f32 %v6703_v13, %v503_v27  ;;  %v6389_v27 = vld [vmem:[%s8580_s15 + $0x148] sm:$0xff] }
 0x61f   :  { %v505_v41 = vmul.f32 0.5, %v504_v38  ;;  %v6346_v38 = vld [vmem:[%s8580_s15 + $0x30] sm:$0xff] }
 0x621   :  { %v506_v42 = vsub.f32 1.5, %v505_v41  ;;  %v6396_v41 = vld [vmem:[%s8580_s15 + $0x180] sm:$0xff] }
 0x622   :  { %v6705_v43 = vpop.eup %6704 }
 0x623   :  { %v507_v45 = vmul.f32 %v6703_v13, %v506_v42  ;;  %v513_v46 = vmul.f32 %v6705_v43, %v501_v14  ;;  %vm519_vm6 = vweird.f32 %v6705_v43  ;;  %v6390_v14 = vld [vmem:[%s8580_s15 + $0x150] sm:$0xff]  ;;  %v6404_v42 = vld [vmem:[%s8580_s15 + $0x1c0] sm:$0xff] }
 0x624   :  { %vm520_vm9 = vmor %vm518_vm7, %vm519_vm6  ;;  %vm4532_vm7 = vcmask 1041408  }
 0x625   :  { %v514_v47 = vmul.f32 %v6705_v43, %v513_v46  ;;  %v511_v48 = vsel %vm510_vm5, %v6703_v13, %v507_v45  ;;  %v6382_v13 = vld [vmem:[%s8580_s15 + $0x110] sm:$0xff]  ;;  %v6371_v45 = vld [vmem:[%s8580_s15 + $0xf8] sm:$0xff]  ;;  %v6345_v46 = vld [vmem:[%s8580_s15 + $0x28] sm:$0xff] }
 0x626   :  { %v522_v39 = vmul.f32 %v511_v48, %v7037_v19  ;;  %v6387_v19 = vld [vmem:[%s8580_s15 + $0x138] sm:$0xff]  ;;  %v6362_v48 = vld [vmem:[%s8580_s15 + $0xb0] sm:$0xff] }
 0x627   :  { %v515_v49 = vmul.f32 0.5, %v514_v47  ;;  %v6353_v47 = vld [vmem:[%s8580_s15 + $0x68] sm:$0xff] }
 0x628   :  { %v527_v53 = vmul.f32 %v6670_v32, %v522_v39  ;;  %v6361_v39 = vld [vmem:[%s8580_s15 + $0xa8] sm:$0xff] }
 0x629   :  { %v516_v50 = vsub.f32 1.5, %v515_v49  ;;  %v6370_v49 = vld [vmem:[%s8580_s15 + $0xf0] sm:$0xff] }
 0x62a   :  { %v7154_v57 = vadd.f32 %v6671_v52, %v527_v53 }
 0x62b   :  { %v517_v44 = vmul.f32 %v6705_v43, %v516_v50  ;;  %v6344_v50 = vld [vmem:[%s8580_s15 + $0x20] sm:$0xff] }
 0x62d   :  { %v521_v51 = vsel %vm520_vm9, %v6705_v43, %v517_v44  ;;  %v6363_v43 = vld [vmem:[%s8580_s15 + $0xb8] sm:$0xff]  ;;  %v6369_v44 = vld [vmem:[%s8580_s15 + $0xe8] sm:$0xff]  ;;  %vm4528_vm9 = vcmask 31744  }
 0x62e   :  { %v523_v54 = vmul.f32 %v521_v51, %v7043_v23  ;;  %v6403_v23 = vld [vmem:[%s8580_s15 + $0x1b8] sm:$0xff] }
 0x62f   :  { %v6343_v51 = vld [vmem:[%s8580_s15 + $0x18] sm:$0xff] }
 0x630   :  { %v528_v55 = vmul.f32 %v6670_v32, %v523_v54  ;;  %v6352_v32 = vld [vmem:[%s8580_s15 + $0x60] sm:$0xff] }
 0x632   :  { %v7156_v58 = vadd.f32 %v6671_v52, %v528_v55  ;;  %v6351_v52 = vld [vmem:[%s8580_s15 + $0x58] sm:$0xff]  ;;  %v6360_v55 = vld [vmem:[%s8580_s15 + $0xa0] sm:$0xff] }
 0x634   :  { %v7160_v59 = vpack.c.bf16 %v7156_v58, %v7154_v57 }
 0x636   :  { %4699 = vmatmul.msk.bf16.vlgmr.msra.gmra.mxu0 %vm237_vm8, %v7160_v59  ;;  %4700 = vmatmul.msk.bf16.vlgmr.msra.gmra.mxu1 %vm237_vm8, %v7160_v59 }
 0x637   :  { %4701 = vmatmul.msk.bf16.vlgmr.msra.gmra.mxu2 %vm237_vm8, %v7160_v59  ;;  %4702 = vmatmul.msk.bf16.vlgmr.msra.gmra.mxu3 %vm237_vm8, %v7160_v59 }
 0x638   :  { %1110 = vmatpush.bf16.msra.mxu0 %v6387_v19  ;;  %1124 = vmatpush.bf16.msra.mxu1 %v6395_v60  ;;  %v6368_v19 = vld [vmem:[%s8580_s15 + $0xe0] sm:$0xff]  ;;  %v6342_v60 = vld [vmem:[%s8580_s15 + $0x10] sm:$0xff] }
 0x639   :  { %1138 = vmatpush.bf16.msra.mxu2 %v6403_v23  ;;  %1152 = vmatpush.bf16.msra.mxu3 %v6411_v62  ;;  %v6350_v23 = vld [vmem:[%s8580_s15 + $0x50] sm:$0xff]  ;;  %v6359_v62 = vld [vmem:[%s8580_s15 + $0x98] sm:$0xff] }
 0x63c   :  { %1111 = vmatpush.bf16.msra.mxu0 %v6386_v63  ;;  %1125 = vmatpush.bf16.msra.mxu1 %v6394_v0  ;;  %v6367_v63 = vld [vmem:[%s8580_s15 + $0xd8] sm:$0xff]  ;;  %v6341_v0 = vld [vmem:[%s8580_s15 + $0x8] sm:$0xff] }
 0x63d   :  { %1139 = vmatpush.bf16.msra.mxu2 %v6402_v1  ;;  %1153 = vmatpush.bf16.msra.mxu3 %v6410_v2  ;;  %v6349_v1 = vld [vmem:[%s8580_s15 + $0x48] sm:$0xff] }
 0x640   :  { %1112 = vmatpush.bf16.msra.mxu0 %v6385_v3  ;;  %1126 = vmatpush.bf16.msra.mxu1 %v6393_v4  ;;  %v6358_v4 = vld [vmem:[%s8580_s15 + $0x90] sm:$0xff] }
 0x641   :  { %1140 = vmatpush.bf16.msra.mxu2 %v6401_v7  ;;  %1154 = vmatpush.bf16.msra.mxu3 %v6409_v8  ;;  %v6340_v8 = vld [vmem:[%s8580_s15] sm:$0xff] }
 0x644   :  { %1113 = vmatpush.bf16.msra.mxu0 %v6384_v5  ;;  %1127 = vmatpush.bf16.msra.mxu1 %v6392_v6  ;;  %v6366_v5 = vld [vmem:[%s8580_s15 + $0xd0] sm:$0xff] }
 0x645   :  { %1141 = vmatpush.bf16.msra.mxu2 %v6400_v11  ;;  %1155 = vmatpush.bf16.msra.mxu3 %v6408_v12  ;;  %v6365_v11 = vld [vmem:[%s8580_s15 + $0xc8] sm:$0xff] }
 0x646   :  { %4735 = vmatmul.msk.bf16.vlgmr.msrb.gmra.mxu0 %vm237_vm8, %v7160_v59  ;;  %4736 = vmatmul.msk.bf16.vlgmr.msrb.gmra.mxu1 %vm237_vm8, %v7160_v59 }
 0x647   :  { %4737 = vmatmul.msk.bf16.vlgmr.msrb.gmra.mxu2 %vm237_vm8, %v7160_v59  ;;  %4738 = vmatmul.msk.bf16.vlgmr.msrb.gmra.mxu3 %vm237_vm8, %v7160_v59 }
 0x648   :  { %1114 = vmatpush.bf16.msra.mxu0 %v6383_v9  ;;  %1128 = vmatpush.bf16.msra.mxu1 %v6391_v10  ;;  %v6348_v9 = vld [vmem:[%s8580_s15 + $0x40] sm:$0xff]  ;;  %v6357_v10 = vld [vmem:[%s8580_s15 + $0x88] sm:$0xff] }
 0x649   :  { %1142 = vmatpush.bf16.msra.mxu2 %v6399_v16  ;;  %1156 = vmatpush.bf16.msra.mxu3 %v6407_v26  ;;  %v6364_v16 = vld [vmem:[%s8580_s15 + $0xc0] sm:$0xff] }
 0x64a   :  { %v736_v26 = vld [vmem:[%s8579_s14 + $0x4] sm:$0xf] }
 0x64c   :  { %1115 = vmatpush.bf16.msra.mxu0 %v6382_v13  ;;  %1129 = vmatpush.bf16.msra.mxu1 %v6390_v14  ;;  %v6356_v14 = vld [vmem:[%s8580_s15 + $0x80] sm:$0xff] }
 0x64d   :  { %1143 = vmatpush.bf16.msra.mxu2 %v6398_v20  ;;  %1157 = vmatpush.bf16.msra.mxu3 %v6406_v21  ;;  %v738_v20 = vperm.slane %v736_v26, 0  ;;  %v739_v21 = vperm.slane %v736_v26, 1 }
 0x650   :  { %1116 = vmatpush.bf16.msra.mxu0 %v6381_v18  ;;  %1130 = vmatpush.bf16.msra.mxu1 %v6389_v27 }
 0x651   :  { %1144 = vmatpush.bf16.msra.mxu2 %v6397_v30  ;;  %1158 = vmatpush.bf16.msra.mxu3 %v6405_v31 }
 0x654   :  { %1117 = vmatpush.bf16.msra.mxu0 %v6380_v22  ;;  %1131 = vmatpush.bf16.msra.mxu1 %v6388_v24 }
 0x655   :  { %1145 = vmatpush.bf16.msra.mxu2 %v6396_v41  ;;  %1159 = vmatpush.bf16.msra.mxu3 %v6404_v42  ;;  %v6418_v42 = vld [vmem:[%s8578_s13 + $0xdc] sm:$0xf0] }
 0x658   :  { %1358 = vmatpush.bf16.msrb.mxu0 %v6347_v25  ;;  %1372 = vmatpush.bf16.msrb.mxu1 %v6355_v28 }
 0x659   :  { %1386 = vmatpush.bf16.msrb.mxu2 %v6363_v43  ;;  %1400 = vmatpush.bf16.msrb.mxu3 %v6371_v45  ;;  %v6416_v43 = vld [vmem:[%s8578_s13 + $0xa4] sm:$0xf] }
 0x65a   :  { %v5015_v45 = vld [vmem:[%s8578_s13 + $0xe0] sm:$0xf0] }
 0x65c   :  { %1359 = vmatpush.bf16.msrb.mxu0 %v6346_v38  ;;  %1373 = vmatpush.bf16.msrb.mxu1 %v6354_v40  ;;  %v5013_v38 = vld [vmem:[%s8578_s13 + $0xa0] sm:$0xf] }
 0x65d   :  { %1387 = vmatpush.bf16.msrb.mxu2 %v6362_v48  ;;  %1401 = vmatpush.bf16.msrb.mxu3 %v6370_v49 }
 0x660   :  { %1360 = vmatpush.bf16.msrb.mxu0 %v6345_v46  ;;  %1374 = vmatpush.bf16.msrb.mxu1 %v6353_v47  ;;  %v740_v46 = vperm.slane %v736_v26, 2  ;;  %v741_v47 = vperm.slane %v736_v26, 3  ;;  %v5023_v26 = vld [vmem:[%s8578_s13 + $0xe8] sm:$0xf0] }
 0x661   :  { %1388 = vmatpush.bf16.msrb.mxu2 %v6361_v39  ;;  %1402 = vmatpush.bf16.msrb.mxu3 %v6369_v44  ;;  %v5014_v39 = vor.u32 %v6418_v42, %v5013_v38  ;;  %v5018_v44 = vor.u32 %v6416_v43, %v5015_v45  ;;  %v5007_v42 = vld [vmem:[%s8578_s13 + $0x68] sm:$0xf0] }
 0x664   :  { %1361 = vmatpush.bf16.msrb.mxu0 %v6344_v50  ;;  %1375 = vmatpush.bf16.msrb.mxu1 %v6352_v32 }
 0x665   :  { %1389 = vmatpush.bf16.msrb.mxu2 %v6360_v55  ;;  %1403 = vmatpush.bf16.msrb.mxu3 %v6368_v19 }
 0x668   :  { %1362 = vmatpush.bf16.msrb.mxu0 %v6343_v51  ;;  %1376 = vmatpush.bf16.msrb.mxu1 %v6351_v52  ;;  %v4997_v51 = vld [vmem:[%s8578_s13 + $0x20] sm:$0xf] }
 0x669   :  { %1390 = vmatpush.bf16.msrb.mxu2 %v6359_v62  ;;  %1404 = vmatpush.bf16.msrb.mxu3 %v6367_v63  ;;  %v6414_v52 = vld [vmem:[%s8578_s13 + $0x5c] sm:$0xf0] }
 0x66a   :  { %v543_v62 = vld [vmem:[%s8579_s14] sm:$0xf] }
 0x66c   :  { %1363 = vmatpush.bf16.msrb.mxu0 %v6342_v60  ;;  %1377 = vmatpush.bf16.msrb.mxu1 %v6350_v23  ;;  %v6412_v60 = vld [vmem:[%s8578_s13 + $0x24] sm:$0xf] }
 0x66d   :  { %1391 = vmatpush.bf16.msrb.mxu2 %v6358_v4  ;;  %1405 = vmatpush.bf16.msrb.mxu3 %v6366_v5  ;;  %v4999_v23 = vld [vmem:[%s8578_s13 + $0x60] sm:$0xf0]  ;;  %v4998_v5 = vor.u32 %v6414_v52, %v4997_v51 }
 0x670   :  { %1364 = vmatpush.bf16.msrb.mxu0 %v6341_v0  ;;  %1378 = vmatpush.bf16.msrb.mxu1 %v6349_v1 }
 0x671   :  { %1392 = vmatpush.bf16.msrb.mxu2 %v6357_v10  ;;  %1406 = vmatpush.bf16.msrb.mxu3 %v6365_v11  ;;  %v5002_v11 = vor.u32 %v6412_v60, %v4999_v23 }
 0x674   :  { %1365 = vmatpush.bf16.msrb.mxu0 %v6340_v8  ;;  %1379 = vmatpush.bf16.msrb.mxu1 %v6348_v9  ;;  %v5021_v8 = vld [vmem:[%s8578_s13 + $0xa8] sm:$0xf] }
 0x675   :  { %1393 = vmatpush.bf16.msrb.mxu2 %v6356_v14  ;;  %1407 = vmatpush.bf16.msrb.mxu3 %v6364_v16  ;;  %v6419_v14 = vld [vmem:[%s8578_s13 + $0xe4] sm:$0xf0]  ;;  %v6417_v16 = vld [vmem:[%s8578_s13 + $0xac] sm:$0xf] }
 0x6b3   :  { %v7322_v53 = vpop.f32.mrf.mxu0  ;;  %v7324_v54 = vpop.f32.mrf.mxu1 }
 0x6ba   :  { %v7350_v2 = vpop.f32.mrf.mxu2  ;;  %v7352_v3 = vpop.f32.mrf.mxu3 }
 0x6bb   :  { %v7360_v6 = vpop.f32.mrf.mxu0  ;;  %v7362_v7 = vpop.f32.mrf.mxu1 }
 0x6c2   :  { %v7376_v12 = vpop.f32.mrf.mxu2  ;;  %v7378_v13 = vpop.f32.mrf.mxu3 }
 0x6c3   :  { %v795_v18 = vpop.f32.mrf.mxu0  ;;  %v809_v27 = vpop.f32.mrf.mxu1 }
 0x6c4   :  { %v796_v22 = vadd.f32 %v795_v18, %v738_v20  ;;  %v810_v24 = vadd.f32 %v809_v27, %v739_v21  ;;  %v545_v18 = vperm.slane %v543_v62, 0 }
 0x6c6   :  { %v842_v48 = vmax.f32 %v796_v22, 0.0  ;;  %v843_v49 = vmax.f32 %v810_v24, 0.0  ;;  %v546_v24 = vperm.slane %v543_v62, 1  ;;  %v608_v43 = vadd.f32 %v7360_v6, %v545_v18 }
 0x6c8   :  { %v622_v45 = vadd.f32 %v7362_v7, %v546_v24 }
 0x6ca   :  { %v823_v25 = vpop.f32.mrf.mxu2  ;;  %v837_v28 = vpop.f32.mrf.mxu3 }
 0x6cb   :  { %v797_v30 = vpop.f32.mrf.mxu0  ;;  %v811_v31 = vpop.f32.mrf.mxu1  ;;  %v824_v63 = vadd.f32 %v823_v25, %v740_v46  ;;  %v838_v0 = vadd.f32 %v837_v28, %v741_v47  ;;  %v5022_v25 = vor.u32 %v6419_v14, %v5021_v8  ;;  %v5026_v28 = vor.u32 %v6417_v16, %v5023_v26  ;;  %v6424_v8 = vld [vmem:[%s8580_s15 + $0x220] sm:$0xff]  ;;  %v6423_v14 = vld [vmem:[%s8580_s15 + $0x218] sm:$0xff] }
 0x6cc   :  { %v798_v40 = vadd.f32 %v797_v30, %v738_v20  ;;  %v812_v41 = vadd.f32 %v811_v31, %v739_v21  ;;  %v5005_v30 = vld [vmem:[%s8578_s13 + $0x28] sm:$0xf]  ;;  %v6431_v16 = vld [vmem:[%s8580_s15 + $0x258] sm:$0xff] }
 0x6cd   :  { %v844_v27 = vmax.f32 %v824_v63, 0.0  ;;  %v845_v20 = vmax.f32 %v838_v0, 0.0 }
 0x6ce   :  { %v846_v50 = vmax.f32 %v798_v40, 0.0  ;;  %v847_v32 = vmax.f32 %v812_v41, 0.0  ;;  %v6415_v40 = vld [vmem:[%s8578_s13 + $0x64] sm:$0xf0]  ;;  %v6413_v41 = vld [vmem:[%s8578_s13 + $0x2c] sm:$0xf] }
 0x6d0   :  { %v850_v55 = vpack.c.bf16 %v846_v50, %v842_v48  ;;  %v851_v19 = vpack.c.bf16 %v847_v32, %v843_v49  ;;  %v5006_v48 = vor.u32 %v6415_v40, %v5005_v30  ;;  %v5010_v49 = vor.u32 %v6413_v41, %v5007_v42  ;;  %v6421_v30 = vld [vmem:[%s8580_s15 + $0x208] sm:$0xff]  ;;  %v6448_v42 = vld [vmem:[%s8580_s15 + $0x2e0] sm:$0xff] }
 0x6d1   :  { %v656_v50 = vmax.f32 %v608_v43, 0.0  ;;  %v657_v32 = vmax.f32 %v622_v45, 0.0  ;;  %v6420_v43 = vld [vmem:[%s8580_s15 + $0x200] sm:$0xff] }
 0x6d2   :  { %v825_v1 = vpop.f32.mrf.mxu2  ;;  %v839_v4 = vpop.f32.mrf.mxu3  ;;  %1118 = vmatmul.bf16.vlgmr.msra.gmra.mxu0 %v850_v55  ;;  %1132 = vmatmul.bf16.vlgmr.msra.gmra.mxu1 %v851_v19  ;;  %v6428_v45 = vld [vmem:[%s8580_s15 + $0x240] sm:$0xff] }
 0x6d3   :  { %v826_v9 = vadd.f32 %v825_v1, %v740_v46  ;;  %v840_v10 = vadd.f32 %v839_v4, %v741_v47  ;;  %1478 = vmatpush.bf16.msra.mxu0 %v5014_v39  ;;  %1492 = vmatpush.bf16.msra.mxu1 %v5018_v44  ;;  %v606_v46 = vadd.f32 %v7322_v53, %v545_v18  ;;  %v547_v39 = vperm.slane %v543_v62, 2  ;;  %v6425_v4 = vld [vmem:[%s8580_s15 + $0x228] sm:$0xff] }
 0x6d4   :  { %v620_v47 = vadd.f32 %v7324_v54, %v546_v24  ;;  %v548_v44 = vperm.slane %v543_v62, 3  ;;  %v6430_v24 = vld [vmem:[%s8580_s15 + $0x250] sm:$0xff] }
 0x6d5   :  { %v848_v21 = vmax.f32 %v826_v9, 0.0  ;;  %v849_v22 = vmax.f32 %v840_v10, 0.0  ;;  %v652_v51 = vmax.f32 %v606_v46, 0.0  ;;  %v636_v6 = vadd.f32 %v7376_v12, %v547_v39  ;;  %v6426_v12 = vld [vmem:[%s8580_s15 + $0x230] sm:$0xff]  ;;  %v6432_v9 = vld [vmem:[%s8580_s15 + $0x260] sm:$0xff]  ;;  %v6443_v10 = vld [vmem:[%s8580_s15 + $0x2b8] sm:$0xff] }
 0x6d6   :  { %v653_v52 = vmax.f32 %v620_v47, 0.0  ;;  %v650_v53 = vadd.f32 %v7378_v13, %v548_v44  ;;  %v634_v54 = vadd.f32 %v7350_v2, %v547_v39  ;;  %v648_v19 = vadd.f32 %v7352_v3, %v548_v44  ;;  %v6427_v2 = vld [vmem:[%s8580_s15 + $0x238] sm:$0xff]  ;;  %v6434_v13 = vld [vmem:[%s8580_s15 + $0x270] sm:$0xff] }
 0x6d7   :  { %v852_v31 = vpack.c.bf16 %v848_v21, %v844_v27  ;;  %v853_v38 = vpack.c.bf16 %v849_v22, %v845_v20  ;;  %1479 = vmatpush.bf16.msra.mxu0 %v4998_v5  ;;  %1493 = vmatpush.bf16.msra.mxu1 %v5002_v11  ;;  %v660_v7 = vpack.c.bf16 %v656_v50, %v652_v51  ;;  %v658_v60 = vmax.f32 %v636_v6, 0.0  ;;  %v6435_v3 = vld [vmem:[%s8580_s15 + $0x278] sm:$0xff]  ;;  %v6433_v5 = vld [vmem:[%s8580_s15 + $0x268] sm:$0xff]  ;;  %v6442_v27 = vld [vmem:[%s8580_s15 + $0x2b0] sm:$0xff] }
 0x6d8   :  { %v661_v55 = vpack.c.bf16 %v657_v32, %v653_v52  ;;  %v659_v23 = vmax.f32 %v650_v53, 0.0  ;;  %v654_v63 = vmax.f32 %v634_v54, 0.0  ;;  %v655_v62 = vmax.f32 %v648_v19, 0.0  ;;  %v6451_v11 = vld [vmem:[%s8580_s15 + $0x2f8] sm:$0xff]  ;;  %v6450_v20 = vld [vmem:[%s8580_s15 + $0x2f0] sm:$0xff]  ;;  %v6437_v53 = vld [vmem:[%s8580_s15 + $0x288] sm:$0xff] }
 0x6d9   :  { %1146 = vmatmul.bf16.vlgmr.msra.gmra.mxu2 %v852_v31  ;;  %1160 = vmatmul.bf16.vlgmr.msra.gmra.mxu3 %v853_v38  ;;  %v6422_v22 = vld [vmem:[%s8580_s15 + $0x210] sm:$0xff]  ;;  %v6429_v31 = vld [vmem:[%s8580_s15 + $0x248] sm:$0xff]  ;;  %v6440_v38 = vld [vmem:[%s8580_s15 + $0x2a0] sm:$0xff] }
 0x6da   :  { %1506 = vmatpush.bf16.msra.mxu2 %v5022_v25  ;;  %1520 = vmatpush.bf16.msra.mxu3 %v5026_v28  ;;  %v662_v0 = vpack.c.bf16 %v658_v60, %v654_v63  ;;  %v663_v1 = vpack.c.bf16 %v659_v23, %v655_v62  ;;  %v6441_v25 = vld [vmem:[%s8580_s15 + $0x2a8] sm:$0xff]  ;;  %v6439_v46 = vld [vmem:[%s8580_s15 + $0x298] sm:$0xff]  ;;  %v6438_v32 = vld [vmem:[%s8580_s15 + $0x290] sm:$0xff] }
 0x6db   :  { %v6449_v28 = vld [vmem:[%s8580_s15 + $0x2e8] sm:$0xff]  ;;  %v6447_v47 = vld [vmem:[%s8580_s15 + $0x2d8] sm:$0xff]  ;;  %v6446_v39 = vld [vmem:[%s8580_s15 + $0x2d0] sm:$0xff] }
 0x6dc   :  { %v5177_v60 = vld [vmem:[%s8578_s13 + $0xb0] sm:$0xf]  ;;  %v6456_v63 = vld [vmem:[%s8578_s13 + $0xb4] sm:$0xf]  ;;  %v6436_v62 = vld [vmem:[%s8580_s15 + $0x280] sm:$0xff] }
 0x6dd   :  { %v6458_v23 = vld [vmem:[%s8578_s13 + $0xec] sm:$0xf0] }
 0x6de   :  { %1507 = vmatpush.bf16.msra.mxu2 %v5006_v48  ;;  %1521 = vmatpush.bf16.msra.mxu3 %v5010_v49 }
 0x6e2   :  { %1366 = vmatmul.bf16.vlgmr.msrb.gmra.mxu0 %v660_v7  ;;  %1380 = vmatmul.bf16.vlgmr.msrb.gmra.mxu1 %v661_v55  ;;  %v6445_v7 = vld [vmem:[%s8580_s15 + $0x2c8] sm:$0xff] }
 0x6e3   :  { %1796 = vmatpush.bf16.msrb.mxu0 %v6427_v2  ;;  %1810 = vmatpush.bf16.msrb.mxu1 %v6435_v3  ;;  %v5179_v2 = vld [vmem:[%s8578_s13 + $0xf0] sm:$0xf0] }
 0x6e7   :  { %1797 = vmatpush.bf16.msrb.mxu0 %v6426_v12  ;;  %1811 = vmatpush.bf16.msrb.mxu1 %v6434_v13  ;;  %v5182_v13 = vor.u32 %v6456_v63, %v5179_v2 }
 0x6e9   :  { %1394 = vmatmul.bf16.vlgmr.msrb.gmra.mxu2 %v662_v0  ;;  %1408 = vmatmul.bf16.vlgmr.msrb.gmra.mxu3 %v663_v1  ;;  %v6444_v0 = vld [vmem:[%s8580_s15 + $0x2c0] sm:$0xff]  ;;  %v5178_v1 = vor.u32 %v6458_v23, %v5177_v60 }
 0x6ea   :  { %1824 = vmatpush.bf16.msrb.mxu2 %v6443_v10  ;;  %1838 = vmatpush.bf16.msrb.mxu3 %v6451_v11  ;;  %v5163_v10 = vld [vmem:[%s8578_s13 + $0x70] sm:$0xf0] }
 0x6eb   :  { %1798 = vmatpush.bf16.msrb.mxu0 %v6425_v4  ;;  %1812 = vmatpush.bf16.msrb.mxu1 %v6433_v5  ;;  %v5161_v4 = vld [vmem:[%s8578_s13 + $0x30] sm:$0xf] }
 0x6ec   :  { %v6454_v5 = vld [vmem:[%s8578_s13 + $0x6c] sm:$0xf0] }
 0x6ee   :  { %1825 = vmatpush.bf16.msrb.mxu2 %v6442_v27  ;;  %1839 = vmatpush.bf16.msrb.mxu3 %v6450_v20  ;;  %v5185_v27 = vld [vmem:[%s8578_s13 + $0xb8] sm:$0xf] }
 0x6ef   :  { %1799 = vmatpush.bf16.msrb.mxu0 %v6424_v8  ;;  %1813 = vmatpush.bf16.msrb.mxu1 %v6432_v9  ;;  %v6452_v8 = vld [vmem:[%s8578_s13 + $0x34] sm:$0xf]  ;;  %v5162_v9 = vor.u32 %v6454_v5, %v5161_v4  ;;  %v6459_v20 = vld [vmem:[%s8578_s13 + $0xf4] sm:$0xf0] }
 0x6f0   :  { %v5166_v11 = vor.u32 %v6452_v8, %v5163_v10 }
 0x6f2   :  { %5027 = vmatmul.msk.bf16.vlgmr.msra.gmra.mxu0 %vm237_vm8, %v7160_v59  ;;  %5028 = vmatmul.msk.bf16.vlgmr.msra.gmra.mxu1 %vm237_vm8, %v7160_v59 }
 0x6f3   :  { %1800 = vmatpush.bf16.msrb.mxu0 %v6423_v14  ;;  %1814 = vmatpush.bf16.msrb.mxu1 %v6431_v16 }
 0x6f4   :  { %1826 = vmatpush.bf16.msrb.mxu2 %v6441_v25  ;;  %1840 = vmatpush.bf16.msrb.mxu3 %v6449_v28  ;;  %v5186_v28 = vor.u32 %v6459_v20, %v5185_v27 }
 0x6f7   :  { %1801 = vmatpush.bf16.msrb.mxu0 %v6422_v22  ;;  %1815 = vmatpush.bf16.msrb.mxu1 %v6430_v24 }
 0x6f8   :  { %1827 = vmatpush.bf16.msrb.mxu2 %v6440_v38  ;;  %1841 = vmatpush.bf16.msrb.mxu3 %v6448_v42  ;;  %v6455_v38 = vld [vmem:[%s8578_s13 + $0x74] sm:$0xf0] }
 0x6f9   :  { %5029 = vmatmul.msk.bf16.vlgmr.msra.gmra.mxu2 %vm237_vm8, %v7160_v59  ;;  %5030 = vmatmul.msk.bf16.vlgmr.msra.gmra.mxu3 %vm237_vm8, %v7160_v59 }
 0x6fb   :  { %1802 = vmatpush.bf16.msrb.mxu0 %v6421_v30  ;;  %1816 = vmatpush.bf16.msrb.mxu1 %v6429_v31  ;;  %v5187_v30 = vld [vmem:[%s8578_s13 + $0xf8] sm:$0xf0]  ;;  %v5169_v31 = vld [vmem:[%s8578_s13 + $0x38] sm:$0xf] }
 0x6fc   :  { %1828 = vmatpush.bf16.msrb.mxu2 %v6439_v46  ;;  %1842 = vmatpush.bf16.msrb.mxu3 %v6447_v47  ;;  %v5170_v46 = vor.u32 %v6455_v38, %v5169_v31  ;;  %v6464_v31 = vld [vmem:[%s8580_s15 + $0x320] sm:$0xff] }
 0x6fd   :  { %v6472_v38 = vld [vmem:[%s8580_s15 + $0x360] sm:$0xff] }
 0x6ff   :  { %1803 = vmatpush.bf16.msrb.mxu0 %v6420_v43  ;;  %1817 = vmatpush.bf16.msrb.mxu1 %v6428_v45  ;;  %v6453_v43 = vld [vmem:[%s8578_s13 + $0x3c] sm:$0xf] }
 0x700   :  { %1829 = vmatpush.bf16.msrb.mxu2 %v6438_v32  ;;  %1843 = vmatpush.bf16.msrb.mxu3 %v6446_v39  ;;  %v5171_v45 = vld [vmem:[%s8578_s13 + $0x78] sm:$0xf0] }
 0x703   :  { %1918 = vmatpush.bf16.msra.mxu0 %v5178_v1  ;;  %1932 = vmatpush.bf16.msra.mxu1 %v5182_v13 }
 0x704   :  { %1830 = vmatpush.bf16.msrb.mxu2 %v6437_v53  ;;  %1844 = vmatpush.bf16.msrb.mxu3 %v6445_v7 }
 0x707   :  { %1919 = vmatpush.bf16.msra.mxu0 %v5162_v9  ;;  %1933 = vmatpush.bf16.msra.mxu1 %v5166_v11 }
 0x708   :  { %1831 = vmatpush.bf16.msrb.mxu2 %v6436_v62  ;;  %1845 = vmatpush.bf16.msrb.mxu3 %v6444_v0 }
 0x70c   :  { %1946 = vmatpush.bf16.msra.mxu2 %v5186_v28  ;;  %v6474_v28 = vld [vmem:[%s8580_s15 + $0x370] sm:$0xff] }
 0x710   :  { %1947 = vmatpush.bf16.msra.mxu2 %v5170_v46  ;;  %v6491_v46 = vld [vmem:[%s8580_s15 + $0x3f8] sm:$0xff] }
 0x74f   :  { %v1119_v26 = vpop.f32.mrf.mxu0  ;;  %v1133_v18 = vpop.f32.mrf.mxu1 }
 0x750   :  { %v1134_v21 = vadd.f32 %v1133_v18, %v1119_v26  ;;  %v1422_v18 = vld [vmem:[%s8579_s14 + $0x8] sm:$0xf] }
 0x751   :  { %v1424_v47 = vperm.slane %v1422_v18, 0  ;;  %v1426_v2 = vperm.slane %v1422_v18, 2  ;;  %v1427_v13 = vperm.slane %v1422_v18, 3 }
 0x757   :  { %v7519_v40 = vpop.f32.mrf.mxu0  ;;  %v7521_v41 = vpop.f32.mrf.mxu1 }
 0x75c   :  { %v1147_v48 = vpop.f32.mrf.mxu2  ;;  %v1161_v49 = vpop.f32.mrf.mxu3 }
 0x75d   :  { %v1148_v50 = vadd.f32 %v1147_v48, %v1134_v21  ;;  %v6457_v21 = vld [vmem:[%s8578_s13 + $0xbc] sm:$0xf]  ;;  %v1425_v48 = vperm.slane %v1422_v18, 1 }
 0x75e   :  { %v5190_v42 = vor.u32 %v6457_v21, %v5187_v30  ;;  %v6467_v18 = vld [vmem:[%s8580_s15 + $0x338] sm:$0xff]  ;;  %v6473_v30 = vld [vmem:[%s8580_s15 + $0x368] sm:$0xff] }
 0x75f   :  { %v1162_v44 = vadd.f32 %v1161_v49, %v1148_v50  ;;  %v1367_v51 = vpop.f32.mrf.mxu0  ;;  %v1381_v52 = vpop.f32.mrf.mxu1  ;;  %v5174_v49 = vor.u32 %v6453_v43, %v5171_v45  ;;  %v6471_v43 = vld [vmem:[%s8580_s15 + $0x358] sm:$0xff] }
 0x760   :  { %1960 = vmatpush.bf16.msra.mxu3 %v5190_v42  ;;  %v6463_v42 = vld [vmem:[%s8580_s15 + $0x318] sm:$0xff] }
 0x761   :  { %v1368_v6 = vadd.f32 %v1367_v51, %v1162_v44  ;;  %v6483_v45 = vld [vmem:[%s8580_s15 + $0x3b8] sm:$0xff] }
 0x763   :  { %v1382_v55 = vadd.f32 %v1381_v52, %v1368_v6 }
 0x764   :  { %v7550_v54 = vpop.f32.mrf.mxu2  ;;  %v7552_v19 = vpop.f32.mrf.mxu3  ;;  %1961 = vmatpush.bf16.msra.mxu3 %v5174_v49  ;;  %v6482_v49 = vld [vmem:[%s8580_s15 + $0x3b0] sm:$0xff] }
 0x767   :  { %v7572_v3 = vpop.f32.mrf.mxu0  ;;  %v7574_v12 = vpop.f32.mrf.mxu1 }
 0x76c   :  { %v1395_v14 = vpop.f32.mrf.mxu2  ;;  %v1409_v16 = vpop.f32.mrf.mxu3 }
 0x76d   :  { %v1396_v26 = vadd.f32 %v1395_v14, %v1382_v55 }
 0x76f   :  { %v7600_v22 = vadd.f32 %v1409_v16, %v1396_v26  ;;  %v1481_v24 = vpop.f32.mrf.mxu0  ;;  %v1495_v25 = vpop.f32.mrf.mxu1 }
 0x770   :  { %v1482_v39 = vadd.f32 %v1481_v24, %v1424_v47  ;;  %v1496_v44 = vadd.f32 %v1495_v25, %v1425_v48  ;;  %v6475_v24 = vld [vmem:[%s8580_s15 + $0x378] sm:$0xff]  ;;  %v6466_v25 = vld [vmem:[%s8580_s15 + $0x330] sm:$0xff] }
 0x772   :  { %v1528_v7 = vmax.f32 %v1482_v39, 0.0  ;;  %v1529_v55 = vmax.f32 %v1496_v44, 0.0  ;;  %v6490_v39 = vld [vmem:[%s8580_s15 + $0x3f0] sm:$0xff]  ;;  %v6461_v44 = vld [vmem:[%s8580_s15 + $0x308] sm:$0xff] }
 0x774   :  { %v7617_v50 = vpop.f32.mrf.mxu2  ;;  %v7619_v32 = vpop.f32.mrf.mxu3 }
 0x777   :  { %v1483_v51 = vpop.f32.mrf.mxu0  ;;  %v1497_v52 = vpop.f32.mrf.mxu1 }
 0x778   :  { %v1484_v6 = vadd.f32 %v1483_v51, %v1424_v47  ;;  %v1498_v53 = vadd.f32 %v1497_v52, %v1425_v48  ;;  %v6462_v47 = vld [vmem:[%s8580_s15 + $0x310] sm:$0xff]  ;;  %v6469_v51 = vld [vmem:[%s8580_s15 + $0x348] sm:$0xff] }
 0x779   :  { %v6470_v48 = vld [vmem:[%s8580_s15 + $0x350] sm:$0xff]  ;;  %v6481_v52 = vld [vmem:[%s8580_s15 + $0x3a8] sm:$0xff] }
 0x77a   :  { %v1532_v60 = vmax.f32 %v1484_v6, 0.0  ;;  %v1533_v23 = vmax.f32 %v1498_v53, 0.0  ;;  %v6489_v6 = vld [vmem:[%s8580_s15 + $0x3e8] sm:$0xff]  ;;  %v6460_v53 = vld [vmem:[%s8580_s15 + $0x300] sm:$0xff] }
 0x77c   :  { %v1536_v63 = vpack.c.bf16 %v1532_v60, %v1528_v7  ;;  %v1537_v62 = vpack.c.bf16 %v1533_v23, %v1529_v55  ;;  %v1509_v0 = vpop.f32.mrf.mxu2  ;;  %v1523_v1 = vpop.f32.mrf.mxu3  ;;  %v6468_v7 = vld [vmem:[%s8580_s15 + $0x340] sm:$0xff] }
 0x77d   :  { %v1510_v4 = vadd.f32 %v1509_v0, %v1426_v2  ;;  %v1524_v5 = vadd.f32 %v1523_v1, %v1427_v13  ;;  %v6480_v55 = vld [vmem:[%s8580_s15 + $0x3a0] sm:$0xff]  ;;  %v6479_v0 = vld [vmem:[%s8580_s15 + $0x398] sm:$0xff] }
 0x77e   :  { %1804 = vmatmul.bf16.vlgmr.msrb.gmra.mxu0 %v1536_v63  ;;  %1818 = vmatmul.bf16.vlgmr.msrb.gmra.mxu1 %v1537_v62  ;;  %v6488_v60 = vld [vmem:[%s8580_s15 + $0x3e0] sm:$0xff]  ;;  %v6487_v1 = vld [vmem:[%s8580_s15 + $0x3d8] sm:$0xff] }
 0x77f   :  { %v1530_v14 = vmax.f32 %v1510_v4, 0.0  ;;  %v1531_v16 = vmax.f32 %v1524_v5, 0.0  ;;  %2236 = vmatpush.bf16.msrb.mxu0 %v6467_v18  ;;  %2250 = vmatpush.bf16.msrb.mxu1 %v6475_v24 }
 0x783   :  { %2237 = vmatpush.bf16.msrb.mxu0 %v6466_v25  ;;  %2251 = vmatpush.bf16.msrb.mxu1 %v6474_v28 }
 0x784   :  { %v1511_v8 = vpop.f32.mrf.mxu2  ;;  %v1525_v9 = vpop.f32.mrf.mxu3 }
 0x785   :  { %v1512_v10 = vadd.f32 %v1511_v8, %v1426_v2  ;;  %v1526_v11 = vadd.f32 %v1525_v9, %v1427_v13  ;;  %v6478_v2 = vld [vmem:[%s8580_s15 + $0x390] sm:$0xff]  ;;  %v6477_v8 = vld [vmem:[%s8580_s15 + $0x388] sm:$0xff] }
 0x786   :  { %v6486_v13 = vld [vmem:[%s8580_s15 + $0x3d0] sm:$0xff]  ;;  %v6485_v9 = vld [vmem:[%s8580_s15 + $0x3c8] sm:$0xff] }
 0x787   :  { %v1534_v26 = vmax.f32 %v1512_v10, 0.0  ;;  %v1535_v27 = vmax.f32 %v1526_v11, 0.0  ;;  %2252 = vmatpush.bf16.msrb.mxu1 %v6473_v30  ;;  %v6476_v10 = vld [vmem:[%s8580_s15 + $0x380] sm:$0xff] }
 0x788   :  { %v6484_v11 = vld [vmem:[%s8580_s15 + $0x3c0] sm:$0xff] }
 0x789   :  { %v1538_v20 = vpack.c.bf16 %v1534_v26, %v1530_v14  ;;  %v1539_v21 = vpack.c.bf16 %v1535_v27, %v1531_v16  ;;  %v1862_v14 = vld [vmem:[%s8579_s14 + $0xc] sm:$0xf] }
 0x78a   :  { %v1864_v27 = vperm.slane %v1862_v14, 0 }
 0x78b   :  { %1832 = vmatmul.bf16.vlgmr.msrb.gmra.mxu2 %v1538_v20  ;;  %1846 = vmatmul.bf16.vlgmr.msrb.gmra.mxu3 %v1539_v21  ;;  %v1865_v20 = vperm.slane %v1862_v14, 1 }
 0x78c   :  { %2253 = vmatpush.bf16.msrb.mxu1 %v6472_v38  ;;  %2264 = vmatpush.bf16.msrb.mxu2 %v6483_v45 }
 0x78d   :  { %2278 = vmatpush.bf16.msrb.mxu3 %v6491_v46 }
 0x78e   :  { %5191 = vmatmul.msk.bf16.vlgmr.msra.gmra.mxu0 %vm237_vm8, %v7160_v59  ;;  %5192 = vmatmul.msk.bf16.vlgmr.msra.gmra.mxu1 %vm237_vm8, %v7160_v59 }
 0x790   :  { %2254 = vmatpush.bf16.msrb.mxu1 %v6471_v43  ;;  %2265 = vmatpush.bf16.msrb.mxu2 %v6482_v49 }
 0x791   :  { %2279 = vmatpush.bf16.msrb.mxu3 %v6490_v39 }
 0x794   :  { %2255 = vmatpush.bf16.msrb.mxu1 %v6470_v48  ;;  %2266 = vmatpush.bf16.msrb.mxu2 %v6481_v52 }
 0x795   :  { %2280 = vmatpush.bf16.msrb.mxu3 %v6489_v6 }
 0x798   :  { %2256 = vmatpush.bf16.msrb.mxu1 %v6469_v51  ;;  %2267 = vmatpush.bf16.msrb.mxu2 %v6480_v55 }
 0x799   :  { %2281 = vmatpush.bf16.msrb.mxu3 %v6488_v60 }
 0x79b   :  { %5193 = vmatmul.msk.bf16.vlgmr.msra.gmra.mxu2 %vm237_vm8, %v7160_v59  ;;  %5194 = vmatmul.msk.bf16.vlgmr.msra.gmra.mxu3 %vm237_vm8, %v7160_v59  ;;  %v6465_v59 = vld [vmem:[%s8580_s15 + $0x328] sm:$0xff] }
 0x79c   :  { %2238 = vmatpush.bf16.msrb.mxu0 %v6465_v59  ;;  %2257 = vmatpush.bf16.msrb.mxu1 %v6468_v7  ;;  %v1867_v7 = vperm.slane %v1862_v14, 3 }
 0x79d   :  { %2268 = vmatpush.bf16.msrb.mxu2 %v6479_v0  ;;  %2282 = vmatpush.bf16.msrb.mxu3 %v6487_v1 }
 0x7a0   :  { %2239 = vmatpush.bf16.msrb.mxu0 %v6464_v31 }
 0x7a1   :  { %2269 = vmatpush.bf16.msrb.mxu2 %v6478_v2  ;;  %2283 = vmatpush.bf16.msrb.mxu3 %v6486_v13 }
 0x7a4   :  { %2240 = vmatpush.bf16.msrb.mxu0 %v6463_v42 }
 0x7a5   :  { %2270 = vmatpush.bf16.msrb.mxu2 %v6477_v8  ;;  %2284 = vmatpush.bf16.msrb.mxu3 %v6485_v9 }
 0x7a8   :  { %2241 = vmatpush.bf16.msrb.mxu0 %v6462_v47 }
 0x7a9   :  { %2271 = vmatpush.bf16.msrb.mxu2 %v6476_v10  ;;  %2285 = vmatpush.bf16.msrb.mxu3 %v6484_v11  ;;  %v1136_v10 = vadd.f32 %v7521_v41, %v7519_v40 }
 0x7ab   :  { %v1150_v11 = vadd.f32 %v7550_v54, %v1136_v10 }
 0x7ac   :  { %2242 = vmatpush.bf16.msrb.mxu0 %v6461_v44 }
 0x7b0   :  { %2243 = vmatpush.bf16.msrb.mxu0 %v6460_v53  ;;  %v1866_v53 = vperm.slane %v1862_v14, 2 }
 0x7fb   :  { %v1805_v23 = vpop.f32.mrf.mxu0  ;;  %v1819_v63 = vpop.f32.mrf.mxu1 }
 0x7fc   :  { %v1820_v62 = vadd.f32 %v1819_v63, %v1805_v23 }
 0x803   :  { %v7713_v4 = vpop.f32.mrf.mxu0  ;;  %v1821_v5 = vpop.f32.mrf.mxu1 }
 0x80b   :  { %v1921_v16 = vpop.f32.mrf.mxu0  ;;  %v1935_v26 = vpop.f32.mrf.mxu1 }
 0x80c   :  { %v1922_v28 = vadd.f32 %v1921_v16, %v1864_v27  ;;  %v1936_v59 = vadd.f32 %v1935_v26, %v1865_v20  ;;  %v1164_v26 = vadd.f32 %v7552_v19, %v1150_v11  ;;  %v6672_v19 = vld [vmem:[%s8581_s16] ss:$0 sm:$0xff] }
 0x80e   :  { %v1833_v21 = vpop.f32.mrf.mxu2  ;;  %v1847_v18 = vpop.f32.mrf.mxu3  ;;  %v1968_v45 = vmax.f32 %v1922_v28, 0.0  ;;  %v1969_v46 = vmax.f32 %v1936_v59, 0.0 }
 0x80f   :  { %v1834_v24 = vadd.f32 %v1833_v21, %v1820_v62 }
 0x811   :  { %v1848_v25 = vadd.f32 %v1847_v18, %v1834_v24  ;;  %v1822_v24 = vadd.f32 %v1821_v5, %v7713_v4 }
 0x813   :  { %v1852_v30 = vadd.f32 %v1848_v25, %v7600_v22  ;;  %v1923_v31 = vpop.f32.mrf.mxu0  ;;  %v1937_v38 = vpop.f32.mrf.mxu1 }
 0x814   :  { %v1924_v42 = vadd.f32 %v1923_v31, %v1864_v27  ;;  %v1938_v43 = vadd.f32 %v1937_v38, %v1865_v20  ;;  %v1370_v27 = vadd.f32 %v7572_v3, %v1164_v26 }
 0x816   :  { %v1972_v47 = vmax.f32 %v1924_v42, 0.0  ;;  %v1973_v48 = vmax.f32 %v1938_v43, 0.0  ;;  %v1835_v49 = vpop.f32.mrf.mxu2  ;;  %v1849_v39 = vpop.f32.mrf.mxu3  ;;  %v1384_v28 = vadd.f32 %v7574_v12, %v1370_v27 }
 0x817   :  { %v1836_v59 = vadd.f32 %v1835_v49, %v1822_v24 }
 0x818   :  { %v1976_v44 = vpack.c.bf16 %v1972_v47, %v1968_v45  ;;  %v1977_v51 = vpack.c.bf16 %v1973_v48, %v1969_v46  ;;  %v1398_v41 = vadd.f32 %v7617_v50, %v1384_v28 }
 0x819   :  { %v1850_v3 = vadd.f32 %v1849_v39, %v1836_v59 }
 0x81a   :  { %2244 = vmatmul.bf16.vlgmr.msrb.gmra.mxu0 %v1976_v44  ;;  %2258 = vmatmul.bf16.vlgmr.msrb.gmra.mxu1 %v1977_v51  ;;  %v1412_v4 = vadd.f32 %v7619_v32, %v1398_v41 }
 0x81c   :  { %v1853_v47 = vadd.f32 %v1850_v3, %v1412_v4 }
 0x81e   :  { %v1949_v52 = vpop.f32.mrf.mxu2  ;;  %v1963_v6 = vpop.f32.mrf.mxu3 }
 0x81f   :  { %v1950_v55 = vadd.f32 %v1949_v52, %v1866_v53  ;;  %v1964_v22 = vadd.f32 %v1963_v6, %v1867_v7 }
 0x821   :  { %v1970_v0 = vmax.f32 %v1950_v55, 0.0  ;;  %v1971_v1 = vmax.f32 %v1964_v22, 0.0 }
 0x826   :  { %v1951_v60 = vpop.f32.mrf.mxu2  ;;  %v1965_v23 = vpop.f32.mrf.mxu3 }
 0x827   :  { %v1952_v63 = vadd.f32 %v1951_v60, %v1866_v53  ;;  %v1966_v62 = vadd.f32 %v1965_v23, %v1867_v7 }
 0x829   :  { %v1974_v2 = vmax.f32 %v1952_v63, 0.0  ;;  %v1975_v13 = vmax.f32 %v1966_v62, 0.0  ;;  %v6492_v62 = vld [vmem:[%s8608_s7 + $0x10] sm:$0xff] }
 0x82b   :  { %v1978_v8 = vpack.c.bf16 %v1974_v2, %v1970_v0  ;;  %v1979_v9 = vpack.c.bf16 %v1975_v13, %v1971_v1 }
 0x82d   :  { %2272 = vmatmul.bf16.vlgmr.msrb.gmra.mxu2 %v1978_v8  ;;  %2286 = vmatmul.bf16.vlgmr.msrb.gmra.mxu3 %v1979_v9 }
 0x897   :  { %v2245_v14 = vpop.f32.mrf.mxu0  ;;  %v2259_v16 = vpop.f32.mrf.mxu1 }
 0x898   :  { %v2260_v20 = vadd.f32 %v2259_v16, %v2245_v14 }
 0x89f   :  { %v2247_v38 = vpop.f32.mrf.mxu0  ;;  %v2261_v40 = vpop.f32.mrf.mxu1 }
 0x8a0   :  { %v2262_v42 = vadd.f32 %v2261_v40, %v2247_v38  ;;  %v6674_v38 = vld [vmem:[%s8583_s18] ss:$0 sm:$0xff] }
 0x8b0   :  { %v2273_v21 = vpop.f32.mrf.mxu2  ;;  %v2287_v18 = vpop.f32.mrf.mxu3 }
 0x8b1   :  { %v2274_v25 = vadd.f32 %v2273_v21, %v2260_v20 }
 0x8b3   :  { %v2288_v31 = vadd.f32 %v2287_v18, %v2274_v25  ;;  %v6673_v25 = vld [vmem:[%s8582_s17] ss:$0 sm:$0xff] }
 0x8b5   :  { %v2292_v54 = vadd.f32 %v2288_v31, %v1852_v30 }
 0x8b7   :  { %v2294_v43 = vadd.f32 %v2292_v54, %v7154_v57 }
 0x8b8   :  { %v2275_v45 = vpop.f32.mrf.mxu2  ;;  %v2289_v46 = vpop.f32.mrf.mxu3 }
 0x8b9   :  { %v2276_v5 = vadd.f32 %v2275_v45, %v2262_v42  ;;  %v2300_v12 = vadd.f32 %v6672_v19, %v2294_v43  ;;  %v6675_v43 = vld [vmem:[%s8610_s6 + $0x1] ss:$0 sm:$0xff] }
 0x8bb   :  { %v2290_v48 = vadd.f32 %v2289_v46, %v2276_v5  ;;  %v2304_v49 = vsel %vm237_vm8, %v2300_v12, 0.0 }
 0x8bc   :  { %2305 = vadd.xlane.f32.xlu0 %v2304_v49 }
 0x8bd   :  { %v2293_v50 = vadd.f32 %v2290_v48, %v1853_v47 }
 0x8bf   :  { %v2295_v30 = vadd.f32 %v2293_v50, %v7156_v58  ;;  %v6493_v58 = vld [vmem:[%s8608_s7 + $0x18] sm:$0xff] }
 0x8c0   :  { %2390 = vmatpush.bf16.msra.mxu0 %v6493_v58 }
 0x8c1   :  { %v2301_v44 = vadd.f32 %v6672_v19, %v2295_v30 }
 0x8c3   :  { %v2307_v39 = vsel %vm237_vm8, %v2301_v44, 0.0 }
 0x8c4   :  { %2308 = vadd.xlane.f32.xlu0 %v2307_v39  ;;  %2391 = vmatpush.bf16.msra.mxu0 %v6492_v62 }
 0x92f   :  { %v2306_v51 = vpop.xlane.xlu0 %2305 }
 0x930   :  { %v2310_v57 = vmul.f32 %v2306_v51, %v7034_v17 }
 0x932   :  { %v2312_v52 = vsub.f32 %v2300_v12, %v2310_v57 }
 0x934   :  { %v2314_v32 = vmul.f32 %v2312_v52, %v2312_v52 }
 0x936   :  { %v2316_v6 = vsel %vm237_vm8, %v2314_v32, 0.0 }
 0x937   :  { %2317 = vadd.xlane.f32.xlu0 %v2316_v6  ;;  %v2309_v53 = vpop.xlane.xlu0 %2308 }
 0x938   :  { %v2311_v7 = vmul.f32 %v2309_v53, %v7034_v17 }
 0x93a   :  { %v2313_v55 = vsub.f32 %v2301_v44, %v2311_v7 }
 0x93c   :  { %v2315_v22 = vmul.f32 %v2313_v55, %v2313_v55 }
 0x93e   :  { %v2319_v60 = vsel %vm237_vm8, %v2315_v22, 0.0 }
 0x93f   :  { %2320 = vadd.xlane.f32.xlu0 %v2319_v60 }
 0x9aa   :  { %v2318_v23 = vpop.xlane.xlu0 %2317 }
 0x9ab   :  { %v2322_v63 = vmul.f32 %v2318_v23, %v7034_v17 }
 0x9ad   :  { %v2324_v0 = vadd.f32 1e-05, %v2322_v63 }
 0x9af   :  { %6706 = vrsqrt.f32 %v2324_v0  ;;  %vm2332_vm11 = vweird.f32 %v2324_v0 }
 0x9b2   :  { %v2321_v1 = vpop.xlane.xlu0 %2320 }
 0x9b3   :  { %v2323_v2 = vmul.f32 %v2321_v1, %v7034_v17 }
 0x9b5   :  { %v6707_v13 = vpop.eup %6706  ;;  %v2325_v8 = vadd.f32 1e-05, %v2323_v2 }
 0x9b6   :  { %v2327_v9 = vmul.f32 %v6707_v13, %v2324_v0  ;;  %vm2333_vm10 = vweird.f32 %v6707_v13 }
 0x9b7   :  { %6708 = vrsqrt.f32 %v2325_v8  ;;  %vm2334_vm12 = vmor %vm2332_vm11, %vm2333_vm10  ;;  %vm2342_vm15 = vweird.f32 %v2325_v8 }
 0x9b8   :  { %v2328_v10 = vmul.f32 %v6707_v13, %v2327_v9 }
 0x9ba   :  { %v2329_v11 = vmul.f32 0.5, %v2328_v10 }
 0x9bc   :  { %v2330_v14 = vsub.f32 1.5, %v2329_v11 }
 0x9bd   :  { %v6709_v16 = vpop.eup %6708 }
 0x9be   :  { %v2331_v26 = vmul.f32 %v6707_v13, %v2330_v14  ;;  %v2337_v27 = vmul.f32 %v6709_v16, %v2325_v8  ;;  %vm2343_vm13 = vweird.f32 %v6709_v16 }
 0x9bf   :  { %vm2344_vm0 = vmor %vm2342_vm15, %vm2343_vm13 }
 0x9c0   :  { %v2338_v20 = vmul.f32 %v6709_v16, %v2337_v27  ;;  %v2335_v21 = vsel %vm2334_vm12, %v6707_v13, %v2331_v26 }
 0x9c1   :  { %v2346_v28 = vmul.f32 %v2335_v21, %v2312_v52 }
 0x9c2   :  { %v2339_v18 = vmul.f32 0.5, %v2338_v20 }
 0x9c3   :  { %v2351_v40 = vmul.f32 %v6673_v25, %v2346_v28 }
 0x9c4   :  { %v2340_v24 = vsub.f32 1.5, %v2339_v18 }
 0x9c5   :  { %v7765_v19 = vadd.f32 %v6674_v38, %v2351_v40 }
 0x9c6   :  { %v2341_v59 = vmul.f32 %v6709_v16, %v2340_v24 }
 0x9c8   :  { %v2345_v31 = vsel %vm2344_vm0, %v6709_v16, %v2341_v59 }
 0x9c9   :  { %v2347_v41 = vmul.f32 %v2345_v31, %v2313_v55 }
 0x9cb   :  { %v2352_v54 = vmul.f32 %v6673_v25, %v2347_v41 }
 0x9cd   :  { %v7767_v3 = vadd.f32 %v6674_v38, %v2352_v54 }
 0x9cf   :  { %v2358_v42 = vpack.c.bf16 %v7767_v3, %v7765_v19 }
 0x9d1   :  { %5336 = vmatmul.msk.bf16.vlgmr.msra.gmra.mxu0 %vm237_vm8, %v2358_v42 }
 0xa4e   :  { %v2393_v45 = vpop.f32.mrf.mxu0 }
 0xa4f   :  { %v7775_v4 = vadd.f32 %v6675_v43, %v2393_v45 }
 0xa51   :  { %2400 = vrot.lane.b32.xlu2 %v7775_v4, %s6776_s2  ;;  %v2441_v46 = vmul.f32 %v7775_v4, %v6972_v37  ;;  %v2509_v47 = vmul.f32 %v7775_v4, %v6969_v36 }
 0xa56   :  { %v2395_v5 = vpop.f32.mrf.mxu0 }
 0xa57   :  { %v7779_v12 = vadd.f32 %v6675_v43, %v2395_v5 }
 0xa59   :  { %v2442_v48 = vmul.f32 %v7779_v12, %v6972_v37  ;;  %v2510_v49 = vmul.f32 %v7779_v12, %v6969_v36  ;;  %2402 = vrot.lane.b32.xlu0 %v7779_v12, %s6776_s2  ;;  %v2440_v50 = vpack.c.bf16 %v7779_v12, %v7775_v4 }
 0xa5b   :  { %v2443_v30 = vpack.c.bf16 %v2442_v48, %v2441_v46  ;;  %v2511_v44 = vpack.c.bf16 %v2510_v49, %v2509_v47 }
 0xaab   :  { %v2401_v39 = vpop.permute.xlu2 %2400 }
 0xaac   :  { %2406 = vxpose.xlu1.b32.start [1/2] (short) (narrow) %v2401_v39, 32  ;;  %v6494_v39 = vld [vmem:[%s8574_s9 + $0x10] sm:$0xff] }
 0xacb   :  { %v2403_v51 = vpop.permute.xlu0 %2402 }
 0xacc   :  { %2407 = vxpose.xlu1.b32.end [2/2] (short) (narrow) %v2403_v51, 32 }
 0xb68   :  { %v2422_v57 = vpop.trf.xlu1 }
 0xb70   :  { %v2423_v52 = vpop.trf.xlu1 }
 0xb71   :  { %v2438_v36 = vpack.c.bf16 %v2423_v52, %v2422_v57 }
 0xb78   :  { %v2424_v32 = vpop.trf.xlu1 }
 0xb80   :  { %v2425_v6 = vpop.trf.xlu1 }
 0xb81   :  { %v2439_v37 = vpack.c.bf16 %v2425_v6, %v2424_v32 }
 0xb83   :  { %2453 = vmatpush.bf16.msra.mxu1 %v2439_v37  ;;  %2521 = vmatpush.bf16.msra.mxu3 %v2439_v37 }
 0xb87   :  { %2454 = vmatpush.bf16.msra.mxu1 %v2438_v36  ;;  %2522 = vmatpush.bf16.msra.mxu3 %v2438_v36 }
 0xb8a   :  { %5337 = vmatmul.msk.bf16.vlgmr.msra.gmra.mxu1 %vm237_vm8, %v2443_v30  ;;  %5339 = vmatmul.msk.bf16.vlgmr.msra.gmra.mxu3 %vm237_vm8, %v2511_v44  ;;  %v6495_v44 = vld [vmem:[%s8574_s9 + $0x18] sm:$0xff] }
 0xb8b   :  { %2605 = vmatpush.bf16.msrb.mxu1 %v6495_v44  ;;  %v5493_v44 = vld [vmem:[%s8578_s13 + $0x190] sm:$0xf] }
 0xb8f   :  { %2606 = vmatpush.bf16.msrb.mxu1 %v6494_v39  ;;  %v6542_v39 = vld [vmem:[%s8578_s13 + $0x1cc] sm:$0xf0] }
 0xc07   :  { %v2456_v53 = vpop.f32.mrf.mxu1 }
 0xc08   :  { %v2457_v7 = vadd.f32 %v2456_v53, %v6991_v56 }
 0xc0a   :  { %v2461_v55 = vsel %vm318_vm14, %v2457_v7, -inf }
 0xc0b   :  { %2462 = vmax.xlane.f32.xlu0 %v2461_v55 }
 0xc0d   :  { %v2524_v22 = vpop.f32.mrf.mxu3 }
 0xc0e   :  { %v2525_v60 = vadd.f32 %v2524_v22, %v6991_v56 }
 0xc0f   :  { %v2458_v58 = vpop.f32.mrf.mxu1 }
 0xc10   :  { %v2459_v23 = vadd.f32 %v2458_v58, %v6998_v61  ;;  %v2529_v62 = vsel %vm318_vm14, %v2525_v60, -inf }
 0xc12   :  { %v2464_v63 = vsel %vm318_vm14, %v2459_v23, -inf }
 0xc13   :  { %2465 = vmax.xlane.f32.xlu2 %v2464_v63  ;;  %2530 = vmax.xlane.f32.xlu0 %v2529_v62 }
 0xc15   :  { %v2526_v0 = vpop.f32.mrf.mxu3 }
 0xc16   :  { %v2527_v1 = vadd.f32 %v2526_v0, %v6998_v61 }
 0xc18   :  { %v2532_v2 = vsel %vm318_vm14, %v2527_v1, -inf }
 0xc1b   :  { %2533 = vmax.xlane.f32.xlu2 %v2532_v2 }
 0xc7e   :  { %v2463_v13 = vpop.xlane.xlu0 %2462 }
 0xc7f   :  { %v2467_v8 = vsub.f32 %v2457_v7, %v2463_v13 }
 0xc81   :  { %v2469_v9 = vmul.f32 1.442695, %v2467_v8 }
 0xc83   :  { %6710 = vpow2.f32 %v2469_v9 }
 0xc86   :  { %v2466_v56 = vpop.xlane.xlu2 %2465  ;;  %v2531_v10 = vpop.xlane.xlu0 %2530 }
 0xc87   :  { %v2468_v11 = vsub.f32 %v2459_v23, %v2466_v56  ;;  %v2535_v14 = vsub.f32 %v2525_v60, %v2531_v10  ;;  %v6676_v60 = vld [vmem:[%s8575_s10 + $0x1] ss:$0 sm:$0xff] }
 0xc89   :  { %v6711_v16 = vpop.eup %6710  ;;  %v2471_v26 = vmul.f32 1.442695, %v2468_v11  ;;  %v2537_v27 = vmul.f32 1.442695, %v2535_v14 }
 0xc8a   :  { %v2473_v20 = vsel %vm318_vm14, %v6711_v16, 0.0 }
 0xc8b   :  { %6712 = vpow2.f32 %v2471_v26  ;;  %2474 = vadd.xlane.f32.xlu0 %v2473_v20  ;;  %v6502_v26 = vld [vmem:[%s8578_s13 + $0x1bc] sm:$0xf0] }
 0xc8c   :  { %6714 = vpow2.f32 %v2537_v27  ;;  %v6500_v27 = vld [vmem:[%s8578_s13 + $0x184] sm:$0xf] }
 0xc8e   :  { %v2534_v61 = vpop.xlane.xlu2 %2533 }
 0xc8f   :  { %v2536_v21 = vsub.f32 %v2527_v1, %v2534_v61  ;;  %v5386_v61 = vld [vmem:[%s8578_s13 + $0x1c0] sm:$0xf0] }
 0xc91   :  { %v6713_v18 = vpop.eup %6712  ;;  %v2539_v24 = vmul.f32 1.442695, %v2536_v21  ;;  %v5392_v21 = vld [vmem:[%s8578_s13 + $0x188] sm:$0xf] }
 0xc92   :  { %v6715_v25 = vpop.eup %6714  ;;  %v2476_v28 = vsel %vm318_vm14, %v6713_v18, 0.0 }
 0xc93   :  { %6716 = vpow2.f32 %v2539_v24  ;;  %2477 = vadd.xlane.f32.xlu2 %v2476_v28  ;;  %v2541_v59 = vsel %vm318_vm14, %v6715_v25, 0.0 }
 0xc94   :  { %2542 = vadd.xlane.f32.xlu0 %v2541_v59  ;;  %v6501_v59 = vld [vmem:[%s8578_s13 + $0x18c] sm:$0xf] }
 0xc99   :  { %v6717_v31 = vpop.eup %6716 }
 0xc9a   :  { %v2544_v38 = vsel %vm318_vm14, %v6717_v31, 0.0 }
 0xc9b   :  { %2545 = vadd.xlane.f32.xlu1 %v2544_v38 }
 0xcab   :  { %2485 = vrot.lane.b32.xlu2 %v2440_v50, %s6778_s29 }
 0xcfe   :  { %v2475_v40 = vpop.xlane.xlu0 %2474 }
 0xcff   :  { %6718 = vrcp.f32 %v2475_v40 }
 0xd05   :  { %v6719_v42 = vpop.eup %6718 }
 0xd06   :  { %v2478_v41 = vpop.xlane.xlu2 %2477  ;;  %v2481_v45 = vmul.f32 %v6719_v42, %v6711_v16  ;;  %v5384_v16 = vld [vmem:[%s8578_s13 + $0x180] sm:$0xf]  ;;  %v6496_v42 = vld [vmem:[%s8578_s13 + $0x104] sm:$0xf] }
 0xd07   :  { %6720 = vrcp.f32 %v2478_v41  ;;  %v2543_v54 = vpop.xlane.xlu0 %2542  ;;  %v5385_v20 = vor.u32 %v6502_v26, %v5384_v16  ;;  %v5368_v41 = vld [vmem:[%s8578_s13 + $0x100] sm:$0xf] }
 0xd08   :  { %6722 = vrcp.f32 %v2543_v54  ;;  %v6498_v54 = vld [vmem:[%s8578_s13 + $0x13c] sm:$0xf0] }
 0xd0d   :  { %v6721_v43 = vpop.eup %6720 }
 0xd0e   :  { %v2482_v4 = vmul.f32 %v6721_v43, %v6713_v18  ;;  %v2546_v5 = vpop.xlane.xlu1 %2545  ;;  %v2486_v12 = vpop.permute.xlu2 %2485  ;;  %v6503_v18 = vld [vmem:[%s8578_s13 + $0x1c4] sm:$0xf0] }
 0xd0f   :  { %6724 = vrcp.f32 %v2546_v5  ;;  %2498 = vmatpush.bf16.msra.mxu2 %v2486_v12  ;;  %2562 = vmatpush.bf16.msrb.mxu0 %v2486_v12  ;;  %v6723_v47 = vpop.eup %6722  ;;  %v5393_v28 = vor.u32 %v6503_v18, %v5392_v21  ;;  %v5376_v5 = vld [vmem:[%s8578_s13 + $0x108] sm:$0xf] }
 0xd10   :  { %v2483_v46 = vpack.c.bf16 %v2482_v4, %v2481_v45  ;;  %v2549_v49 = vmul.f32 %v6723_v47, %v6715_v25  ;;  %v5389_v25 = vor.u32 %v6500_v27, %v5386_v61  ;;  %v5369_v45 = vor.u32 %v6498_v54, %v5368_v41  ;;  %v5370_v4 = vld [vmem:[%s8578_s13 + $0x140] sm:$0xf0]  ;;  %v6497_v47 = vld [vmem:[%s8578_s13 + $0x10c] sm:$0xf] }
 0xd11   :  { %v5373_v12 = vor.u32 %v6496_v42, %v5370_v4  ;;  %v6575_v4 = vld [vmem:[%s8580_s15 + $0x5f8] sm:$0xff] }
 0xd12   :  { %5338 = vmatmul.msk.bf16.vlgmr.msra.gmra.mxu2 %vm318_vm14, %v2483_v46  ;;  %2757 = vmatpush.bf16.msrb.mxu3 %v5389_v25  ;;  %v6499_v46 = vld [vmem:[%s8578_s13 + $0x144] sm:$0xf0]  ;;  %v6677_v25 = vld [vmem:[%s8576_s11 + $0x1] ss:$0 sm:$0xff]  ;;  %s4629_s11 = sshll.u32 %s8589_s24, 4  ;;  %s4630_s11 = int_to_ptr.hbm [resolvable:$true] %s4629_s11 }
 0xd13   :  { %2743 = vmatpush.bf16.msrb.mxu2 %v5385_v20  ;;  %2771 = vmatpush.bf16.msra.mxu0 %v5393_v28 }
 0xd15   :  { %v6725_v48 = vpop.eup %6724 }
 0xd16   :  { %v2550_v50 = vmul.f32 %v6725_v48, %v6717_v31  ;;  %v5394_v31 = vld [vmem:[%s8578_s13 + $0x1c8] sm:$0xf0]  ;;  %2758 = vmatpush.bf16.msrb.mxu3 %v5373_v12  ;;  %v6566_v12 = vld [vmem:[%s8580_s15 + $0x5b0] sm:$0xff] }
 0xd17   :  { %v5397_v40 = vor.u32 %v6501_v59, %v5394_v31  ;;  %v5378_v48 = vld [vmem:[%s8578_s13 + $0x148] sm:$0xf0]  ;;  %2744 = vmatpush.bf16.msrb.mxu2 %v5369_v45 }
 0xd18   :  { %v2551_v30 = vpack.c.bf16 %v2550_v50, %v2549_v49  ;;  %v5377_v49 = vor.u32 %v6499_v46, %v5376_v5  ;;  %v5381_v50 = vor.u32 %v6497_v47, %v5378_v48  ;;  %v6559_v5 = vld [vmem:[%s8580_s15 + $0x578] sm:$0xff]  ;;  %v6574_v46 = vld [vmem:[%s8580_s15 + $0x5f0] sm:$0xff] }
 0xd19   :  { %2785 = vmatpush.bf16.msra.mxu1 %v5397_v40  ;;  %v6550_v47 = vld [vmem:[%s8580_s15 + $0x530] sm:$0xff] }
 0xd1a   :  { %5340 = vmatmul.msk.bf16.vlgmr.msrb.gmra.mxu0 %vm318_vm14, %v2551_v30  ;;  %v6558_v48 = vld [vmem:[%s8580_s15 + $0x570] sm:$0xff] }
 0xd1b   :  { %2772 = vmatpush.bf16.msra.mxu0 %v5377_v49  ;;  %v6565_v49 = vld [vmem:[%s8580_s15 + $0x5a8] sm:$0xff] }
 0xd1d   :  { %2786 = vmatpush.bf16.msra.mxu1 %v5381_v50  ;;  %v6573_v50 = vld [vmem:[%s8580_s15 + $0x5e8] sm:$0xff] }
 0xd95   :  { %v2500_v51 = vpop.f32.mrf.mxu2 }
 0xd96   :  { %v2505_v37 = vmul.f32 %v6966_v35, %v2500_v51  ;;  %v6540_v51 = vld [vmem:[%s8578_s13 + $0x194] sm:$0xf] }
 0xd97   :  { %v2564_v57 = vpop.f32.mrf.mxu0 }
 0xd98   :  { %v2569_v32 = vmul.f32 %v6961_v34, %v2564_v57 }
 0xd9a   :  { %v2571_v7 = vadd.f32 %v2569_v32, %v2505_v37  ;;  %v5495_v32 = vld [vmem:[%s8578_s13 + $0x1d0] sm:$0xf0]  ;;  %v6543_v37 = vld [vmem:[%s8578_s13 + $0x1d4] sm:$0xf0] }
 0xd9d   :  { %v2502_v52 = vpop.f32.mrf.mxu2 }
 0xd9e   :  { %v2506_v36 = vmul.f32 %v6966_v35, %v2502_v52  ;;  %v5494_v52 = vor.u32 %v6542_v39, %v5493_v44  ;;  %v6572_v44 = vld [vmem:[%s8580_s15 + $0x5e0] sm:$0xff]  ;;  %v6549_v39 = vld [vmem:[%s8580_s15 + $0x528] sm:$0xff] }
 0xd9f   :  { %v2566_v6 = vpop.f32.mrf.mxu0 }
 0xda0   :  { %v2570_v53 = vmul.f32 %v6961_v34, %v2566_v6  ;;  %v5501_v6 = vld [vmem:[%s8578_s13 + $0x198] sm:$0xf]  ;;  %2934 = vmatpush.bf16.msra.mxu2 %v5494_v52 }
 0xda1   :  { %v6571_v52 = vld [vmem:[%s8580_s15 + $0x5d8] sm:$0xff] }
 0xda2   :  { %v2572_v55 = vadd.f32 %v2570_v53, %v2506_v36  ;;  %v5498_v36 = vor.u32 %v6540_v51, %v5495_v32  ;;  %v5502_v53 = vor.u32 %v6543_v37, %v5501_v6  ;;  %v6557_v51 = vld [vmem:[%s8580_s15 + $0x568] sm:$0xff]  ;;  %v6548_v32 = vld [vmem:[%s8580_s15 + $0x520] sm:$0xff]  ;;  %v6562_v37 = vld [vmem:[%s8580_s15 + $0x590] sm:$0xff] }
 0xda3   :  { %v6556_v6 = vld [vmem:[%s8580_s15 + $0x560] sm:$0xff] }
 0xda4   :  { %v2573_v22 = vpack.c.bf16 %v2572_v55, %v2571_v7  ;;  %v6541_v7 = vld [vmem:[%s8578_s13 + $0x19c] sm:$0xf]  ;;  %2948 = vmatpush.bf16.msra.mxu3 %v5498_v36  ;;  %2962 = vmatpush.bf16.msrb.mxu0 %v5502_v53  ;;  %v6570_v36 = vld [vmem:[%s8580_s15 + $0x5d0] sm:$0xff] }
 0xda5   :  { %v5503_v55 = vld [vmem:[%s8578_s13 + $0x1d8] sm:$0xf0] }
 0xda6   :  { %5354 = vmatmul.msk.bf16.vlgmr.msrb.gmra.mxu1 %vm237_vm8, %v2573_v22  ;;  %v5477_v22 = vld [vmem:[%s8578_s13 + $0x110] sm:$0xf]  ;;  %v6547_v53 = vld [vmem:[%s8580_s15 + $0x518] sm:$0xff] }
 0xe23   :  { %v2608_v58 = vpop.f32.mrf.mxu1 }
 0xe24   :  { %v2609_v23 = vadd.f32 %v6676_v60, %v2608_v58 }
 0xe26   :  { %v2613_v63 = vadd.f32 %v2609_v23, %v7765_v19  ;;  %v5506_v23 = vor.u32 %v6541_v7, %v5503_v55  ;;  %v6555_v7 = vld [vmem:[%s8580_s15 + $0x558] sm:$0xff]  ;;  %v6561_v55 = vld [vmem:[%s8580_s15 + $0x588] sm:$0xff] }
 0xe28   :  { %v2619_v62 = vsel %vm237_vm8, %v2613_v63, 0.0  ;;  %2976 = vmatpush.bf16.msrb.mxu1 %v5506_v23  ;;  %v6560_v23 = vld [vmem:[%s8580_s15 + $0x580] sm:$0xff] }
 0xe29   :  { %2620 = vadd.xlane.f32.xlu0 %v2619_v62  ;;  %v6536_v62 = vld [vmem:[%s8578_s13 + $0x114] sm:$0xf] }
 0xe2b   :  { %v2610_v0 = vpop.f32.mrf.mxu1 }
 0xe2c   :  { %v2611_v35 = vadd.f32 %v6676_v60, %v2610_v0 }
 0xe2e   :  { %v2614_v34 = vadd.f32 %v2611_v35, %v7767_v3 }
 0xe30   :  { %v2622_v1 = vsel %vm237_vm8, %v2614_v34, 0.0 }
 0xe31   :  { %2623 = vadd.xlane.f32.xlu0 %v2622_v1  ;;  %v5485_v1 = vld [vmem:[%s8578_s13 + $0x118] sm:$0xf] }
 0xe9c   :  { %v2621_v2 = vpop.xlane.xlu0 %2620 }
 0xe9d   :  { %v2625_v13 = vmul.f32 %v2621_v2, %v7034_v17  ;;  %v6539_v2 = vld [vmem:[%s8578_s13 + $0x154] sm:$0xf0] }
 0xe9f   :  { %v7829_v8 = vsub.f32 %v2613_v63, %v2625_v13  ;;  %v6538_v63 = vld [vmem:[%s8578_s13 + $0x14c] sm:$0xf0] }
 0xea0   :  { %v5478_v35 = vor.u32 %v6538_v63, %v5477_v22  ;;  %v6569_v22 = vld [vmem:[%s8580_s15 + $0x5c8] sm:$0xff]  ;;  %v6568_v63 = vld [vmem:[%s8580_s15 + $0x5c0] sm:$0xff] }
 0xea1   :  { %v2629_v9 = vmul.f32 %v7829_v8, %v7829_v8 }
 0xea2   :  { %2935 = vmatpush.bf16.msra.mxu2 %v5478_v35  ;;  %v6545_v35 = vld [vmem:[%s8580_s15 + $0x508] sm:$0xff] }
 0xea3   :  { %v2631_v19 = vsel %vm237_vm8, %v2629_v9, 0.0  ;;  %v5486_v9 = vor.u32 %v6539_v2, %v5485_v1  ;;  %v6526_v1 = vld [vmem:[%s8580_s15 + $0x4b0] sm:$0xff] }
 0xea4   :  { %2632 = vadd.xlane.f32.xlu0 %v2631_v19  ;;  %v2624_v56 = vpop.xlane.xlu0 %2623  ;;  %v6537_v19 = vld [vmem:[%s8578_s13 + $0x11c] sm:$0xf]  ;;  %v6534_v2 = vld [vmem:[%s8580_s15 + $0x4f0] sm:$0xff] }
 0xea5   :  { %v2626_v10 = vmul.f32 %v2624_v56, %v7034_v17  ;;  %v5487_v56 = vld [vmem:[%s8578_s13 + $0x158] sm:$0xf0]  ;;  %2963 = vmatpush.bf16.msrb.mxu0 %v5486_v9  ;;  %v6552_v9 = vld [vmem:[%s8580_s15 + $0x540] sm:$0xff] }
 0xea7   :  { %v7835_v11 = vsub.f32 %v2614_v34, %v2626_v10  ;;  %v5479_v34 = vld [vmem:[%s8578_s13 + $0x150] sm:$0xf0] }
 0xea8   :  { %v5482_v13 = vor.u32 %v6536_v62, %v5479_v34  ;;  %v6527_v62 = vld [vmem:[%s8580_s15 + $0x4b8] sm:$0xff]  ;;  %v6553_v34 = vld [vmem:[%s8580_s15 + $0x548] sm:$0xff] }
 0xea9   :  { %v2630_v3 = vmul.f32 %v7835_v11, %v7835_v11 }
 0xeaa   :  { %2949 = vmatpush.bf16.msra.mxu3 %v5482_v13  ;;  %v6544_v13 = vld [vmem:[%s8580_s15 + $0x500] sm:$0xff] }
 0xeab   :  { %v2634_v14 = vsel %vm237_vm8, %v2630_v3, 0.0  ;;  %v5490_v3 = vor.u32 %v6537_v19, %v5487_v56  ;;  %v6511_v19 = vld [vmem:[%s8580_s15 + $0x438] sm:$0xff] }
 0xeac   :  { %2635 = vadd.xlane.f32.xlu2 %v2634_v14  ;;  %v6519_v56 = vld [vmem:[%s8580_s15 + $0x478] sm:$0xff] }
 0xead   :  { %2977 = vmatpush.bf16.msrb.mxu1 %v5490_v3  ;;  %v6533_v3 = vld [vmem:[%s8580_s15 + $0x4e8] sm:$0xff] }
 0xf17   :  { %v2633_v24 = vpop.xlane.xlu0 %2632 }
 0xf18   :  { %v2637_v38 = vmul.f32 %v2633_v24, %v7034_v17 }
 0xf1a   :  { %v7874_v43 = vadd.f32 1e-05, %v2637_v38  ;;  %v6678_v38 = vld [vmem:[%s8577_s12 + $0x1] ss:$0 sm:$0xff] }
 0xf1c   :  { %6726 = vrsqrt.f32 %v7874_v43  ;;  %vm2647_vm2 = vweird.f32 %v7874_v43 }
 0xf1f   :  { %v2636_v30 = vpop.xlane.xlu2 %2635 }
 0xf20   :  { %v2638_v57 = vmul.f32 %v2636_v30, %v7034_v17  ;;  %v6564_v30 = vld [vmem:[%s8580_s15 + $0x5a0] sm:$0xff] }
 0xf22   :  { %v6727_v60 = vpop.eup %6726  ;;  %v2640_v58 = vadd.f32 1e-05, %v2638_v57  ;;  %v6563_v57 = vld [vmem:[%s8580_s15 + $0x598] sm:$0xff] }
 0xf23   :  { %v2642_v0 = vmul.f32 %v6727_v60, %v7874_v43  ;;  %vm2648_vm1 = vweird.f32 %v6727_v60 }
 0xf24   :  { %6728 = vrsqrt.f32 %v2640_v58  ;;  %vm2649_vm3 = vmor %vm2647_vm2, %vm2648_vm1  ;;  %vm2657_vm5 = vweird.f32 %v2640_v58 }
 0xf25   :  { %v2643_v10 = vmul.f32 %v6727_v60, %v2642_v0  ;;  %v6535_v0 = vld [vmem:[%s8580_s15 + $0x4f8] sm:$0xff] }
 0xf27   :  { %v2644_v14 = vmul.f32 0.5, %v2643_v10  ;;  %v6525_v10 = vld [vmem:[%s8580_s15 + $0x4a8] sm:$0xff] }
 0xf29   :  { %v2645_v16 = vsub.f32 1.5, %v2644_v14  ;;  %v6510_v14 = vld [vmem:[%s8580_s15 + $0x430] sm:$0xff] }
 0xf2a   :  { %v6729_v26 = vpop.eup %6728 }
 0xf2b   :  { %v2646_v27 = vmul.f32 %v6727_v60, %v2645_v16  ;;  %v2652_v20 = vmul.f32 %v6729_v26, %v2640_v58  ;;  %vm2658_vm4 = vweird.f32 %v6729_v26  ;;  %v6554_v58 = vld [vmem:[%s8580_s15 + $0x550] sm:$0xff] }
 0xf2c   :  { %vm2659_vm6 = vmor %vm2657_vm5, %vm2658_vm4  ;;  %v6518_v16 = vld [vmem:[%s8580_s15 + $0x470] sm:$0xff] }
 0xf2d   :  { %v2653_v61 = vmul.f32 %v6729_v26, %v2652_v20  ;;  %v2650_v21 = vsel %vm2649_vm3, %v6727_v60, %v2646_v27  ;;  %v6546_v60 = vld [vmem:[%s8580_s15 + $0x510] sm:$0xff]  ;;  %v6532_v27 = vld [vmem:[%s8580_s15 + $0x4e0] sm:$0xff]  ;;  %v6509_v20 = vld [vmem:[%s8580_s15 + $0x428] sm:$0xff] }
 0xf2e   :  { %v2661_v28 = vmul.f32 %v2650_v21, %v7829_v8  ;;  %v6567_v8 = vld [vmem:[%s8580_s15 + $0x5b8] sm:$0xff] }
 0xf2f   :  { %v2654_v18 = vmul.f32 0.5, %v2653_v61  ;;  %v6517_v61 = vld [vmem:[%s8580_s15 + $0x468] sm:$0xff]  ;;  %v6523_v21 = vld [vmem:[%s8580_s15 + $0x498] sm:$0xff] }
 0xf30   :  { %v2666_v40 = vmul.f32 %v6677_v25, %v2661_v28  ;;  %v6508_v28 = vld [vmem:[%s8580_s15 + $0x420] sm:$0xff] }
 0xf31   :  { %v2655_v24 = vsub.f32 1.5, %v2654_v18  ;;  %v6531_v18 = vld [vmem:[%s8580_s15 + $0x4d8] sm:$0xff] }
 0xf32   :  { %v7951_v42 = vadd.f32 %v6678_v38, %v2666_v40  ;;  %v6507_v40 = vld [vmem:[%s8580_s15 + $0x418] sm:$0xff] }
 0xf33   :  { %v2656_v59 = vmul.f32 %v6729_v26, %v2655_v24 }
 0xf35   :  { %v2660_v31 = vsel %vm2659_vm6, %v6729_v26, %v2656_v59  ;;  %v6524_v26 = vld [vmem:[%s8580_s15 + $0x4a0] sm:$0xff] }
 0xf36   :  { %v2662_v41 = vmul.f32 %v2660_v31, %v7835_v11  ;;  %v6551_v11 = vld [vmem:[%s8580_s15 + $0x538] sm:$0xff]  ;;  %v6516_v59 = vld [vmem:[%s8580_s15 + $0x460] sm:$0xff]  ;;  %v6522_v31 = vld [vmem:[%s8580_s15 + $0x490] sm:$0xff] }
 0xf38   :  { %v2667_v54 = vmul.f32 %v6677_v25, %v2662_v41  ;;  %v6515_v41 = vld [vmem:[%s8580_s15 + $0x458] sm:$0xff] }
 0xf3a   :  { %v7953_v43 = vadd.f32 %v6678_v38, %v2667_v54  ;;  %v6530_v38 = vld [vmem:[%s8580_s15 + $0x4d0] sm:$0xff]  ;;  %v6521_v54 = vld [vmem:[%s8580_s15 + $0x488] sm:$0xff] }
 0xf3c   :  { %v7957_v45 = vpack.c.bf16 %v7953_v43, %v7951_v42 }
 0xf3e   :  { %5398 = vmatmul.msk.bf16.vlgmr.msrb.gmra.mxu2 %vm237_vm8, %v7957_v45  ;;  %5399 = vmatmul.msk.bf16.vlgmr.msrb.gmra.mxu3 %vm237_vm8, %v7957_v45 }
 0xf3f   :  { %5400 = vmatmul.msk.bf16.vlgmr.msra.gmra.mxu0 %vm237_vm8, %v7957_v45  ;;  %5401 = vmatmul.msk.bf16.vlgmr.msra.gmra.mxu1 %vm237_vm8, %v7957_v45 }
 0xf40   :  { %3280 = vmatpush.bf16.msra.mxu0 %v6567_v8  ;;  %3294 = vmatpush.bf16.msra.mxu1 %v6575_v4 }
 0xf41   :  { %3252 = vmatpush.bf16.msrb.mxu2 %v6551_v11  ;;  %3266 = vmatpush.bf16.msrb.mxu3 %v6559_v5  ;;  %v6529_v11 = vld [vmem:[%s8580_s15 + $0x4c8] sm:$0xff]  ;;  %v6506_v5 = vld [vmem:[%s8580_s15 + $0x410] sm:$0xff] }
 0xf44   :  { %3281 = vmatpush.bf16.msra.mxu0 %v6566_v12  ;;  %3295 = vmatpush.bf16.msra.mxu1 %v6574_v46  ;;  %v6514_v12 = vld [vmem:[%s8580_s15 + $0x450] sm:$0xff] }
 0xf45   :  { %3253 = vmatpush.bf16.msrb.mxu2 %v6550_v47  ;;  %3267 = vmatpush.bf16.msrb.mxu3 %v6558_v48  ;;  %v6520_v48 = vld [vmem:[%s8580_s15 + $0x480] sm:$0xff] }
 0xf48   :  { %3282 = vmatpush.bf16.msra.mxu0 %v6565_v49  ;;  %3296 = vmatpush.bf16.msra.mxu1 %v6573_v50  ;;  %v6528_v49 = vld [vmem:[%s8580_s15 + $0x4c0] sm:$0xff]  ;;  %v6505_v50 = vld [vmem:[%s8580_s15 + $0x408] sm:$0xff] }
 0xf49   :  { %3254 = vmatpush.bf16.msrb.mxu2 %v6549_v39  ;;  %3268 = vmatpush.bf16.msrb.mxu3 %v6557_v51  ;;  %v6504_v51 = vld [vmem:[%s8580_s15 + $0x400] sm:$0xff] }
 0xf4c   :  { %3283 = vmatpush.bf16.msra.mxu0 %v6564_v30  ;;  %3297 = vmatpush.bf16.msra.mxu1 %v6572_v44  ;;  %v6513_v30 = vld [vmem:[%s8580_s15 + $0x448] sm:$0xff] }
 0xf4d   :  { %3255 = vmatpush.bf16.msrb.mxu2 %v6548_v32  ;;  %3269 = vmatpush.bf16.msrb.mxu3 %v6556_v6 }
 0xf4e   :  { %5507 = vmatmul.msk.bf16.vlgmr.msra.gmra.mxu2 %vm237_vm8, %v7957_v45  ;;  %5508 = vmatmul.msk.bf16.vlgmr.msra.gmra.mxu3 %vm237_vm8, %v7957_v45 }
 0xf4f   :  { %5509 = vmatmul.msk.bf16.vlgmr.msrb.gmra.mxu0 %vm237_vm8, %v7957_v45  ;;  %5510 = vmatmul.msk.bf16.vlgmr.msrb.gmra.mxu1 %vm237_vm8, %v7957_v45 }
 0xf50   :  { %3284 = vmatpush.bf16.msra.mxu0 %v6563_v57  ;;  %3298 = vmatpush.bf16.msra.mxu1 %v6571_v52  ;;  %v6512_v57 = vld [vmem:[%s8580_s15 + $0x440] sm:$0xff]  ;;  %v5474_v52 = vld [vmem:[%s8579_s14 + $0x14] sm:$0xf] }
 0xf51   :  { %3256 = vmatpush.bf16.msrb.mxu2 %v6547_v53  ;;  %3270 = vmatpush.bf16.msrb.mxu3 %v6555_v7 }
 0xf54   :  { %3285 = vmatpush.bf16.msra.mxu0 %v6562_v37  ;;  %3299 = vmatpush.bf16.msra.mxu1 %v6570_v36  ;;  %v2882_v37 = vperm.slane %v5474_v52, 2  ;;  %v2883_v36 = vperm.slane %v5474_v52, 3 }
 0xf55   :  { %3257 = vmatpush.bf16.msrb.mxu2 %v6546_v60  ;;  %3271 = vmatpush.bf16.msrb.mxu3 %v6554_v58  ;;  %v2880_v60 = vperm.slane %v5474_v52, 0  ;;  %v2881_v58 = vperm.slane %v5474_v52, 1 }
 0xf58   :  { %3286 = vmatpush.bf16.msra.mxu0 %v6561_v55  ;;  %3300 = vmatpush.bf16.msra.mxu1 %v6569_v22 }
 0xf59   :  { %3258 = vmatpush.bf16.msrb.mxu2 %v6545_v35  ;;  %3272 = vmatpush.bf16.msrb.mxu3 %v6553_v34  ;;  %v6583_v34 = vld [vmem:[%s8578_s13 + $0x1e4] sm:$0xf0] }
 0xf5c   :  { %3287 = vmatpush.bf16.msra.mxu0 %v6560_v23  ;;  %3301 = vmatpush.bf16.msra.mxu1 %v6568_v63 }
 0xf5d   :  { %3259 = vmatpush.bf16.msrb.mxu2 %v6544_v13  ;;  %3273 = vmatpush.bf16.msrb.mxu3 %v6552_v9 }
 0xf60   :  { %3528 = vmatpush.bf16.msrb.mxu0 %v6527_v62  ;;  %3542 = vmatpush.bf16.msrb.mxu1 %v6535_v0  ;;  %v5866_v62 = vld [vmem:[%s8578_s13 + $0x1a8] sm:$0xf] }
 0xf61   :  { %3500 = vmatpush.bf16.msra.mxu2 %v6511_v19  ;;  %3514 = vmatpush.bf16.msra.mxu3 %v6519_v56 }
 0xf64   :  { %3529 = vmatpush.bf16.msrb.mxu0 %v6526_v1  ;;  %3543 = vmatpush.bf16.msrb.mxu1 %v6534_v2  ;;  %v6581_v1 = vld [vmem:[%s8578_s13 + $0x1ac] sm:$0xf] }
 0xf65   :  { %3501 = vmatpush.bf16.msra.mxu2 %v6510_v14  ;;  %3515 = vmatpush.bf16.msra.mxu3 %v6518_v16  ;;  %v5868_v2 = vld [vmem:[%s8578_s13 + $0x1e8] sm:$0xf0]  ;;  %v5867_v14 = vor.u32 %v6583_v34, %v5866_v62 }
 0xf66   :  { %v5871_v16 = vor.u32 %v6581_v1, %v5868_v2 }
 0xf68   :  { %3530 = vmatpush.bf16.msrb.mxu0 %v6525_v10  ;;  %3544 = vmatpush.bf16.msrb.mxu1 %v6533_v3 }
 0xf69   :  { %3502 = vmatpush.bf16.msra.mxu2 %v6509_v20  ;;  %3516 = vmatpush.bf16.msra.mxu3 %v6517_v61 }
 0xf6c   :  { %3531 = vmatpush.bf16.msrb.mxu0 %v6524_v26  ;;  %3545 = vmatpush.bf16.msrb.mxu1 %v6532_v27  ;;  %v5365_v26 = vld [vmem:[%s8579_s14 + $0x10] sm:$0xf] }
 0xf6d   :  { %3503 = vmatpush.bf16.msra.mxu2 %v6508_v28  ;;  %3517 = vmatpush.bf16.msra.mxu3 %v6516_v59  ;;  %v6579_v28 = vld [vmem:[%s8578_s13 + $0x164] sm:$0xf0]  ;;  %v2687_v34 = vperm.slane %v5365_v26, 1 }
 0xf70   :  { %3532 = vmatpush.bf16.msrb.mxu0 %v6523_v21  ;;  %3546 = vmatpush.bf16.msrb.mxu1 %v6531_v18  ;;  %v5850_v18 = vld [vmem:[%s8578_s13 + $0x128] sm:$0xf] }
 0xf71   :  { %3504 = vmatpush.bf16.msra.mxu2 %v6507_v40  ;;  %3518 = vmatpush.bf16.msra.mxu3 %v6515_v41  ;;  %v5852_v40 = vld [vmem:[%s8578_s13 + $0x168] sm:$0xf0]  ;;  %v5858_v41 = vld [vmem:[%s8578_s13 + $0x1a0] sm:$0xf] }
 0xf74   :  { %3533 = vmatpush.bf16.msrb.mxu0 %v6522_v31  ;;  %3547 = vmatpush.bf16.msrb.mxu1 %v6530_v38  ;;  %v6577_v38 = vld [vmem:[%s8578_s13 + $0x12c] sm:$0xf] }
 0xf75   :  { %3505 = vmatpush.bf16.msra.mxu2 %v6506_v5  ;;  %3519 = vmatpush.bf16.msra.mxu3 %v6514_v12  ;;  %v5860_v5 = vld [vmem:[%s8578_s13 + $0x1e0] sm:$0xf0]  ;;  %v5855_v52 = vor.u32 %v6577_v38, %v5852_v40  ;;  %v6598_v38 = vld [vmem:[%s8580_s15 + $0x670] sm:$0xff]  ;;  %v6603_v40 = vld [vmem:[%s8580_s15 + $0x698] sm:$0xff] }
 0xf78   :  { %3534 = vmatpush.bf16.msrb.mxu0 %v6521_v54  ;;  %3548 = vmatpush.bf16.msrb.mxu1 %v6529_v11  ;;  %v6582_v54 = vld [vmem:[%s8578_s13 + $0x1dc] sm:$0xf0]  ;;  %v6580_v11 = vld [vmem:[%s8578_s13 + $0x1a4] sm:$0xf] }
 0xf79   :  { %3506 = vmatpush.bf16.msra.mxu2 %v6505_v50  ;;  %3520 = vmatpush.bf16.msra.mxu3 %v6513_v30  ;;  %v2688_v30 = vperm.slane %v5365_v26, 2 }
 0xf7c   :  { %3535 = vmatpush.bf16.msrb.mxu0 %v6520_v48  ;;  %3549 = vmatpush.bf16.msrb.mxu1 %v6528_v49 }
 0xf7d   :  { %3507 = vmatpush.bf16.msra.mxu2 %v6504_v51  ;;  %3521 = vmatpush.bf16.msra.mxu3 %v6512_v57  ;;  %v2689_v51 = vperm.slane %v5365_v26, 3  ;;  %v5851_v57 = vor.u32 %v6579_v28, %v5850_v18  ;;  %v6599_v18 = vld [vmem:[%s8580_s15 + $0x678] sm:$0xff]  ;;  %v6604_v28 = vld [vmem:[%s8580_s15 + $0x6a0] sm:$0xff] }
 0xfbc   :  { %v8119_v24 = vpop.f32.mrf.mxu0  ;;  %v8121_v25 = vpop.f32.mrf.mxu1 }
 0xfbd   :  { %v2775_v62 = vadd.f32 %v8119_v24, %v2688_v30 }
 0xfc1   :  { %v8144_v8 = vpop.f32.mrf.mxu2  ;;  %v8146_v4 = vpop.f32.mrf.mxu3 }
 0xfc4   :  { %v8157_v46 = vpop.f32.mrf.mxu0  ;;  %v8159_v47 = vpop.f32.mrf.mxu1 }
 0xfc9   :  { %v8173_v44 = vpop.f32.mrf.mxu2  ;;  %v8175_v39 = vpop.f32.mrf.mxu3 }
 0xfcc   :  { %v2965_v32 = vpop.f32.mrf.mxu0  ;;  %v2979_v6 = vpop.f32.mrf.mxu1 }
 0xfcd   :  { %v2966_v55 = vadd.f32 %v2965_v32, %v2882_v37  ;;  %v2980_v22 = vadd.f32 %v2979_v6, %v2883_v36 }
 0xfcf   :  { %v2986_v13 = vmax.f32 %v2966_v55, 0.0  ;;  %v2987_v9 = vmax.f32 %v2980_v22, 0.0  ;;  %v6576_v55 = vld [vmem:[%s8578_s13 + $0x124] sm:$0xf] }
 0xfd0   :  { %v5844_v22 = vld [vmem:[%s8578_s13 + $0x160] sm:$0xf0] }
 0xfd1   :  { %v2937_v53 = vpop.f32.mrf.mxu2  ;;  %v2951_v7 = vpop.f32.mrf.mxu3 }
 0xfd2   :  { %v2938_v10 = vadd.f32 %v2937_v53, %v2880_v60  ;;  %v2952_v3 = vadd.f32 %v2951_v7, %v2881_v58  ;;  %v5842_v53 = vld [vmem:[%s8578_s13 + $0x120] sm:$0xf] }
 0xfd3   :  { %v6578_v7 = vld [vmem:[%s8578_s13 + $0x15c] sm:$0xf0] }
 0xfd4   :  { %v2967_v23 = vpop.f32.mrf.mxu0  ;;  %v2981_v63 = vpop.f32.mrf.mxu1  ;;  %v2984_v12 = vmax.f32 %v2938_v10, 0.0  ;;  %v2985_v48 = vmax.f32 %v2952_v3, 0.0 }
 0xfd5   :  { %v2968_v0 = vadd.f32 %v2967_v23, %v2882_v37  ;;  %v2982_v35 = vadd.f32 %v2981_v63, %v2883_v36  ;;  %v5859_v37 = vor.u32 %v6582_v54, %v5858_v41  ;;  %v5863_v36 = vor.u32 %v6580_v11, %v5860_v5  ;;  %v6611_v41 = vld [vmem:[%s8580_s15 + $0x6d8] sm:$0xff]  ;;  %v6589_v5 = vld [vmem:[%s8580_s15 + $0x628] sm:$0xff] }
 0xfd6   :  { %v5843_v23 = vor.u32 %v6578_v7, %v5842_v53  ;;  %v5847_v63 = vor.u32 %v6576_v55, %v5844_v22  ;;  %v6608_v55 = vld [vmem:[%s8580_s15 + $0x6c0] sm:$0xff] }
 0xfd7   :  { %v2990_v19 = vmax.f32 %v2968_v0, 0.0  ;;  %v2991_v56 = vmax.f32 %v2982_v35, 0.0  ;;  %v2789_v0 = vadd.f32 %v8121_v25, %v2689_v51  ;;  %v2686_v35 = vperm.slane %v5365_v26, 0 }
 0xfd9   :  { %v2994_v27 = vpack.c.bf16 %v2990_v19, %v2986_v13  ;;  %v2995_v20 = vpack.c.bf16 %v2991_v56, %v2987_v9  ;;  %v2939_v61 = vpop.f32.mrf.mxu2  ;;  %v2953_v21 = vpop.f32.mrf.mxu3  ;;  %v2749_v13 = vadd.f32 %v8173_v44, %v2686_v35  ;;  %v2796_v9 = vmax.f32 %v2789_v0, 0.0 }
 0xfda   :  { %v2940_v59 = vadd.f32 %v2939_v61, %v2880_v60  ;;  %v2954_v31 = vadd.f32 %v2953_v21, %v2881_v58  ;;  %v2777_v60 = vadd.f32 %v8157_v46, %v2688_v30  ;;  %v2791_v58 = vadd.f32 %v8159_v47, %v2689_v51  ;;  %v6613_v61 = vld [vmem:[%s8580_s15 + $0x6e8] sm:$0xff]  ;;  %v6591_v21 = vld [vmem:[%s8580_s15 + $0x638] sm:$0xff]  ;;  %v6596_v30 = vld [vmem:[%s8580_s15 + $0x660] sm:$0xff] }
 0xfdb   :  { %3288 = vmatmul.bf16.vlgmr.msra.gmra.mxu0 %v2994_v27  ;;  %3302 = vmatmul.bf16.vlgmr.msra.gmra.mxu1 %v2995_v20  ;;  %v2763_v46 = vadd.f32 %v8175_v39, %v2687_v34  ;;  %v2795_v47 = vmax.f32 %v2775_v62, 0.0  ;;  %v2747_v19 = vadd.f32 %v8144_v8, %v2686_v35  ;;  %v2761_v56 = vadd.f32 %v8146_v4, %v2687_v34  ;;  %v6607_v8 = vld [vmem:[%s8580_s15 + $0x6b8] sm:$0xff]  ;;  %v6606_v39 = vld [vmem:[%s8580_s15 + $0x6b0] sm:$0xff]  ;;  %v6605_v20 = vld [vmem:[%s8580_s15 + $0x6a8] sm:$0xff] }
 0xfdc   :  { %v2988_v49 = vmax.f32 %v2940_v59, 0.0  ;;  %v2989_v50 = vmax.f32 %v2954_v31, 0.0  ;;  %3648 = vmatpush.bf16.msra.mxu0 %v5867_v14  ;;  %3662 = vmatpush.bf16.msra.mxu1 %v5871_v16  ;;  %v2799_v1 = vmax.f32 %v2777_v60, 0.0  ;;  %v2800_v2 = vmax.f32 %v2791_v58, 0.0  ;;  %v6615_v4 = vld [vmem:[%s8580_s15 + $0x6f8] sm:$0xff]  ;;  %v6614_v27 = vld [vmem:[%s8580_s15 + $0x6f0] sm:$0xff] }
 0xfdd   :  { %v2797_v3 = vmax.f32 %v2749_v13, 0.0  ;;  %v2798_v25 = vmax.f32 %v2763_v46, 0.0  ;;  %v2793_v14 = vmax.f32 %v2747_v19, 0.0  ;;  %v2794_v16 = vmax.f32 %v2761_v56, 0.0  ;;  %v6612_v59 = vld [vmem:[%s8580_s15 + $0x6e0] sm:$0xff]  ;;  %v6590_v31 = vld [vmem:[%s8580_s15 + $0x630] sm:$0xff] }
 0xfde   :  { %v2992_v32 = vpack.c.bf16 %v2988_v49, %v2984_v12  ;;  %v2993_v6 = vpack.c.bf16 %v2989_v50, %v2985_v48  ;;  %v2803_v10 = vpack.c.bf16 %v2799_v1, %v2795_v47  ;;  %v2804_v24 = vpack.c.bf16 %v2800_v2, %v2796_v9  ;;  %v6597_v12 = vld [vmem:[%s8580_s15 + $0x668] sm:$0xff]  ;;  %v6602_v48 = vld [vmem:[%s8580_s15 + $0x690] sm:$0xff]  ;;  %v6588_v50 = vld [vmem:[%s8580_s15 + $0x620] sm:$0xff] }
 0xfdf   :  { %v2801_v26 = vpack.c.bf16 %v2797_v3, %v2793_v14  ;;  %v2802_v44 = vpack.c.bf16 %v2798_v25, %v2794_v16  ;;  %v6610_v49 = vld [vmem:[%s8580_s15 + $0x6d0] sm:$0xff]  ;;  %v6601_v51 = vld [vmem:[%s8580_s15 + $0x688] sm:$0xff]  ;;  %v6103_v46 = vld [vmem:[%s8578_s13 + $0x1b8] sm:$0xf] }
 0xfe0   :  { %3260 = vmatmul.bf16.vlgmr.msrb.gmra.mxu2 %v2992_v32  ;;  %3274 = vmatmul.bf16.vlgmr.msrb.gmra.mxu3 %v2993_v6  ;;  %v6587_v6 = vld [vmem:[%s8580_s15 + $0x618] sm:$0xff]  ;;  %v6586_v58 = vld [vmem:[%s8580_s15 + $0x610] sm:$0xff]  ;;  %v6585_v35 = vld [vmem:[%s8580_s15 + $0x608] sm:$0xff] }
 0xfe1   :  { %3649 = vmatpush.bf16.msra.mxu0 %v5851_v57  ;;  %3663 = vmatpush.bf16.msra.mxu1 %v5855_v52  ;;  %v6609_v57 = vld [vmem:[%s8580_s15 + $0x6c8] sm:$0xff]  ;;  %v6623_v47 = vld [vmem:[%s8578_s13 + $0x1f4] sm:$0xf0]  ;;  %v6621_v9 = vld [vmem:[%s8578_s13 + $0x1bc] sm:$0xf] }
 0xfe2   :  { %3620 = vmatpush.bf16.msrb.mxu2 %v5859_v37  ;;  %3634 = vmatpush.bf16.msrb.mxu3 %v5863_v36  ;;  %v6595_v37 = vld [vmem:[%s8580_s15 + $0x658] sm:$0xff]  ;;  %v6600_v36 = vld [vmem:[%s8580_s15 + $0x680] sm:$0xff]  ;;  %v6593_v34 = vld [vmem:[%s8580_s15 + $0x648] sm:$0xff] }
 0xfe3   :  { %v6584_v56 = vld [vmem:[%s8580_s15 + $0x600] sm:$0xff]  ;;  %v6105_v3 = vld [vmem:[%s8578_s13 + $0x1f8] sm:$0xf0] }
 0xfe4   :  { %v6108_v25 = vor.u32 %v6621_v9, %v6105_v3 }
 0xfe6   :  { %3621 = vmatpush.bf16.msrb.mxu2 %v5843_v23  ;;  %3635 = vmatpush.bf16.msrb.mxu3 %v5847_v63  ;;  %v6594_v23 = vld [vmem:[%s8580_s15 + $0x650] sm:$0xff] }
 0xfeb   :  { %3536 = vmatmul.bf16.vlgmr.msrb.gmra.mxu0 %v2803_v10  ;;  %3550 = vmatmul.bf16.vlgmr.msrb.gmra.mxu1 %v2804_v24  ;;  %v6592_v10 = vld [vmem:[%s8580_s15 + $0x640] sm:$0xff]  ;;  %v6104_v24 = vor.u32 %v6623_v47, %v6103_v46 }
 0xfec   :  { %3966 = vmatpush.bf16.msrb.mxu0 %v6607_v8  ;;  %3980 = vmatpush.bf16.msrb.mxu1 %v6615_v4  ;;  %v6619_v8 = vld [vmem:[%s8578_s13 + $0x174] sm:$0xf0]  ;;  %v6617_v4 = vld [vmem:[%s8578_s13 + $0x13c] sm:$0xf] }
 0xff0   :  { %3508 = vmatmul.bf16.vlgmr.msra.gmra.mxu2 %v2801_v26  ;;  %3522 = vmatmul.bf16.vlgmr.msra.gmra.mxu3 %v2802_v44  ;;  %v6087_v44 = vld [vmem:[%s8578_s13 + $0x138] sm:$0xf] }
 0xff1   :  { %3967 = vmatpush.bf16.msrb.mxu0 %v6606_v39  ;;  %3981 = vmatpush.bf16.msrb.mxu1 %v6614_v27  ;;  %v6088_v39 = vor.u32 %v6619_v8, %v6087_v44  ;;  %v6089_v27 = vld [vmem:[%s8578_s13 + $0x178] sm:$0xf0] }
 0xff2   :  { %3938 = vmatpush.bf16.msra.mxu2 %v6591_v21  ;;  %3952 = vmatpush.bf16.msra.mxu3 %v6599_v18  ;;  %v6092_v21 = vor.u32 %v6617_v4, %v6089_v27 }
 0xff5   :  { %3968 = vmatpush.bf16.msrb.mxu0 %v6605_v20  ;;  %3982 = vmatpush.bf16.msrb.mxu1 %v6613_v61 }
 0xff6   :  { %3939 = vmatpush.bf16.msra.mxu2 %v6590_v31  ;;  %3953 = vmatpush.bf16.msra.mxu3 %v6598_v38  ;;  %v6095_v31 = vld [vmem:[%s8578_s13 + $0x1b0] sm:$0xf] }
 0xff7   :  { %v6622_v38 = vld [vmem:[%s8578_s13 + $0x1ec] sm:$0xf0] }
 0xff9   :  { %3969 = vmatpush.bf16.msrb.mxu0 %v6604_v28  ;;  %3983 = vmatpush.bf16.msrb.mxu1 %v6612_v59  ;;  %v5839_v59 = vld [vmem:[%s8579_s14 + $0x18] sm:$0xf] }
 0xffa   :  { %3940 = vmatpush.bf16.msra.mxu2 %v6589_v5  ;;  %3954 = vmatpush.bf16.msra.mxu3 %v6597_v12  ;;  %v6096_v5 = vor.u32 %v6622_v38, %v6095_v31  ;;  %v6097_v12 = vld [vmem:[%s8578_s13 + $0x1f0] sm:$0xf0]  ;;  %v6644_v31 = vld [vmem:[%s8580_s15 + $0x7a0] sm:$0xff] }
 0xffb   :  { %5874 = vmatmul.msk.bf16.vlgmr.msra.gmra.mxu0 %vm237_vm8, %v7957_v45  ;;  %5875 = vmatmul.msk.bf16.vlgmr.msra.gmra.mxu1 %vm237_vm8, %v7957_v45  ;;  %v6652_v38 = vld [vmem:[%s8580_s15 + $0x7e0] sm:$0xff] }
 0xffd   :  { %3970 = vmatpush.bf16.msrb.mxu0 %v6603_v40  ;;  %3984 = vmatpush.bf16.msrb.mxu1 %v6611_v41  ;;  %v6620_v40 = vld [vmem:[%s8578_s13 + $0x1b4] sm:$0xf] }
 0xffe   :  { %3941 = vmatpush.bf16.msra.mxu2 %v6588_v50  ;;  %3955 = vmatpush.bf16.msra.mxu3 %v6596_v30  ;;  %v6100_v50 = vor.u32 %v6620_v40, %v6097_v12  ;;  %v6616_v30 = vld [vmem:[%s8578_s13 + $0x134] sm:$0xf]  ;;  %v6643_v40 = vld [vmem:[%s8580_s15 + $0x798] sm:$0xff] }
 0xfff   :  { %v6650_v12 = vld [vmem:[%s8580_s15 + $0x7d0] sm:$0xff] }
0x1000   :  { %5872 = vmatmul.msk.bf16.vlgmr.msrb.gmra.mxu2 %vm237_vm8, %v7957_v45  ;;  %5873 = vmatmul.msk.bf16.vlgmr.msrb.gmra.mxu3 %vm237_vm8, %v7957_v45 }
0x1001   :  { %3971 = vmatpush.bf16.msrb.mxu0 %v6602_v48  ;;  %3985 = vmatpush.bf16.msrb.mxu1 %v6610_v49  ;;  %v6079_v48 = vld [vmem:[%s8578_s13 + $0x130] sm:$0xf] }
0x1002   :  { %3942 = vmatpush.bf16.msra.mxu2 %v6587_v6  ;;  %3956 = vmatpush.bf16.msra.mxu3 %v6595_v37  ;;  %v6618_v49 = vld [vmem:[%s8578_s13 + $0x16c] sm:$0xf0]  ;;  %v3569_v6 = vperm.slane %v5839_v59, 3 }
0x1005   :  { %3972 = vmatpush.bf16.msrb.mxu0 %v6601_v51  ;;  %3986 = vmatpush.bf16.msrb.mxu1 %v6609_v57  ;;  %v6081_v51 = vld [vmem:[%s8578_s13 + $0x170] sm:$0xf0] }
0x1006   :  { %3943 = vmatpush.bf16.msra.mxu2 %v6586_v58  ;;  %3957 = vmatpush.bf16.msra.mxu3 %v6594_v23 }
0x1009   :  { %3973 = vmatpush.bf16.msrb.mxu0 %v6600_v36  ;;  %3987 = vmatpush.bf16.msrb.mxu1 %v6608_v55 }
0x100a   :  { %3944 = vmatpush.bf16.msra.mxu2 %v6585_v35  ;;  %3958 = vmatpush.bf16.msra.mxu3 %v6593_v34 }
0x100d   :  { %4088 = vmatpush.bf16.msra.mxu0 %v6104_v24  ;;  %4102 = vmatpush.bf16.msra.mxu1 %v6108_v25 }
0x100e   :  { %3945 = vmatpush.bf16.msra.mxu2 %v6584_v56  ;;  %3959 = vmatpush.bf16.msra.mxu3 %v6592_v10  ;;  %v3566_v56 = vperm.slane %v5839_v59, 0  ;;  %v3567_v10 = vperm.slane %v5839_v59, 1 }
0x1011   :  { %4089 = vmatpush.bf16.msra.mxu0 %v6088_v39  ;;  %4103 = vmatpush.bf16.msra.mxu1 %v6092_v21  ;;  %v6655_v21 = vld [vmem:[%s8580_s15 + $0x7f8] sm:$0xff] }
0x1012   :  { %4060 = vmatpush.bf16.msrb.mxu2 %v6096_v5  ;;  %4074 = vmatpush.bf16.msrb.mxu3 %v6100_v50  ;;  %v6642_v5 = vld [vmem:[%s8580_s15 + $0x790] sm:$0xff]  ;;  %v6641_v50 = vld [vmem:[%s8580_s15 + $0x788] sm:$0xff] }
0x1058   :  { %v3289_v54 = vpop.f32.mrf.mxu0  ;;  %v3303_v11 = vpop.f32.mrf.mxu1 }
0x1060   :  { %v3291_v52 = vpop.f32.mrf.mxu0  ;;  %v3305_v32 = vpop.f32.mrf.mxu1 }
0x1063   :  { %v3261_v53 = vpop.f32.mrf.mxu2  ;;  %v3275_v7 = vpop.f32.mrf.mxu3 }
0x1064   :  { %v3276_v22 = vadd.f32 %v3275_v7, %v3261_v53  ;;  %v6084_v53 = vor.u32 %v6616_v30, %v6081_v51  ;;  %v6649_v30 = vld [vmem:[%s8580_s15 + $0x7c8] sm:$0xff] }
0x1065   :  { %v6629_v51 = vld [vmem:[%s8580_s15 + $0x728] sm:$0xff] }
0x1066   :  { %v3290_v60 = vadd.f32 %v3289_v54, %v3276_v22  ;;  %4075 = vmatpush.bf16.msrb.mxu3 %v6084_v53 }
0x1068   :  { %v3537_v63 = vpop.f32.mrf.mxu0  ;;  %v3551_v62 = vpop.f32.mrf.mxu1  ;;  %v3304_v0 = vadd.f32 %v3303_v11, %v3290_v60 }
0x106b   :  { %v3263_v1 = vpop.f32.mrf.mxu2  ;;  %v3277_v2 = vpop.f32.mrf.mxu3 }
0x106c   :  { %v3278_v13 = vadd.f32 %v3277_v2, %v3263_v1 }
0x106e   :  { %v3292_v19 = vadd.f32 %v3291_v52, %v3278_v13  ;;  %v6080_v52 = vor.u32 %v6618_v49, %v6079_v48  ;;  %v6630_v48 = vld [vmem:[%s8580_s15 + $0x730] sm:$0xff] }
0x106f   :  { %v6638_v49 = vld [vmem:[%s8580_s15 + $0x770] sm:$0xff] }
0x1070   :  { %v3539_v14 = vpop.f32.mrf.mxu0  ;;  %v3553_v16 = vpop.f32.mrf.mxu1  ;;  %v3306_v26 = vadd.f32 %v3305_v32, %v3292_v19  ;;  %v3568_v32 = vperm.slane %v5839_v59, 2  ;;  %4061 = vmatpush.bf16.msrb.mxu2 %v6080_v52  ;;  %v6653_v59 = vld [vmem:[%s8580_s15 + $0x7e8] sm:$0xff] }
0x1071   :  { %v6637_v52 = vld [vmem:[%s8580_s15 + $0x768] sm:$0xff] }
0x1073   :  { %v3509_v20 = vpop.f32.mrf.mxu2  ;;  %v3523_v61 = vpop.f32.mrf.mxu3 }
0x1074   :  { %v3510_v18 = vadd.f32 %v3509_v20, %v3304_v0 }
0x1076   :  { %v3524_v28 = vadd.f32 %v3523_v61, %v3510_v18  ;;  %v6647_v61 = vld [vmem:[%s8580_s15 + $0x7b8] sm:$0xff]  ;;  %v6646_v18 = vld [vmem:[%s8580_s15 + $0x7b0] sm:$0xff] }
0x1078   :  { %v3538_v41 = vadd.f32 %v3537_v63, %v3524_v28  ;;  %v3651_v54 = vpop.f32.mrf.mxu0  ;;  %v3665_v11 = vpop.f32.mrf.mxu1  ;;  %v6654_v28 = vld [vmem:[%s8580_s15 + $0x7f0] sm:$0xff] }
0x1079   :  { %v3652_v22 = vadd.f32 %v3651_v54, %v3568_v32  ;;  %v3666_v60 = vadd.f32 %v3665_v11, %v3569_v6  ;;  %v6631_v54 = vld [vmem:[%s8580_s15 + $0x738] sm:$0xff] }
0x107a   :  { %v8400_v57 = vadd.f32 %v3551_v62, %v3538_v41  ;;  %v6651_v41 = vld [vmem:[%s8580_s15 + $0x7d8] sm:$0xff] }
0x107b   :  { %v3511_v37 = vpop.f32.mrf.mxu2  ;;  %v3525_v36 = vpop.f32.mrf.mxu3  ;;  %v3672_v34 = vmax.f32 %v3652_v22, 0.0  ;;  %v3673_v1 = vmax.f32 %v3666_v60, 0.0  ;;  %v6639_v11 = vld [vmem:[%s8580_s15 + $0x778] sm:$0xff]  ;;  %v6626_v60 = vld [vmem:[%s8580_s15 + $0x710] sm:$0xff] }
0x107c   :  { %v3512_v7 = vadd.f32 %v3511_v37, %v3306_v26  ;;  %v6628_v37 = vld [vmem:[%s8580_s15 + $0x720] sm:$0xff]  ;;  %v6635_v22 = vld [vmem:[%s8580_s15 + $0x758] sm:$0xff] }
0x107e   :  { %v3526_v55 = vadd.f32 %v3525_v36, %v3512_v7  ;;  %v6636_v36 = vld [vmem:[%s8580_s15 + $0x760] sm:$0xff] }
0x1080   :  { %v3540_v58 = vadd.f32 %v3539_v14, %v3526_v55  ;;  %v3653_v23 = vpop.f32.mrf.mxu0  ;;  %v3667_v63 = vpop.f32.mrf.mxu1  ;;  %v6627_v55 = vld [vmem:[%s8580_s15 + $0x718] sm:$0xff] }
0x1081   :  { %v3654_v0 = vadd.f32 %v3653_v23, %v3568_v32  ;;  %v3668_v62 = vadd.f32 %v3667_v63, %v3569_v6  ;;  %v6640_v32 = vld [vmem:[%s8580_s15 + $0x780] sm:$0xff] }
0x1082   :  { %v8402_v35 = vadd.f32 %v3553_v16, %v3540_v58  ;;  %v6648_v6 = vld [vmem:[%s8580_s15 + $0x7c0] sm:$0xff]  ;;  %v6634_v58 = vld [vmem:[%s8580_s15 + $0x750] sm:$0xff] }
0x1083   :  { %v3676_v2 = vmax.f32 %v3654_v0, 0.0  ;;  %v3677_v13 = vmax.f32 %v3668_v62, 0.0  ;;  %v3623_v46 = vpop.f32.mrf.mxu2  ;;  %v3637_v47 = vpop.f32.mrf.mxu3  ;;  %v6625_v0 = vld [vmem:[%s8580_s15 + $0x708] sm:$0xff] }
0x1084   :  { %v3624_v24 = vadd.f32 %v3623_v46, %v3566_v56  ;;  %v3638_v3 = vadd.f32 %v3637_v47, %v3567_v10  ;;  %v6633_v62 = vld [vmem:[%s8580_s15 + $0x748] sm:$0xff] }
0x1085   :  { %v3680_v9 = vpack.c.bf16 %v3676_v2, %v3672_v34  ;;  %v3681_v19 = vpack.c.bf16 %v3677_v13, %v3673_v1  ;;  %v6624_v34 = vld [vmem:[%s8580_s15 + $0x700] sm:$0xff]  ;;  %v6076_v2 = vld [vmem:[%s8579_s14 + $0x1c] sm:$0xf] }
0x1086   :  { %v3670_v16 = vmax.f32 %v3624_v24, 0.0  ;;  %v3671_v8 = vmax.f32 %v3638_v3, 0.0  ;;  %v6632_v1 = vld [vmem:[%s8580_s15 + $0x740] sm:$0xff] }
0x1087   :  { %3974 = vmatmul.bf16.vlgmr.msrb.gmra.mxu0 %v3680_v9  ;;  %3988 = vmatmul.bf16.vlgmr.msrb.gmra.mxu1 %v3681_v19 }
0x1088   :  { %4406 = vmatpush.bf16.msrb.mxu0 %v6647_v61  ;;  %4420 = vmatpush.bf16.msrb.mxu1 %v6655_v21 }
0x108b   :  { %v3625_v25 = vpop.f32.mrf.mxu2  ;;  %v3639_v14 = vpop.f32.mrf.mxu3 }
0x108c   :  { %v3626_v26 = vadd.f32 %v3625_v25, %v3566_v56  ;;  %v3640_v44 = vadd.f32 %v3639_v14, %v3567_v10  ;;  %4407 = vmatpush.bf16.msrb.mxu0 %v6646_v18  ;;  %4421 = vmatpush.bf16.msrb.mxu1 %v6654_v28  ;;  %v4008_v56 = vperm.slane %v6076_v2, 2  ;;  %v4009_v10 = vperm.slane %v6076_v2, 3 }
0x108e   :  { %v3674_v4 = vmax.f32 %v3626_v26, 0.0  ;;  %v3675_v39 = vmax.f32 %v3640_v44, 0.0 }
0x1090   :  { %v3678_v27 = vpack.c.bf16 %v3674_v4, %v3670_v16  ;;  %v3679_v20 = vpack.c.bf16 %v3675_v39, %v3671_v8  ;;  %4422 = vmatpush.bf16.msrb.mxu1 %v6653_v59 }
0x1092   :  { %3946 = vmatmul.bf16.vlgmr.msra.gmra.mxu2 %v3678_v27  ;;  %3960 = vmatmul.bf16.vlgmr.msra.gmra.mxu3 %v3679_v20 }
0x1093   :  { %4378 = vmatpush.bf16.msra.mxu2 %v6631_v54  ;;  %4392 = vmatpush.bf16.msra.mxu3 %v6639_v11  ;;  %v4006_v54 = vperm.slane %v6076_v2, 0  ;;  %v4007_v11 = vperm.slane %v6076_v2, 1 }
0x1094   :  { %4423 = vmatpush.bf16.msrb.mxu1 %v6652_v38 }
0x1097   :  { %6111 = vmatmul.msk.bf16.vlgmr.msra.gmra.mxu0 %vm237_vm8, %v7957_v45  ;;  %6112 = vmatmul.msk.bf16.vlgmr.msra.gmra.mxu1 %vm237_vm8, %v7957_v45 }
0x1098   :  { %4424 = vmatpush.bf16.msrb.mxu1 %v6651_v41  ;;  %4379 = vmatpush.bf16.msra.mxu2 %v6630_v48 }
0x1099   :  { %4393 = vmatpush.bf16.msra.mxu3 %v6638_v49 }
0x109c   :  { %4425 = vmatpush.bf16.msrb.mxu1 %v6650_v12  ;;  %4380 = vmatpush.bf16.msra.mxu2 %v6629_v51 }
0x109d   :  { %4394 = vmatpush.bf16.msra.mxu3 %v6637_v52 }
0x10a0   :  { %4426 = vmatpush.bf16.msrb.mxu1 %v6649_v30  ;;  %4381 = vmatpush.bf16.msra.mxu2 %v6628_v37 }
0x10a1   :  { %4395 = vmatpush.bf16.msra.mxu3 %v6636_v36 }
0x10a2   :  { %6109 = vmatmul.msk.bf16.vlgmr.msrb.gmra.mxu2 %vm237_vm8, %v7957_v45  ;;  %6110 = vmatmul.msk.bf16.vlgmr.msrb.gmra.mxu3 %vm237_vm8, %v7957_v45  ;;  %v6645_v45 = vld [vmem:[%s8580_s15 + $0x7a8] sm:$0xff] }
0x10a3   :  { %4408 = vmatpush.bf16.msrb.mxu0 %v6645_v45 }
0x10a4   :  { %4427 = vmatpush.bf16.msrb.mxu1 %v6648_v6  ;;  %4382 = vmatpush.bf16.msra.mxu2 %v6627_v55 }
0x10a5   :  { %4396 = vmatpush.bf16.msra.mxu3 %v6635_v22 }
0x10a7   :  { %4409 = vmatpush.bf16.msrb.mxu0 %v6644_v31 }
0x10a8   :  { %4383 = vmatpush.bf16.msra.mxu2 %v6626_v60 }
0x10a9   :  { %4397 = vmatpush.bf16.msra.mxu3 %v6634_v58 }
0x10ab   :  { %4410 = vmatpush.bf16.msrb.mxu0 %v6643_v40 }
0x10ac   :  { %4384 = vmatpush.bf16.msra.mxu2 %v6625_v0 }
0x10ad   :  { %4398 = vmatpush.bf16.msra.mxu3 %v6633_v62 }
0x10af   :  { %4411 = vmatpush.bf16.msrb.mxu0 %v6642_v5 }
0x10b0   :  { %4385 = vmatpush.bf16.msra.mxu2 %v6624_v34 }
0x10b1   :  { %4399 = vmatpush.bf16.msra.mxu3 %v6632_v1 }
0x10b3   :  { %4412 = vmatpush.bf16.msrb.mxu0 %v6641_v50 }
0x10b7   :  { %4413 = vmatpush.bf16.msrb.mxu0 %v6640_v32 }
0x1104   :  { %v3975_v53 = vpop.f32.mrf.mxu0  ;;  %v3989_v7 = vpop.f32.mrf.mxu1 }
0x110c   :  { %v3977_v23 = vpop.f32.mrf.mxu0  ;;  %v3991_v63 = vpop.f32.mrf.mxu1 }
0x1114   :  { %v4091_v13 = vpop.f32.mrf.mxu0  ;;  %v4105_v46 = vpop.f32.mrf.mxu1 }
0x1115   :  { %v3947_v47 = vpop.f32.mrf.mxu2  ;;  %v3961_v9 = vpop.f32.mrf.mxu3  ;;  %v4092_v25 = vadd.f32 %v4091_v13, %v4008_v56  ;;  %v4106_v14 = vadd.f32 %v4105_v46, %v4009_v10 }
0x1116   :  { %v3962_v19 = vadd.f32 %v3961_v9, %v3947_v47 }
0x1117   :  { %v4112_v61 = vmax.f32 %v4092_v25, 0.0  ;;  %v4113_v21 = vmax.f32 %v4106_v14, 0.0 }
0x1118   :  { %v3976_v24 = vadd.f32 %v3975_v53, %v3962_v19 }
0x111a   :  { %v3990_v3 = vadd.f32 %v3989_v7, %v3976_v24 }
0x111c   :  { %v3994_v26 = vadd.f32 %v3990_v3, %v8400_v57  ;;  %v4093_v44 = vpop.f32.mrf.mxu0  ;;  %v4107_v16 = vpop.f32.mrf.mxu1 }
0x111d   :  { %v4094_v8 = vadd.f32 %v4093_v44, %v4008_v56  ;;  %v4108_v4 = vadd.f32 %v4107_v16, %v4009_v10  ;;  %v3949_v39 = vpop.f32.mrf.mxu2  ;;  %v3963_v27 = vpop.f32.mrf.mxu3 }
0x111e   :  { %v3964_v20 = vadd.f32 %v3963_v27, %v3949_v39 }
0x111f   :  { %v4116_v18 = vmax.f32 %v4094_v8, 0.0  ;;  %v4117_v28 = vmax.f32 %v4108_v4, 0.0 }
0x1120   :  { %v3978_v45 = vadd.f32 %v3977_v23, %v3964_v20 }
0x1121   :  { %v4120_v59 = vpack.c.bf16 %v4116_v18, %v4112_v61  ;;  %v4121_v31 = vpack.c.bf16 %v4117_v28, %v4113_v21  ;;  %v4527_v28 = vld [vmem:[%s8585_s20] sm:$0x3] }
0x1122   :  { %v3992_v38 = vadd.f32 %v3991_v63, %v3978_v45  ;;  %v6679_v63 = vld [vmem:[%s8581_s16 + $0x1] ss:$0 sm:$0xff]  ;;  %v6657_v45 = vld [vmem:[%s8584_s19 + $0x8] sm:$0xff] }
0x1123   :  { %4414 = vmatmul.bf16.vlgmr.msrb.gmra.mxu0 %v4120_v59  ;;  %4428 = vmatmul.bf16.vlgmr.msrb.gmra.mxu1 %v4121_v31  ;;  %v4525_v59 = vld [vmem:[%s8611_s0] sm:$0x3] }
0x1124   :  { %v3995_v40 = vadd.f32 %v3992_v38, %v8402_v35  ;;  %4570 = vmatpush.bf16.msra.mxu0 %v6657_v45 }
0x1125   :  { %v4063_v57 = vpop.f32.mrf.mxu2  ;;  %v4077_v41 = vpop.f32.mrf.mxu3 }
0x1126   :  { %v4064_v5 = vadd.f32 %v4063_v57, %v4006_v54  ;;  %v4078_v12 = vadd.f32 %v4077_v41, %v4007_v11  ;;  %v4526_v57 = vpack.c.bf16 %v4525_v59, %v4525_v59 }
0x1128   :  { %v4110_v51 = vmax.f32 %v4064_v5, 0.0  ;;  %v4111_v52 = vmax.f32 %v4078_v12, 0.0 }
0x112d   :  { %v4065_v48 = vpop.f32.mrf.mxu2  ;;  %v4079_v49 = vpop.f32.mrf.mxu3 }
0x112e   :  { %v4066_v50 = vadd.f32 %v4065_v48, %v4006_v54  ;;  %v4080_v30 = vadd.f32 %v4079_v49, %v4007_v11 }
0x1130   :  { %v4114_v32 = vmax.f32 %v4066_v50, 0.0  ;;  %v4115_v6 = vmax.f32 %v4080_v30, 0.0  ;;  %v146_v50 = vmul.u32 8, %v6933_v15  ;;  %v6681_v15 = vld [vmem:[%s8583_s18 + $0x1] ss:$0 sm:$0xff] }
0x1132   :  { %v4118_v37 = vpack.c.bf16 %v4114_v32, %v4110_v51  ;;  %v4119_v36 = vpack.c.bf16 %v4115_v6, %v4111_v52  ;;  %v6680_v6 = vld [vmem:[%s8582_s17 + $0x1] ss:$0 sm:$0xff] }
0x1134   :  { %4386 = vmatmul.bf16.vlgmr.msra.gmra.mxu2 %v4118_v37  ;;  %4400 = vmatmul.bf16.vlgmr.msra.gmra.mxu3 %v4119_v36  ;;  %v147_v37 = vadd.s32 7, %v146_v50 }
0x1136   :  { %vm148_vm1 = vcmp.eq.s32.totalorder %v6950_v29, %v147_v37 }
0x11a0   :  { %v4415_v53 = vpop.f32.mrf.mxu0  ;;  %v4429_v22 = vpop.f32.mrf.mxu1 }
0x11a8   :  { %v4417_v2 = vpop.f32.mrf.mxu0  ;;  %v4431_v47 = vpop.f32.mrf.mxu1 }
0x11b7   :  { %v4387_v35 = vpop.f32.mrf.mxu2  ;;  %v4401_v7 = vpop.f32.mrf.mxu3 }
0x11b8   :  { %v4402_v55 = vadd.f32 %v4401_v7, %v4387_v35 }
0x11ba   :  { %v4416_v60 = vadd.f32 %v4415_v53, %v4402_v55 }
0x11bc   :  { %v4430_v58 = vadd.f32 %v4429_v22, %v4416_v60 }
0x11be   :  { %v4434_v23 = vadd.f32 %v4430_v58, %v3994_v26  ;;  %v4642_v58 = vsel %vm148_vm1, 1.0, %v6775_v33  ;;  %v6659_v33 = vld [vmem:[%s8587_s22 + $0x8] sm:$0xff] }
0x11bf   :  { %v4389_v0 = vpop.f32.mrf.mxu2  ;;  %v4403_v62 = vpop.f32.mrf.mxu3  ;;  %4613 = vmatpush.bf16.msra.mxu1 %v6659_v33 }
0x11c0   :  { %v4404_v34 = vadd.f32 %v4403_v62, %v4389_v0  ;;  %v4436_v1 = vadd.f32 %v4434_v23, %v7951_v42  ;;  %v6656_v0 = vld [vmem:[%s8584_s19] sm:$0xff] }
0x11c1   :  { %4571 = vmatpush.bf16.msra.mxu0 %v6656_v0 }
0x11c2   :  { %v4418_v13 = vadd.f32 %v4417_v2, %v4404_v34  ;;  %v4443_v46 = vadd.f32 %v6679_v63, %v4436_v1 }
0x11c4   :  { %v4432_v9 = vadd.f32 %v4431_v47, %v4418_v13  ;;  %v4449_v19 = vsel %vm237_vm8, %v4443_v46, 0.0  ;;  %v6658_v13 = vld [vmem:[%s8587_s22] sm:$0xff] }
0x11c5   :  { %4450 = vadd.xlane.f32.xlu0 %v4449_v19  ;;  %4614 = vmatpush.bf16.msra.mxu1 %v6658_v13 }
0x11c6   :  { %v4435_v56 = vadd.f32 %v4432_v9, %v3995_v40  ;;  %v4534_v40 = vsel %vm4532_vm7, %v4527_v28, 0 }
0x11c7   :  { %4543 = vmatpush.bf16.msrb.mxu3 %v4534_v40 }
0x11c8   :  { %v4437_v10 = vadd.f32 %v4435_v56, %v7953_v43 }
0x11ca   :  { %v4444_v24 = vadd.f32 %v6679_v63, %v4437_v10  ;;  %6309 = vmatmul.msk.bf16.vlgmr.msrb.gmra.mxu3 %vm4528_vm9, %v4526_v57  ;;  %v151_v63 = vpack.c.bf16 %v4642_v58, %v4642_v58 }
0x11cc   :  { %v4452_v3 = vsel %vm237_vm8, %v4444_v24, 0.0 }
0x11cd   :  { %4453 = vadd.xlane.f32.xlu0 %v4452_v3  ;;  %v6683_v3 = vld [vmem:[%s8588_s23] ss:$0 sm:$0xff] }
0x1238   :  { %v4451_v25 = vpop.xlane.xlu0 %4450 }
0x1239   :  { %v4455_v14 = vmul.f32 %v4451_v25, %v7034_v17 }
0x123b   :  { %v4457_v26 = vsub.f32 %v4443_v46, %v4455_v14  ;;  %v6682_v46 = vld [vmem:[%s8586_s21] ss:$0 sm:$0xff] }
0x123d   :  { %v4459_v42 = vmul.f32 %v4457_v26, %v4457_v26 }
0x123f   :  { %v4461_v44 = vsel %vm237_vm8, %v4459_v42, 0.0 }
0x1240   :  { %4462 = vadd.xlane.f32.xlu0 %v4461_v44  ;;  %v4454_v16 = vpop.xlane.xlu0 %4453 }
0x1241   :  { %v4456_v8 = vmul.f32 %v4454_v16, %v7034_v17 }
0x1243   :  { %v4458_v4 = vsub.f32 %v4444_v24, %v4456_v8 }
0x1245   :  { %v4460_v39 = vmul.f32 %v4458_v4, %v4458_v4 }
0x1247   :  { %v4464_v27 = vsel %vm237_vm8, %v4460_v39, 0.0 }
0x1248   :  { %4465 = vadd.xlane.f32.xlu0 %v4464_v27 }
0x124d   :  { %v4545_v62 = vpop.f32.mrf.mxu3 }
0x1255   :  { %v4547_v34 = vpop.f32.mrf.mxu3 }
0x12b3   :  { %v4463_v43 = vpop.xlane.xlu0 %4462 }
0x12b4   :  { %v4467_v20 = vmul.f32 %v4463_v43, %v7034_v17 }
0x12b6   :  { %v4469_v61 = vadd.f32 1e-05, %v4467_v20 }
0x12b8   :  { %6730 = vrsqrt.f32 %v4469_v61  ;;  %vm4477_vm11 = vweird.f32 %v4469_v61 }
0x12bb   :  { %v4466_v21 = vpop.xlane.xlu0 %4465 }
0x12bc   :  { %v4468_v18 = vmul.f32 %v4466_v21, %v7034_v17 }
0x12be   :  { %v6731_v31 = vpop.eup %6730  ;;  %v4470_v38 = vadd.f32 1e-05, %v4468_v18 }
0x12bf   :  { %v4472_v41 = vmul.f32 %v6731_v31, %v4469_v61  ;;  %vm4478_vm10 = vweird.f32 %v6731_v31 }
0x12c0   :  { %6732 = vrsqrt.f32 %v4470_v38  ;;  %vm4479_vm12 = vmor %vm4477_vm11, %vm4478_vm10  ;;  %vm4487_vm15 = vweird.f32 %v4470_v38 }
0x12c1   :  { %v4473_v17 = vmul.f32 %v6731_v31, %v4472_v41 }
0x12c3   :  { %v4474_v54 = vmul.f32 0.5, %v4473_v17 }
0x12c5   :  { %v4475_v11 = vsub.f32 1.5, %v4474_v54 }
0x12c6   :  { %v6733_v5 = vpop.eup %6732 }
0x12c7   :  { %v4476_v12 = vmul.f32 %v6731_v31, %v4475_v11  ;;  %v4482_v48 = vmul.f32 %v6733_v5, %v4470_v38  ;;  %vm4488_vm13 = vweird.f32 %v6733_v5 }
0x12c8   :  { %vm4489_vm0 = vmor %vm4487_vm15, %vm4488_vm13 }
0x12c9   :  { %v4483_v49 = vmul.f32 %v6733_v5, %v4482_v48  ;;  %v4480_v30 = vsel %vm4479_vm12, %v6731_v31, %v4476_v12 }
0x12ca   :  { %v4491_v32 = vmul.f32 %v4480_v30, %v4457_v26 }
0x12cb   :  { %v4484_v51 = vmul.f32 0.5, %v4483_v49 }
0x12cc   :  { %v4496_v7 = vmul.f32 %v6680_v6, %v4491_v32 }
0x12cd   :  { %v4485_v52 = vsub.f32 1.5, %v4484_v51 }
0x12ce   :  { %v4501_v22 = vadd.f32 %v6681_v15, %v4496_v7 }
0x12cf   :  { %v4486_v36 = vmul.f32 %v6733_v5, %v4485_v52 }
0x12d1   :  { %v4490_v53 = vsel %vm4489_vm0, %v6733_v5, %v4486_v36 }
0x12d2   :  { %v4492_v35 = vmul.f32 %v4490_v53, %v4458_v4 }
0x12d4   :  { %v4497_v55 = vmul.f32 %v6680_v6, %v4492_v35 }
0x12d6   :  { %v4502_v60 = vadd.f32 %v6681_v15, %v4497_v55 }
0x12d8   :  { %v4503_v23 = vpack.c.bf16 %v4502_v60, %v4501_v22 }
0x12da   :  { %4514 = vmatpush.bf16.msrb.mxu2 %v4503_v23 }
0x12dd   :  { %6308 = vmatmul.msk.bf16.vlgmr.msrb.gmra.mxu2 %vm318_vm14, %v151_v63  ;;  %vm4620_vm14 = vcmask 33792  }
0x1360   :  { %v4516_v1 = vpop.f32.mrf.mxu2 }
0x1361   :  { %v4520_v2 = vpack.c.bf16 %v4516_v1, %v4516_v1 }
0x1363   :  { %6318 = vmatmul.msk.bf16.vlgmr.msra.gmra.mxu0 %vm237_vm8, %v4520_v2 }
0x1368   :  { %v4518_v29 = vpop.f32.mrf.mxu2 }
0x13e0   :  { %v4573_v47 = vpop.f32.mrf.mxu0 }
0x13e1   :  { %v4574_v9 = vadd.f32 %v4573_v47, %v4545_v62 }
0x13e3   :  { %v4581_v19 = vadd.f32 %v6682_v46, %v4574_v9 }
0x13e5   :  { %v4582_v56 = vmax.f32 %v4581_v19, 0.0 }
0x13e7   :  { %v4583_v10 = vpack.c.bf16 %v4582_v56, %v4582_v56 }
0x13e8   :  { %v4575_v24 = vpop.f32.mrf.mxu0 }
0x13e9   :  { %6327 = vmatmul.msk.bf16.vlgmr.msra.gmra.mxu1 %vm237_vm8, %v4583_v10 }
0x1466   :  { %v4616_v25 = vpop.f32.mrf.mxu1 }
0x1467   :  { %v4617_v14 = vadd.f32 %v6683_v3, %v4616_v25 }
0x1469   :  { %4621 = vst.msk [vmem:[#allocation5] sm:$0x3] %vm4620_vm14, %v4617_v14 }
0x146a   :  { %4632 = dma.vmem_to_hbm [thread:$0]  %s4628_s5, 32, %s4630_s11, [#allocation3]  }
0x146e   :  { %v4618_v26 = vpop.f32.mrf.mxu1 }
0x146f   :  { %6772 = dma.done.wait [#allocation3], 32  }
0x1470   :  { %6773 = vsyncadd [#allocation3], 4294967264 }
0x1471   :  { %4637 = vsyncpa [#allocation3], 1 }
0x1472   :  { %4638 = vsyncpa [#allocation4], 1 }

</bundles_post_ra>
